<compile_context>
chip_gen: v7x
topology: tpu7x:2x2x1
jax: 0.10.0
libtpu: 0.0.40
codegen_flags: <defaults>
</compile_context>

<pallas_src>
import numpy as np
import jax
import jax.numpy as jnp
from jax.experimental import pallas as pl
from jax.experimental.pallas import tpu as pltpu


# -----------------------------------------------------------------------------------
# Host-side constants for one ConvTranspose2d layer (BN scale folded into the weight).
# -----------------------------------------------------------------------------------
def _layer_plan(w_fold, H, W, K, S, P, OP, allow_fuse):
    Cin, Cout = w_fold.shape[0], w_fold.shape[1]
    Hout = (H - 1) * S - 2 * P + K + OP
    Wout = (W - 1) * S - 2 * P + K + OP
    if Hout % S != 0:
        raise NotImplementedError("TODO(synk): Hout not divisible by stride")
    n_rows = Hout // S
    Wc, Wo = W * Cin, Wout * Cout

    # y-taps per output-row parity ry: output row S*t+ry reads input row t+o with
    # kernel row ky where S*o + ky = ry + P.
    taps_y = []
    for ry in range(S):
        taps = [((ry + P - ky) // S, ky) for ky in range(K) if (ry + P - ky) % S == 0]
        if not taps:
            raise NotImplementedError("TODO(synk): kernel smaller than stride")
        taps.sort(key=lambda tt: -tt[0])          # o descending (consecutive integers)
        taps_y.append(taps)

    all_o = [o for taps in taps_y for (o, _) in taps]
    pad_top = max(0, -min(all_o))
    pad_bot = max(0, (n_rows - 1) + max(all_o) - (H - 1))
    R = pad_top + H + pad_bot                      # buffer rows per image

    # x-direction scatter + channel contraction for kernel row ky:
    #   M[ix*Cin+ci, ox*Cout+co] = w_fold[ci, co, ky, kx],  ox = S*ix - P + kx
    def make_M(ky):
        M = np.zeros((Wc, Wo), np.float32)
        for ix in range(W):
            for kx in range(K):
                ox = S * ix - P + kx
                if 0 <= ox < Wout:
                    M[ix * Cin:(ix + 1) * Cin, ox * Cout:(ox + 1) * Cout] += w_fold[:, :, ky, kx]
        return M

    T = len(taps_y[0])
    fuse = allow_fuse and (Wc % 128 == 0) and all(len(t) == T for t in taps_y)

    if fuse:
        # one (T*Wc, Wo) matrix per parity; chunk j pairs with row offset o_max - j
        M = np.stack([np.concatenate([make_M(ky) for (_, ky) in taps_y[ry]], axis=0)
                      for ry in range(S)], axis=0)                    # (S, T*Wc, Wo)
        d_lo = [pad_top + taps_y[ry][-1][0] for ry in range(S)]
        taps = None
    else:
        mats, taps = [], []
        for ry in range(S):
            lst = []
            for (o, ky) in taps_y[ry]:
                lst.append((len(mats), pad_top + o))
                mats.append(make_M(ky))
            taps.append(lst)
        M = np.stack(mats, axis=0)                                    # (n_taps, Wc, Wo)
        d_lo = None

    # exact one-hot row-parity interleave (only used by the fallback path)
    F = np.zeros((S, Hout, n_rows), np.float32)
    for ry in range(S):
        for t in range(n_rows):
            F[ry, S * t + ry, t] = 1.0

    return dict(H=H, W=W, Cin=Cin, Cout=Cout, Hout=Hout, Wout=Wout, Wc=Wc, Wo=Wo,
                n_rows=n_rows, pad_top=pad_top, pad_bot=pad_bot, R=R, T=T,
                fuse=fuse, M=M, F=F, d_lo=d_lo, taps=taps)


# -----------------------------------------------------------------------------------
# The fused Pallas kernel: whole decoder for one batch chunk per grid step.
# -----------------------------------------------------------------------------------
def _make_kernel(plans, S, bs, use_strided):
    n_layers = len(plans)
    per_layer = 2 if use_strided else 3            # (M, shift) or (M, F, shift)

    def kernel(*refs):
        x_ref = refs[0]
        const_refs = refs[1:1 + per_layer * n_layers]
        o_ref = refs[1 + per_layer * n_layers]
        act_refs = refs[2 + per_layer * n_layers:]

        # zero the pad rows of every activation buffer (every step; grid has <= 2 steps
        # and each TensorCore owns its own scratch, so no program_id==0 guard).
        for li, p in enumerate(plans):
            buf = act_refs[li]
            pt, pb, h, R, Wc = p["pad_top"], p["pad_bot"], p["H"], p["R"], p["Wc"]
            for b in range(bs):
                if pt > 0:
                    buf[b * R:b * R + pt, :] = jnp.zeros((pt, Wc), jnp.float32)
                if pb > 0:
                    buf[b * R + pt + h:(b + 1) * R, :] = jnp.zeros((pb, Wc), jnp.float32)

        # stage the input image(s) into layer 0's buffer
        p0 = plans[0]
        for b in range(bs):
            dst = b * p0["R"] + p0["pad_top"]
            act_refs[0][dst:dst + p0["H"], :] = x_ref[b * p0["H"]:(b + 1) * p0["H"], :]

        for li, p in enumerate(plans):
            a_ref = act_refs[li]
            c = const_refs[per_layer * li:per_layer * (li + 1)]
            m_ref, s_ref = c[0], c[-1]
            f_ref = None if use_strided else c[1]
            last = (li + 1 == n_layers)
            nxt = o_ref if last else act_refs[li + 1]
            pn = None if last else plans[li + 1]
            n, R, T, Wo = p["n_rows"], p["R"], p["T"], p["Wo"]

            # ---- row-parity blocks q[ry][b] : (n_rows, Wout*Cout) f32 --------------
            if p["fuse"]:
                # one fat bf16 matmul per parity over the whole (batch-stacked) buffer
                nD = bs * R - (T - 1)
                pieces = [a_ref[(T - 1 - j):(T - 1 - j) + nD, :] for j in range(T)]
                lhs = pieces[0] if T == 1 else jnp.concatenate(pieces, axis=1)
                lhs = lhs.astype(jnp.bfloat16)
                prods = [jnp.dot(lhs, m_ref[ry], preferred_element_type=jnp.float32)
                         for ry in range(S)]
                q = [[prods[ry][b * R + p["d_lo"][ry]:b * R + p["d_lo"][ry] + n]
                      for b in range(bs)] for ry in range(S)]
            else:
                q = []
                for ry in range(S):
                    row = []
                    for b in range(bs):
                        acc = None
                        for (mi, d) in p["taps"][ry]:
                            lhs = a_ref[b * R + d:b * R + d + n, :].astype(jnp.bfloat16)
                            t_ = jnp.dot(lhs, m_ref[mi], preferred_element_type=jnp.float32)
                            acc = t_ if acc is None else acc + t_
                        row.append(acc)
                    q.append(row)

            # ---- folded bias/BN shift + activation + interleaved store -------------
            shift = s_ref[...]                                       # (1, Wo), f32
            for b in range(bs):
                if use_strided:
                    for ry in range(S):
                        y = q[ry][b] + shift
                        y = jnp.maximum(y, 0.0) if p["act"] == "relu" else jax.nn.sigmoid(y)
                        if last:
                            nxt[pl.ds(b * p["Hout"] + ry, n, stride=S), :] = y
                        else:
                            base = b * pn["R"] + pn["pad_top"] + ry
                            nxt[pl.ds(base, n, stride=S), :] = y
                else:
                    # fallback: exact one-hot interleave matmul (previously validated)
                    y_full = None
                    for ry in range(S):
                        y = q[ry][b] + shift
                        y = jnp.maximum(y, 0.0) if p["act"] == "relu" else jax.nn.sigmoid(y)
                        t_ = jnp.dot(f_ref[ry], y, preferred_element_type=jnp.float32)
                        y_full = t_ if y_full is None else y_full + t_
                    if last:
                        nxt[b * p["Hout"]:(b + 1) * p["Hout"], :] = y_full
                    else:
                        base = b * pn["R"] + pn["pad_top"]
                        nxt[base:base + p["Hout"], :] = y_full

    return kernel


# -----------------------------------------------------------------------------------
# Module wrapper
# -----------------------------------------------------------------------------------
class ConvDecoderPallas:
    """JAX/Pallas port of the PyTorch ConvDecoder (eval-mode BatchNorm), fully fused."""

    def __init__(self, in_ch, n_features, kernel, stride, padding, out_padding, key):
        self.K = kernel
        self.stride = stride
        self.padding = padding
        self.out_padding = out_padding
        self.eps = 1e-5

        out_features = [n_features * 4, n_features * 2, n_features, n_features]
        in_features = [in_ch] + out_features[:-1]

        keys = jax.random.split(key, 4 * len(out_features) + 2)
        ki = 0
        self.params = []
        for cin, cout in zip(in_features, out_features):
            w = 0.1 * jax.random.normal(keys[ki], (cin, cout, kernel, kernel), jnp.float32); ki += 1
            b = 0.1 * jax.random.normal(keys[ki], (cout,), jnp.float32); ki += 1
            gamma = 1.0 + 0.1 * jax.random.normal(keys[ki], (cout,), jnp.float32); ki += 1
            beta = 0.1 * jax.random.normal(keys[ki], (cout,), jnp.float32); ki += 1
            self.params.append(dict(w=w, b=b, gamma=gamma, beta=beta,
                                    mean=jnp.zeros((cout,), jnp.float32),
                                    var=jnp.ones((cout,), jnp.float32),
                                    bn=True, act="relu"))
        wf = 0.1 * jax.random.normal(keys[ki], (n_features, 1, kernel, kernel), jnp.float32); ki += 1
        bf = 0.1 * jax.random.normal(keys[ki], (1,), jnp.float32); ki += 1
        self.params.append(dict(w=wf, b=bf, gamma=None, beta=None, mean=None, var=None,
                                bn=False, act="sigmoid"))

        self._plan_cache = {}
        self._fn_cache = {}
        self._good = {}

    @staticmethod
    def _chunking(N):
        # 2 chunks keeps both v7x TensorCores busy; extra batch folds into sublane rows.
        n_chunks = 2 if (N >= 2 and N % 2 == 0) else 1
        return n_chunks, N // n_chunks

    def _plans(self, H, W, allow_fuse):
        ck = (H, W, allow_fuse)
        if ck in self._plan_cache:
            return self._plan_cache[ck]
        plans = []
        h, w = H, W
        for prm in self.params:
            w_np = np.asarray(prm["w"], np.float32)
            cout = w_np.shape[1]
            if prm["bn"]:
                scale = np.asarray(prm["gamma"]) / np.sqrt(np.asarray(prm["var"]) + self.eps)
                shift = np.asarray(prm["beta"]) + scale * (np.asarray(prm["b"]) - np.asarray(prm["mean"]))
            else:
                scale = np.ones((cout,), np.float32)
                shift = np.asarray(prm["b"], np.float32)
            w_fold = w_np * scale[None, :, None, None]     # fold BN scale into the weight
            pc = _layer_plan(w_fold, h, w, self.K, self.stride, self.padding,
                             self.out_padding, allow_fuse)
            pc["act"] = prm["act"]
            pc["shift_row"] = np.tile(shift.astype(np.float32), pc["Wout"])[None, :]
            plans.append(pc)
            h, w = pc["Hout"], pc["Wout"]
        self._plan_cache[ck] = plans
        return plans

    def _build(self, N, H, W, fast):
        key = (N, H, W, fast)
        if key in self._fn_cache:
            return self._fn_cache[key]

        n_chunks, bs = self._chunking(N)
        plans = self._plans(H, W, allow_fuse=fast)
        per_layer = 2 if fast else 3

        consts, in_specs = [], []
        p0 = plans[0]
        in_specs.append(pl.BlockSpec((None, bs * H, p0["Wc"]), lambda n: (n, 0, 0)))
        for pc in plans:
            consts.append(jnp.asarray(pc["M"], dtype=jnp.bfloat16))        # bf16 MXU weights
            in_specs.append(pl.BlockSpec(pc["M"].shape, lambda n: (0, 0, 0)))
            if not fast:
                consts.append(jnp.asarray(pc["F"]))                        # exact interleave
                in_specs.append(pl.BlockSpec(pc["F"].shape, lambda n: (0, 0, 0)))
            consts.append(jnp.asarray(pc["shift_row"]))                    # f32 epilogue
            in_specs.append(pl.BlockSpec(pc["shift_row"].shape, lambda n: (0, 0)))

        pL = plans[-1]
        Hf, Wf, Cf = pL["Hout"], pL["Wout"], pL["Cout"]
        out_specs = pl.BlockSpec((None, bs * Hf, Wf * Cf), lambda n: (n, 0, 0))
        scratch = [pltpu.VMEM((bs * pc["R"], pc["Wc"]), jnp.float32) for pc in plans]

        fn = pl.pallas_call(
            _make_kernel(plans, self.stride, bs, use_strided=fast),
            out_shape=jax.ShapeDtypeStruct((n_chunks, bs * Hf, Wf * Cf), jnp.float32),
            grid=(n_chunks,),
            in_specs=in_specs,
            out_specs=out_specs,
            scratch_shapes=scratch,
            compiler_params=pltpu.CompilerParams(dimension_semantics=("parallel",)),
        )
        self._fn_cache[key] = (fn, consts, (Hf, Wf, Cf))
        return self._fn_cache[key]

    def __call__(self, x_nchw):
        N, C, H, W = x_nchw.shape
        n_chunks, bs = self._chunking(N)
        # NCHW -> packed (chunk, bs*H, W*C) layout (rows = stacked H, lanes = W*C)
        x_packed = jnp.transpose(x_nchw.astype(jnp.float32), (0, 2, 3, 1))
        x_packed = x_packed.reshape(N, H, W * C).reshape(n_chunks, bs * H, W * C)

        ck = (N, H, W)
        if ck in self._good:
            fn, consts, (Hf, Wf, Cf) = self._good[ck]
            out = fn(x_packed, *consts)
        else:
            out, last_err = None, None
            for fast in (True, False):
                try:
                    fn, consts, (Hf, Wf, Cf) = self._build(N, H, W, fast)
                    out = fn(x_packed, *consts)
                    jax.block_until_ready(out)
                    self._good[ck] = (fn, consts, (Hf, Wf, Cf))
                    break
                except Exception as e:     # lowering/compile failure -> validated fallback
                    last_err = e
                    out = None
            if out is None:
                raise last_err

        out = out.reshape(N, Hf, Wf, Cf)
        return jnp.transpose(out, (0, 3, 1, 2))


# ----------------------------- pure-JAX reference ----------------------------------
def _ref_convt(x_nhwc, w_pt, stride, padding, out_padding):
    K = w_pt.shape[2]
    w_flip = jnp.transpose(w_pt[:, :, ::-1, ::-1], (2, 3, 0, 1))       # HWIO
    pb = K - 1 - padding
    return jax.lax.conv_general_dilated(
        x_nhwc, w_flip, window_strides=(1, 1),
        padding=[(pb, pb + out_padding), (pb, pb + out_padding)],
        lhs_dilation=(stride, stride),
        dimension_numbers=("NHWC", "HWIO", "NHWC"))


def reference_forward(model, x_nchw):
    x = jnp.transpose(x_nchw, (0, 2, 3, 1)).astype(jnp.float32)
    for prm in model.params:
        y = _ref_convt(x, prm["w"], model.stride, model.padding, model.out_padding) + prm["b"]
        if prm["bn"]:
            y = (y - prm["mean"]) / jnp.sqrt(prm["var"] + model.eps) * prm["gamma"] + prm["beta"]
            x = jnp.maximum(y, 0.0)
        else:
            x = jax.nn.sigmoid(y)
    return jnp.transpose(x, (0, 3, 1, 2))


if __name__ == "__main__":
    key = jax.random.PRNGKey(0)
    k_param, k_x = jax.random.split(key)

    # small, module-consistent configuration (canonical DCGAN-style decoder)
    in_ch, n_features = 8, 4
    kernel, stride, padding, out_padding = 4, 2, 1, 0
    model = ConvDecoderPallas(in_ch, n_features, kernel, stride, padding,
                              out_padding, k_param)

    # input: NCHW like PyTorch; spatial 4x4 -> output (2, 1, 128, 128)
    x = jax.random.normal(k_x, (2, in_ch, 4, 4), jnp.float32)

    out = jax.block_until_ready(model(x))
    ref = jax.block_until_ready(reference_forward(model, x))

    assert out.shape == (2, 1, 128, 128), out.shape
    err = jnp.max(jnp.abs(out - ref))
    # bf16 MXU constants -> slightly looser tolerance than the pure-f32 formulation
    assert jnp.allclose(out, ref, atol=2e-2, rtol=2e-2), f"max abs err {err}"

    print("KERNEL_OK")
</pallas_src>

<mosaic_0001>
module attributes {stable_mosaic.version = 11 : i64} {
  func.func @kernel(%arg0: i32, %arg1: memref<1x4x32xf32, #tpu.memory_space<vmem>>, %arg2: memref<4x32x128xbf16, #tpu.memory_space<vmem>>, %arg3: memref<1x128xf32, #tpu.memory_space<vmem>>, %arg4: memref<2x256x128xbf16, #tpu.memory_space<vmem>>, %arg5: memref<1x128xf32, #tpu.memory_space<vmem>>, %arg6: memref<2x256x128xbf16, #tpu.memory_space<vmem>>, %arg7: memref<1x128xf32, #tpu.memory_space<vmem>>, %arg8: memref<2x256x256xbf16, #tpu.memory_space<vmem>>, %arg9: memref<1x256xf32, #tpu.memory_space<vmem>>, %arg10: memref<2x512x128xbf16, #tpu.memory_space<vmem>>, %arg11: memref<1x128xf32, #tpu.memory_space<vmem>>, %arg12: memref<1x128x128xf32, #tpu.memory_space<vmem>>, %arg13: memref<6x32xf32, #tpu.memory_space<vmem>>, %arg14: memref<10x128xf32, #tpu.memory_space<vmem>>, %arg15: memref<18x128xf32, #tpu.memory_space<vmem>>, %arg16: memref<34x128xf32, #tpu.memory_space<vmem>>, %arg17: memref<66x256xf32, #tpu.memory_space<vmem>>) attributes {dimension_semantics = [#tpu.dimension_semantics<parallel>], iteration_bounds = array<i64: 2>, scalar_prefetch = 0 : i64, scratch_operands = 5 : i64, tpu.core_type = #tpu.core_type<tc>, window_params = [{transform_indices = @transform_0, window_bounds = array<i64: 1, 4, 32>}, {pipeline_mode = #tpu.pipeline_mode<synchronous>, transform_indices = @transform_1, window_bounds = array<i64: 4, 32, 128>}, {pipeline_mode = #tpu.pipeline_mode<synchronous>, transform_indices = @transform_2, window_bounds = array<i64: 1, 128>}, {pipeline_mode = #tpu.pipeline_mode<synchronous>, transform_indices = @transform_3, window_bounds = array<i64: 2, 256, 128>}, {pipeline_mode = #tpu.pipeline_mode<synchronous>, transform_indices = @transform_4, window_bounds = array<i64: 1, 128>}, {pipeline_mode = #tpu.pipeline_mode<synchronous>, transform_indices = @transform_5, window_bounds = array<i64: 2, 256, 128>}, {pipeline_mode = #tpu.pipeline_mode<synchronous>, transform_indices = @transform_6, window_bounds = array<i64: 1, 128>}, {pipeline_mode = #tpu.pipeline_mode<synchronous>, transform_indices = @transform_7, window_bounds = array<i64: 2, 256, 256>}, {pipeline_mode = #tpu.pipeline_mode<synchronous>, transform_indices = @transform_8, window_bounds = array<i64: 1, 256>}, {pipeline_mode = #tpu.pipeline_mode<synchronous>, transform_indices = @transform_9, window_bounds = array<i64: 2, 512, 128>}, {pipeline_mode = #tpu.pipeline_mode<synchronous>, transform_indices = @transform_10, window_bounds = array<i64: 1, 128>}, {transform_indices = @transform_11, window_bounds = array<i64: 1, 128, 128>}]} {
    %cst = arith.constant 0.000000e+00 : f32
    %0 = vector.broadcast %cst : f32 to vector<1x32xf32>
    %c0 = arith.constant 0 : index
    %c0_0 = arith.constant 0 : index
    %1 = vector.load %arg13[%c0, %c0_0] : memref<6x32xf32, #tpu.memory_space<vmem>>, vector<1x32xf32>
    tpu.vector_store %arg13[%c0, %c0_0], %0 {strides = array<i32>} : memref<6x32xf32, #tpu.memory_space<vmem>>, vector<1x32xf32>,
    %cst_1 = arith.constant 0.000000e+00 : f32
    %2 = vector.broadcast %cst_1 : f32 to vector<1x32xf32>
    %c5 = arith.constant 5 : index
    %c0_2 = arith.constant 0 : index
    %3 = vector.load %arg13[%c5, %c0_2] : memref<6x32xf32, #tpu.memory_space<vmem>>, vector<1x32xf32>
    tpu.vector_store %arg13[%c5, %c0_2], %2 {strides = array<i32>} : memref<6x32xf32, #tpu.memory_space<vmem>>, vector<1x32xf32>,
    %cst_3 = arith.constant 0.000000e+00 : f32
    %4 = vector.broadcast %cst_3 : f32 to vector<1x128xf32>
    %c0_4 = arith.constant 0 : index
    %c0_5 = arith.constant 0 : index
    %5 = vector.load %arg14[%c0_4, %c0_5] : memref<10x128xf32, #tpu.memory_space<vmem>>, vector<1x128xf32>
    tpu.vector_store %arg14[%c0_4, %c0_5], %4 {strides = array<i32>} : memref<10x128xf32, #tpu.memory_space<vmem>>, vector<1x128xf32>,
    %cst_6 = arith.constant 0.000000e+00 : f32
    %6 = vector.broadcast %cst_6 : f32 to vector<1x128xf32>
    %c9 = arith.constant 9 : index
    %c0_7 = arith.constant 0 : index
    %7 = vector.load %arg14[%c9, %c0_7] : memref<10x128xf32, #tpu.memory_space<vmem>>, vector<1x128xf32>
    tpu.vector_store %arg14[%c9, %c0_7], %6 {strides = array<i32>} : memref<10x128xf32, #tpu.memory_space<vmem>>, vector<1x128xf32>,
    %cst_8 = arith.constant 0.000000e+00 : f32
    %8 = vector.broadcast %cst_8 : f32 to vector<1x128xf32>
    %c0_9 = arith.constant 0 : index
    %c0_10 = arith.constant 0 : index
    %9 = vector.load %arg15[%c0_9, %c0_10] : memref<18x128xf32, #tpu.memory_space<vmem>>, vector<1x128xf32>
    tpu.vector_store %arg15[%c0_9, %c0_10], %8 {strides = array<i32>} : memref<18x128xf32, #tpu.memory_space<vmem>>, vector<1x128xf32>,
    %cst_11 = arith.constant 0.000000e+00 : f32
    %10 = vector.broadcast %cst_11 : f32 to vector<1x128xf32>
    %c17 = arith.constant 17 : index
    %c0_12 = arith.constant 0 : index
    %11 = vector.load %arg15[%c17, %c0_12] : memref<18x128xf32, #tpu.memory_space<vmem>>, vector<1x128xf32>
    tpu.vector_store %arg15[%c17, %c0_12], %10 {strides = array<i32>} : memref<18x128xf32, #tpu.memory_space<vmem>>, vector<1x128xf32>,
    %cst_13 = arith.constant 0.000000e+00 : f32
    %12 = vector.broadcast %cst_13 : f32 to vector<1x128xf32>
    %c0_14 = arith.constant 0 : index
    %c0_15 = arith.constant 0 : index
    %13 = vector.load %arg16[%c0_14, %c0_15] : memref<34x128xf32, #tpu.memory_space<vmem>>, vector<1x128xf32>
    tpu.vector_store %arg16[%c0_14, %c0_15], %12 {strides = array<i32>} : memref<34x128xf32, #tpu.memory_space<vmem>>, vector<1x128xf32>,
    %cst_16 = arith.constant 0.000000e+00 : f32
    %14 = vector.broadcast %cst_16 : f32 to vector<1x128xf32>
    %c33 = arith.constant 33 : index
    %c0_17 = arith.constant 0 : index
    %15 = vector.load %arg16[%c33, %c0_17] : memref<34x128xf32, #tpu.memory_space<vmem>>, vector<1x128xf32>
    tpu.vector_store %arg16[%c33, %c0_17], %14 {strides = array<i32>} : memref<34x128xf32, #tpu.memory_space<vmem>>, vector<1x128xf32>,
    %cst_18 = arith.constant 0.000000e+00 : f32
    %16 = vector.broadcast %cst_18 : f32 to vector<1x256xf32>
    %c0_19 = arith.constant 0 : index
    %c0_20 = arith.constant 0 : index
    %17 = vector.load %arg17[%c0_19, %c0_20] : memref<66x256xf32, #tpu.memory_space<vmem>>, vector<1x256xf32>
    tpu.vector_store %arg17[%c0_19, %c0_20], %16 {strides = array<i32>} : memref<66x256xf32, #tpu.memory_space<vmem>>, vector<1x256xf32>,
    %cst_21 = arith.constant 0.000000e+00 : f32
    %18 = vector.broadcast %cst_21 : f32 to vector<1x256xf32>
    %c65 = arith.constant 65 : index
    %c0_22 = arith.constant 0 : index
    %19 = vector.load %arg17[%c65, %c0_22] : memref<66x256xf32, #tpu.memory_space<vmem>>, vector<1x256xf32>
    tpu.vector_store %arg17[%c65, %c0_22], %18 {strides = array<i32>} : memref<66x256xf32, #tpu.memory_space<vmem>>, vector<1x256xf32>,
    %c0_23 = arith.constant 0 : index
    %c0_24 = arith.constant 0 : index
    %c0_25 = arith.constant 0 : index
    %20 = vector.load %arg1[%c0_23, %c0_24, %c0_25] : memref<1x4x32xf32, #tpu.memory_space<vmem>>, vector<1x4x32xf32>
    %21 = vector.shape_cast %20 : vector<1x4x32xf32> to vector<4x32xf32>
    %c1 = arith.constant 1 : index
    %c0_26 = arith.constant 0 : index
    %22 = vector.load %arg13[%c1, %c0_26] : memref<6x32xf32, #tpu.memory_space<vmem>>, vector<4x32xf32>
    tpu.vector_store %arg13[%c1, %c0_26], %21 {strides = array<i32>} : memref<6x32xf32, #tpu.memory_space<vmem>>, vector<4x32xf32>,
    %c1_27 = arith.constant 1 : index
    %c0_28 = arith.constant 0 : index
    %23 = vector.load %arg13[%c1_27, %c0_28] : memref<6x32xf32, #tpu.memory_space<vmem>>, vector<4x32xf32>
    %24 = arith.truncf %23 : vector<4x32xf32> to vector<4x32xbf16>
    %c0_29 = arith.constant 0 : index
    %c0_30 = arith.constant 0 : index
    %c0_31 = arith.constant 0 : index
    %25 = vector.load %arg2[%c0_29, %c0_30, %c0_31] : memref<4x32x128xbf16, #tpu.memory_space<vmem>>, vector<1x32x128xbf16>
    %26 = vector.shape_cast %25 : vector<1x32x128xbf16> to vector<32x128xbf16>
    %cst_32 = arith.constant dense<0.000000e+00> : vector<4x128xf32>
    %27 = tpu.matmul %24, %26, %cst_32 {dimension_numbers = #tpu.dot_dimension_numbers<[1], [0], [0], [1], [0, 0, 1, 1], [], []>} : vector<4x32xbf16>, vector<32x128xbf16>, vector<4x128xf32> -> vector<4x128xf32>
    %c0_33 = arith.constant 0 : index
    %c0_34 = arith.constant 0 : index
    %28 = vector.load %arg13[%c0_33, %c0_34] : memref<6x32xf32, #tpu.memory_space<vmem>>, vector<4x32xf32>
    %29 = arith.truncf %28 : vector<4x32xf32> to vector<4x32xbf16>
    %c1_35 = arith.constant 1 : index
    %c0_36 = arith.constant 0 : index
    %c0_37 = arith.constant 0 : index
    %30 = vector.load %arg2[%c1_35, %c0_36, %c0_37] : memref<4x32x128xbf16, #tpu.memory_space<vmem>>, vector<1x32x128xbf16>
    %31 = vector.shape_cast %30 : vector<1x32x128xbf16> to vector<32x128xbf16>
    %cst_38 = arith.constant dense<0.000000e+00> : vector<4x128xf32>
    %32 = tpu.matmul %29, %31, %cst_38 {dimension_numbers = #tpu.dot_dimension_numbers<[1], [0], [0], [1], [0, 0, 1, 1], [], []>} : vector<4x32xbf16>, vector<32x128xbf16>, vector<4x128xf32> -> vector<4x128xf32>
    %33 = arith.addf %27, %32 : vector<4x128xf32>
    %c2 = arith.constant 2 : index
    %c0_39 = arith.constant 0 : index
    %34 = vector.load %arg13[%c2, %c0_39] : memref<6x32xf32, #tpu.memory_space<vmem>>, vector<4x32xf32>
    %35 = arith.truncf %34 : vector<4x32xf32> to vector<4x32xbf16>
    %c2_40 = arith.constant 2 : index
    %c0_41 = arith.constant 0 : index
    %c0_42 = arith.constant 0 : index
    %36 = vector.load %arg2[%c2_40, %c0_41, %c0_42] : memref<4x32x128xbf16, #tpu.memory_space<vmem>>, vector<1x32x128xbf16>
    %37 = vector.shape_cast %36 : vector<1x32x128xbf16> to vector<32x128xbf16>
    %cst_43 = arith.constant dense<0.000000e+00> : vector<4x128xf32>
    %38 = tpu.matmul %35, %37, %cst_43 {dimension_numbers = #tpu.dot_dimension_numbers<[1], [0], [0], [1], [0, 0, 1, 1], [], []>} : vector<4x32xbf16>, vector<32x128xbf16>, vector<4x128xf32> -> vector<4x128xf32>
    %c1_44 = arith.constant 1 : index
    %c0_45 = arith.constant 0 : index
    %39 = vector.load %arg13[%c1_44, %c0_45] : memref<6x32xf32, #tpu.memory_space<vmem>>, vector<4x32xf32>
    %40 = arith.truncf %39 : vector<4x32xf32> to vector<4x32xbf16>
    %c3 = arith.constant 3 : index
    %c0_46 = arith.constant 0 : index
    %c0_47 = arith.constant 0 : index
    %41 = vector.load %arg2[%c3, %c0_46, %c0_47] : memref<4x32x128xbf16, #tpu.memory_space<vmem>>, vector<1x32x128xbf16>
    %42 = vector.shape_cast %41 : vector<1x32x128xbf16> to vector<32x128xbf16>
    %cst_48 = arith.constant dense<0.000000e+00> : vector<4x128xf32>
    %43 = tpu.matmul %40, %42, %cst_48 {dimension_numbers = #tpu.dot_dimension_numbers<[1], [0], [0], [1], [0, 0, 1, 1], [], []>} : vector<4x32xbf16>, vector<32x128xbf16>, vector<4x128xf32> -> vector<4x128xf32>
    %44 = arith.addf %38, %43 : vector<4x128xf32>
    %c0_49 = arith.constant 0 : index
    %c0_50 = arith.constant 0 : index
    %45 = vector.load %arg3[%c0_49, %c0_50] : memref<1x128xf32, #tpu.memory_space<vmem>>, vector<1x128xf32>
    %46 = vector.broadcast %45 : vector<1x128xf32> to vector<4x128xf32>
    %47 = arith.addf %33, %46 : vector<4x128xf32>
    %cst_51 = arith.constant 0.000000e+00 : f32
    %48 = vector.broadcast %cst_51 : f32 to vector<4x128xf32>
    %49 = arith.maximumf %47, %48 : vector<4x128xf32>
    %c1_52 = arith.constant 1 : index
    %c0_53 = arith.constant 0 : index
    %50 = tpu.strided_load %arg14[%c1_52, %c0_53] {strides = array<i32: 2, 1>} : memref<10x128xf32, #tpu.memory_space<vmem>>, vector<4x128xf32>
    tpu.strided_store %arg14[%c1_52, %c0_53], %49 {strides = array<i32: 2, 1>} : memref<10x128xf32, #tpu.memory_space<vmem>>, vector<4x128xf32>
    %51 = vector.broadcast %45 : vector<1x128xf32> to vector<4x128xf32>
    %52 = arith.addf %44, %51 : vector<4x128xf32>
    %cst_54 = arith.constant 0.000000e+00 : f32
    %53 = vector.broadcast %cst_54 : f32 to vector<4x128xf32>
    %54 = arith.maximumf %52, %53 : vector<4x128xf32>
    %c2_55 = arith.constant 2 : index
    %c0_56 = arith.constant 0 : index
    %55 = tpu.strided_load %arg14[%c2_55, %c0_56] {strides = array<i32: 2, 1>} : memref<10x128xf32, #tpu.memory_space<vmem>>, vector<4x128xf32>
    tpu.strided_store %arg14[%c2_55, %c0_56], %54 {strides = array<i32: 2, 1>} : memref<10x128xf32, #tpu.memory_space<vmem>>, vector<4x128xf32>
    %c1_57 = arith.constant 1 : index
    %c0_58 = arith.constant 0 : index
    %56 = vector.load %arg14[%c1_57, %c0_58] : memref<10x128xf32, #tpu.memory_space<vmem>>, vector<9x128xf32>
    %c0_59 = arith.constant 0 : index
    %c0_60 = arith.constant 0 : index
    %57 = vector.load %arg14[%c0_59, %c0_60] : memref<10x128xf32, #tpu.memory_space<vmem>>, vector<9x128xf32>
    %58 = tpu.concatenate %56, %57 in 1 : vector<9x128xf32>, vector<9x128xf32> -> vector<9x256xf32>
    %59 = arith.truncf %58 : vector<9x256xf32> to vector<9x256xbf16>
    %c0_61 = arith.constant 0 : index
    %c0_62 = arith.constant 0 : index
    %c0_63 = arith.constant 0 : index
    %60 = vector.load %arg4[%c0_61, %c0_62, %c0_63] : memref<2x256x128xbf16, #tpu.memory_space<vmem>>, vector<1x256x128xbf16>
    %61 = vector.shape_cast %60 : vector<1x256x128xbf16> to vector<256x128xbf16>
    %cst_64 = arith.constant dense<0.000000e+00> : vector<9x128xf32>
    %62 = tpu.matmul %59, %61, %cst_64 {dimension_numbers = #tpu.dot_dimension_numbers<[1], [0], [0], [1], [0, 0, 1, 1], [], []>} : vector<9x256xbf16>, vector<256x128xbf16>, vector<9x128xf32> -> vector<9x128xf32>
    %c1_65 = arith.constant 1 : index
    %c0_66 = arith.constant 0 : index
    %c0_67 = arith.constant 0 : index
    %63 = vector.load %arg4[%c1_65, %c0_66, %c0_67] : memref<2x256x128xbf16, #tpu.memory_space<vmem>>, vector<1x256x128xbf16>
    %64 = vector.shape_cast %63 : vector<1x256x128xbf16> to vector<256x128xbf16>
    %cst_68 = arith.constant dense<0.000000e+00> : vector<9x128xf32>
    %65 = tpu.matmul %59, %64, %cst_68 {dimension_numbers = #tpu.dot_dimension_numbers<[1], [0], [0], [1], [0, 0, 1, 1], [], []>} : vector<9x256xbf16>, vector<256x128xbf16>, vector<9x128xf32> -> vector<9x128xf32>
    %66 = vector.extract_strided_slice %62 {offsets = [0, 0], sizes = [8, 128], strides = [1, 1]} : vector<9x128xf32> to vector<8x128xf32>
    %67 = vector.extract_strided_slice %65 {offsets = [1, 0], sizes = [8, 128], strides = [1, 1]} : vector<9x128xf32> to vector<8x128xf32>
    %c0_69 = arith.constant 0 : index
    %c0_70 = arith.constant 0 : index
    %68 = vector.load %arg5[%c0_69, %c0_70] : memref<1x128xf32, #tpu.memory_space<vmem>>, vector<1x128xf32>
    %69 = vector.broadcast %68 : vector<1x128xf32> to vector<8x128xf32>
    %70 = arith.addf %66, %69 : vector<8x128xf32>
    %cst_71 = arith.constant 0.000000e+00 : f32
    %71 = vector.broadcast %cst_71 : f32 to vector<8x128xf32>
    %72 = arith.maximumf %70, %71 : vector<8x128xf32>
    %c1_72 = arith.constant 1 : index
    %c0_73 = arith.constant 0 : index
    %73 = tpu.strided_load %arg15[%c1_72, %c0_73] {strides = array<i32: 2, 1>} : memref<18x128xf32, #tpu.memory_space<vmem>>, vector<8x128xf32>
    tpu.strided_store %arg15[%c1_72, %c0_73], %72 {strides = array<i32: 2, 1>} : memref<18x128xf32, #tpu.memory_space<vmem>>, vector<8x128xf32>
    %74 = vector.broadcast %68 : vector<1x128xf32> to vector<8x128xf32>
    %75 = arith.addf %67, %74 : vector<8x128xf32>
    %cst_74 = arith.constant 0.000000e+00 : f32
    %76 = vector.broadcast %cst_74 : f32 to vector<8x128xf32>
    %77 = arith.maximumf %75, %76 : vector<8x128xf32>
    %c2_75 = arith.constant 2 : index
    %c0_76 = arith.constant 0 : index
    %78 = tpu.strided_load %arg15[%c2_75, %c0_76] {strides = array<i32: 2, 1>} : memref<18x128xf32, #tpu.memory_space<vmem>>, vector<8x128xf32>
    tpu.strided_store %arg15[%c2_75, %c0_76], %77 {strides = array<i32: 2, 1>} : memref<18x128xf32, #tpu.memory_space<vmem>>, vector<8x128xf32>
    %c1_77 = arith.constant 1 : index
    %c0_78 = arith.constant 0 : index
    %79 = vector.load %arg15[%c1_77, %c0_78] : memref<18x128xf32, #tpu.memory_space<vmem>>, vector<17x128xf32>
    %c0_79 = arith.constant 0 : index
    %c0_80 = arith.constant 0 : index
    %80 = vector.load %arg15[%c0_79, %c0_80] : memref<18x128xf32, #tpu.memory_space<vmem>>, vector<17x128xf32>
    %81 = tpu.concatenate %79, %80 in 1 : vector<17x128xf32>, vector<17x128xf32> -> vector<17x256xf32>
    %82 = arith.truncf %81 : vector<17x256xf32> to vector<17x256xbf16>
    %c0_81 = arith.constant 0 : index
    %c0_82 = arith.constant 0 : index
    %c0_83 = arith.constant 0 : index
    %83 = vector.load %arg6[%c0_81, %c0_82, %c0_83] : memref<2x256x128xbf16, #tpu.memory_space<vmem>>, vector<1x256x128xbf16>
    %84 = vector.shape_cast %83 : vector<1x256x128xbf16> to vector<256x128xbf16>
    %cst_84 = arith.constant dense<0.000000e+00> : vector<17x128xf32>
    %85 = tpu.matmul %82, %84, %cst_84 {dimension_numbers = #tpu.dot_dimension_numbers<[1], [0], [0], [1], [0, 0, 1, 1], [], []>} : vector<17x256xbf16>, vector<256x128xbf16>, vector<17x128xf32> -> vector<17x128xf32>
    %c1_85 = arith.constant 1 : index
    %c0_86 = arith.constant 0 : index
    %c0_87 = arith.constant 0 : index
    %86 = vector.load %arg6[%c1_85, %c0_86, %c0_87] : memref<2x256x128xbf16, #tpu.memory_space<vmem>>, vector<1x256x128xbf16>
    %87 = vector.shape_cast %86 : vector<1x256x128xbf16> to vector<256x128xbf16>
    %cst_88 = arith.constant dense<0.000000e+00> : vector<17x128xf32>
    %88 = tpu.matmul %82, %87, %cst_88 {dimension_numbers = #tpu.dot_dimension_numbers<[1], [0], [0], [1], [0, 0, 1, 1], [], []>} : vector<17x256xbf16>, vector<256x128xbf16>, vector<17x128xf32> -> vector<17x128xf32>
    %89 = vector.extract_strided_slice %85 {offsets = [0, 0], sizes = [16, 128], strides = [1, 1]} : vector<17x128xf32> to vector<16x128xf32>
    %90 = vector.extract_strided_slice %88 {offsets = [1, 0], sizes = [16, 128], strides = [1, 1]} : vector<17x128xf32> to vector<16x128xf32>
    %c0_89 = arith.constant 0 : index
    %c0_90 = arith.constant 0 : index
    %91 = vector.load %arg7[%c0_89, %c0_90] : memref<1x128xf32, #tpu.memory_space<vmem>>, vector<1x128xf32>
    %92 = vector.broadcast %91 : vector<1x128xf32> to vector<16x128xf32>
    %93 = arith.addf %89, %92 : vector<16x128xf32>
    %cst_91 = arith.constant 0.000000e+00 : f32
    %94 = vector.broadcast %cst_91 : f32 to vector<16x128xf32>
    %95 = arith.maximumf %93, %94 : vector<16x128xf32>
    %c1_92 = arith.constant 1 : index
    %c0_93 = arith.constant 0 : index
    %96 = tpu.strided_load %arg16[%c1_92, %c0_93] {strides = array<i32: 2, 1>} : memref<34x128xf32, #tpu.memory_space<vmem>>, vector<16x128xf32>
    tpu.strided_store %arg16[%c1_92, %c0_93], %95 {strides = array<i32: 2, 1>} : memref<34x128xf32, #tpu.memory_space<vmem>>, vector<16x128xf32>
    %97 = vector.broadcast %91 : vector<1x128xf32> to vector<16x128xf32>
    %98 = arith.addf %90, %97 : vector<16x128xf32>
    %cst_94 = arith.constant 0.000000e+00 : f32
    %99 = vector.broadcast %cst_94 : f32 to vector<16x128xf32>
    %100 = arith.maximumf %98, %99 : vector<16x128xf32>
    %c2_95 = arith.constant 2 : index
    %c0_96 = arith.constant 0 : index
    %101 = tpu.strided_load %arg16[%c2_95, %c0_96] {strides = array<i32: 2, 1>} : memref<34x128xf32, #tpu.memory_space<vmem>>, vector<16x128xf32>
    tpu.strided_store %arg16[%c2_95, %c0_96], %100 {strides = array<i32: 2, 1>} : memref<34x128xf32, #tpu.memory_space<vmem>>, vector<16x128xf32>
    %c1_97 = arith.constant 1 : index
    %c0_98 = arith.constant 0 : index
    %102 = vector.load %arg16[%c1_97, %c0_98] : memref<34x128xf32, #tpu.memory_space<vmem>>, vector<33x128xf32>
    %c0_99 = arith.constant 0 : index
    %c0_100 = arith.constant 0 : index
    %103 = vector.load %arg16[%c0_99, %c0_100] : memref<34x128xf32, #tpu.memory_space<vmem>>, vector<33x128xf32>
    %104 = tpu.concatenate %102, %103 in 1 : vector<33x128xf32>, vector<33x128xf32> -> vector<33x256xf32>
    %105 = arith.truncf %104 : vector<33x256xf32> to vector<33x256xbf16>
    %c0_101 = arith.constant 0 : index
    %c0_102 = arith.constant 0 : index
    %c0_103 = arith.constant 0 : index
    %106 = vector.load %arg8[%c0_101, %c0_102, %c0_103] : memref<2x256x256xbf16, #tpu.memory_space<vmem>>, vector<1x256x256xbf16>
    %107 = vector.shape_cast %106 : vector<1x256x256xbf16> to vector<256x256xbf16>
    %cst_104 = arith.constant dense<0.000000e+00> : vector<33x256xf32>
    %108 = tpu.matmul %105, %107, %cst_104 {dimension_numbers = #tpu.dot_dimension_numbers<[1], [0], [0], [1], [0, 0, 1, 1], [], []>} : vector<33x256xbf16>, vector<256x256xbf16>, vector<33x256xf32> -> vector<33x256xf32>
    %c1_105 = arith.constant 1 : index
    %c0_106 = arith.constant 0 : index
    %c0_107 = arith.constant 0 : index
    %109 = vector.load %arg8[%c1_105, %c0_106, %c0_107] : memref<2x256x256xbf16, #tpu.memory_space<vmem>>, vector<1x256x256xbf16>
    %110 = vector.shape_cast %109 : vector<1x256x256xbf16> to vector<256x256xbf16>
    %cst_108 = arith.constant dense<0.000000e+00> : vector<33x256xf32>
    %111 = tpu.matmul %105, %110, %cst_108 {dimension_numbers = #tpu.dot_dimension_numbers<[1], [0], [0], [1], [0, 0, 1, 1], [], []>} : vector<33x256xbf16>, vector<256x256xbf16>, vector<33x256xf32> -> vector<33x256xf32>
    %112 = vector.extract_strided_slice %108 {offsets = [0, 0], sizes = [32, 256], strides = [1, 1]} : vector<33x256xf32> to vector<32x256xf32>
    %113 = vector.extract_strided_slice %111 {offsets = [1, 0], sizes = [32, 256], strides = [1, 1]} : vector<33x256xf32> to vector<32x256xf32>
    %c0_109 = arith.constant 0 : index
    %c0_110 = arith.constant 0 : index
    %114 = vector.load %arg9[%c0_109, %c0_110] : memref<1x256xf32, #tpu.memory_space<vmem>>, vector<1x256xf32>
    %115 = vector.broadcast %114 : vector<1x256xf32> to vector<32x256xf32>
    %116 = arith.addf %112, %115 : vector<32x256xf32>
    %cst_111 = arith.constant 0.000000e+00 : f32
    %117 = vector.broadcast %cst_111 : f32 to vector<32x256xf32>
    %118 = arith.maximumf %116, %117 : vector<32x256xf32>
    %c1_112 = arith.constant 1 : index
    %c0_113 = arith.constant 0 : index
    %119 = tpu.strided_load %arg17[%c1_112, %c0_113] {strides = array<i32: 2, 1>} : memref<66x256xf32, #tpu.memory_space<vmem>>, vector<32x256xf32>
    tpu.strided_store %arg17[%c1_112, %c0_113], %118 {strides = array<i32: 2, 1>} : memref<66x256xf32, #tpu.memory_space<vmem>>, vector<32x256xf32>
    %120 = vector.broadcast %114 : vector<1x256xf32> to vector<32x256xf32>
    %121 = arith.addf %113, %120 : vector<32x256xf32>
    %cst_114 = arith.constant 0.000000e+00 : f32
    %122 = vector.broadcast %cst_114 : f32 to vector<32x256xf32>
    %123 = arith.maximumf %121, %122 : vector<32x256xf32>
    %c2_115 = arith.constant 2 : index
    %c0_116 = arith.constant 0 : index
    %124 = tpu.strided_load %arg17[%c2_115, %c0_116] {strides = array<i32: 2, 1>} : memref<66x256xf32, #tpu.memory_space<vmem>>, vector<32x256xf32>
    tpu.strided_store %arg17[%c2_115, %c0_116], %123 {strides = array<i32: 2, 1>} : memref<66x256xf32, #tpu.memory_space<vmem>>, vector<32x256xf32>
    %c1_117 = arith.constant 1 : index
    %c0_118 = arith.constant 0 : index
    %125 = vector.load %arg17[%c1_117, %c0_118] : memref<66x256xf32, #tpu.memory_space<vmem>>, vector<65x256xf32>
    %c0_119 = arith.constant 0 : index
    %c0_120 = arith.constant 0 : index
    %126 = vector.load %arg17[%c0_119, %c0_120] : memref<66x256xf32, #tpu.memory_space<vmem>>, vector<65x256xf32>
    %127 = tpu.concatenate %125, %126 in 1 : vector<65x256xf32>, vector<65x256xf32> -> vector<65x512xf32>
    %128 = arith.truncf %127 : vector<65x512xf32> to vector<65x512xbf16>
    %c0_121 = arith.constant 0 : index
    %c0_122 = arith.constant 0 : index
    %c0_123 = arith.constant 0 : index
    %129 = vector.load %arg10[%c0_121, %c0_122, %c0_123] : memref<2x512x128xbf16, #tpu.memory_space<vmem>>, vector<1x512x128xbf16>
    %130 = vector.shape_cast %129 : vector<1x512x128xbf16> to vector<512x128xbf16>
    %cst_124 = arith.constant dense<0.000000e+00> : vector<65x128xf32>
    %131 = tpu.matmul %128, %130, %cst_124 {dimension_numbers = #tpu.dot_dimension_numbers<[1], [0], [0], [1], [0, 0, 1, 1], [], []>} : vector<65x512xbf16>, vector<512x128xbf16>, vector<65x128xf32> -> vector<65x128xf32>
    %c1_125 = arith.constant 1 : index
    %c0_126 = arith.constant 0 : index
    %c0_127 = arith.constant 0 : index
    %132 = vector.load %arg10[%c1_125, %c0_126, %c0_127] : memref<2x512x128xbf16, #tpu.memory_space<vmem>>, vector<1x512x128xbf16>
    %133 = vector.shape_cast %132 : vector<1x512x128xbf16> to vector<512x128xbf16>
    %cst_128 = arith.constant dense<0.000000e+00> : vector<65x128xf32>
    %134 = tpu.matmul %128, %133, %cst_128 {dimension_numbers = #tpu.dot_dimension_numbers<[1], [0], [0], [1], [0, 0, 1, 1], [], []>} : vector<65x512xbf16>, vector<512x128xbf16>, vector<65x128xf32> -> vector<65x128xf32>
    %135 = vector.extract_strided_slice %131 {offsets = [0, 0], sizes = [64, 128], strides = [1, 1]} : vector<65x128xf32> to vector<64x128xf32>
    %136 = vector.extract_strided_slice %134 {offsets = [1, 0], sizes = [64, 128], strides = [1, 1]} : vector<65x128xf32> to vector<64x128xf32>
    %c0_129 = arith.constant 0 : index
    %c0_130 = arith.constant 0 : index
    %137 = vector.load %arg11[%c0_129, %c0_130] : memref<1x128xf32, #tpu.memory_space<vmem>>, vector<1x128xf32>
    %138 = vector.broadcast %137 : vector<1x128xf32> to vector<64x128xf32>
    %139 = arith.addf %135, %138 : vector<64x128xf32>
    %140 = arith.negf %139 : vector<64x128xf32>
    %141 = math.exp %140 : vector<64x128xf32>
    %cst_131 = arith.constant 1.000000e+00 : f32
    %142 = vector.broadcast %cst_131 : f32 to vector<64x128xf32>
    %143 = arith.addf %142, %141 : vector<64x128xf32>
    %144 = arith.divf %142, %143 : vector<64x128xf32>
    %c0_132 = arith.constant 0 : index
    %c0_133 = arith.constant 0 : index
    %c0_134 = arith.constant 0 : index
    %145 = tpu.strided_load %arg12[%c0_132, %c0_133, %c0_134] {strides = array<i32: 1, 2, 1>} : memref<1x128x128xf32, #tpu.memory_space<vmem>>, vector<1x64x128xf32>
    %146 = vector.shape_cast %145 : vector<1x64x128xf32> to vector<64x128xf32>
    %147 = vector.shape_cast %144 : vector<64x128xf32> to vector<1x64x128xf32>
    tpu.strided_store %arg12[%c0_132, %c0_133, %c0_134], %147 {strides = array<i32: 1, 2, 1>} : memref<1x128x128xf32, #tpu.memory_space<vmem>>, vector<1x64x128xf32>
    %148 = vector.broadcast %137 : vector<1x128xf32> to vector<64x128xf32>
    %149 = arith.addf %136, %148 : vector<64x128xf32>
    %150 = arith.negf %149 : vector<64x128xf32>
    %151 = math.exp %150 : vector<64x128xf32>
    %cst_135 = arith.constant 1.000000e+00 : f32
    %152 = vector.broadcast %cst_135 : f32 to vector<64x128xf32>
    %153 = arith.addf %152, %151 : vector<64x128xf32>
    %154 = arith.divf %152, %153 : vector<64x128xf32>
    %c0_136 = arith.constant 0 : index
    %c1_137 = arith.constant 1 : index
    %c0_138 = arith.constant 0 : index
    %155 = tpu.strided_load %arg12[%c0_136, %c1_137, %c0_138] {strides = array<i32: 1, 2, 1>} : memref<1x128x128xf32, #tpu.memory_space<vmem>>, vector<1x64x128xf32>
    %156 = vector.shape_cast %155 : vector<1x64x128xf32> to vector<64x128xf32>
    %157 = vector.shape_cast %154 : vector<64x128xf32> to vector<1x64x128xf32>
    tpu.strided_store %arg12[%c0_136, %c1_137, %c0_138], %157 {strides = array<i32: 1, 2, 1>} : memref<1x128x128xf32, #tpu.memory_space<vmem>>, vector<1x64x128xf32>
    return
  }
  func.func @transform_0(%arg0: i32) -> (i32, i32, i32) {
    %c0_i32 = arith.constant 0 : i32
    %c0_i32_0 = arith.constant 0 : i32
    %c0_i32_1 = arith.constant 0 : i32
    return %arg0, %c0_i32, %c0_i32_0 : i32, i32, i32
  }
  func.func @transform_1(%arg0: i32) -> (i32, i32, i32) {
    %c0_i32 = arith.constant 0 : i32
    %c0_i32_0 = arith.constant 0 : i32
    %c0_i32_1 = arith.constant 0 : i32
    %c0_i32_2 = arith.constant 0 : i32
    return %c0_i32, %c0_i32_0, %c0_i32_1 : i32, i32, i32
  }
  func.func @transform_2(%arg0: i32) -> (i32, i32) {
    %c0_i32 = arith.constant 0 : i32
    %c0_i32_0 = arith.constant 0 : i32
    %c0_i32_1 = arith.constant 0 : i32
    return %c0_i32, %c0_i32_0 : i32, i32
  }
  func.func @transform_3(%arg0: i32) -> (i32, i32, i32) {
    %c0_i32 = arith.constant 0 : i32
    %c0_i32_0 = arith.constant 0 : i32
    %c0_i32_1 = arith.constant 0 : i32
    %c0_i32_2 = arith.constant 0 : i32
    return %c0_i32, %c0_i32_0, %c0_i32_1 : i32, i32, i32
  }
  func.func @transform_4(%arg0: i32) -> (i32, i32) {
    %c0_i32 = arith.constant 0 : i32
    %c0_i32_0 = arith.constant 0 : i32
    %c0_i32_1 = arith.constant 0 : i32
    return %c0_i32, %c0_i32_0 : i32, i32
  }
  func.func @transform_5(%arg0: i32) -> (i32, i32, i32) {
    %c0_i32 = arith.constant 0 : i32
    %c0_i32_0 = arith.constant 0 : i32
    %c0_i32_1 = arith.constant 0 : i32
    %c0_i32_2 = arith.constant 0 : i32
    return %c0_i32, %c0_i32_0, %c0_i32_1 : i32, i32, i32
  }
  func.func @transform_6(%arg0: i32) -> (i32, i32) {
    %c0_i32 = arith.constant 0 : i32
    %c0_i32_0 = arith.constant 0 : i32
    %c0_i32_1 = arith.constant 0 : i32
    return %c0_i32, %c0_i32_0 : i32, i32
  }
  func.func @transform_7(%arg0: i32) -> (i32, i32, i32) {
    %c0_i32 = arith.constant 0 : i32
    %c0_i32_0 = arith.constant 0 : i32
    %c0_i32_1 = arith.constant 0 : i32
    %c0_i32_2 = arith.constant 0 : i32
    return %c0_i32, %c0_i32_0, %c0_i32_1 : i32, i32, i32
  }
  func.func @transform_8(%arg0: i32) -> (i32, i32) {
    %c0_i32 = arith.constant 0 : i32
    %c0_i32_0 = arith.constant 0 : i32
    %c0_i32_1 = arith.constant 0 : i32
    return %c0_i32, %c0_i32_0 : i32, i32
  }
  func.func @transform_9(%arg0: i32) -> (i32, i32, i32) {
    %c0_i32 = arith.constant 0 : i32
    %c0_i32_0 = arith.constant 0 : i32
    %c0_i32_1 = arith.constant 0 : i32
    %c0_i32_2 = arith.constant 0 : i32
    return %c0_i32, %c0_i32_0, %c0_i32_1 : i32, i32, i32
  }
  func.func @transform_10(%arg0: i32) -> (i32, i32) {
    %c0_i32 = arith.constant 0 : i32
    %c0_i32_0 = arith.constant 0 : i32
    %c0_i32_1 = arith.constant 0 : i32
    return %c0_i32, %c0_i32_0 : i32, i32
  }
  func.func @transform_11(%arg0: i32) -> (i32, i32, i32) {
    %c0_i32 = arith.constant 0 : i32
    %c0_i32_0 = arith.constant 0 : i32
    %c0_i32_1 = arith.constant 0 : i32
    return %arg0, %c0_i32, %c0_i32_0 : i32, i32, i32
  }
}

module attributes {stable_mosaic.version = 11 : i64} {
  func.func @kernel(%arg0: i32, %arg1: memref<1x4x32xf32, #tpu.memory_space<vmem>>, %arg2: memref<4x32x128xbf16, #tpu.memory_space<vmem>>, %arg3: memref<2x8x4xf32, #tpu.memory_space<vmem>>, %arg4: memref<1x128xf32, #tpu.memory_space<vmem>>, %arg5: memref<4x128x128xbf16, #tpu.memory_space<vmem>>, %arg6: memref<2x16x8xf32, #tpu.memory_space<vmem>>, %arg7: memref<1x128xf32, #tpu.memory_space<vmem>>, %arg8: memref<4x128x128xbf16, #tpu.memory_space<vmem>>, %arg9: memref<2x32x16xf32, #tpu.memory_space<vmem>>, %arg10: memref<1x128xf32, #tpu.memory_space<vmem>>, %arg11: memref<4x128x256xbf16, #tpu.memory_space<vmem>>, %arg12: memref<2x64x32xf32, #tpu.memory_space<vmem>>, %arg13: memref<1x256xf32, #tpu.memory_space<vmem>>, %arg14: memref<4x256x128xbf16, #tpu.memory_space<vmem>>, %arg15: memref<2x128x64xf32, #tpu.memory_space<vmem>>, %arg16: memref<1x128xf32, #tpu.memory_space<vmem>>, %arg17: memref<1x128x128xf32, #tpu.memory_space<vmem>>, %arg18: memref<6x32xf32, #tpu.memory_space<vmem>>, %arg19: memref<10x128xf32, #tpu.memory_space<vmem>>, %arg20: memref<18x128xf32, #tpu.memory_space<vmem>>, %arg21: memref<34x128xf32, #tpu.memory_space<vmem>>, %arg22: memref<66x256xf32, #tpu.memory_space<vmem>>) attributes {dimension_semantics = [#tpu.dimension_semantics<parallel>], iteration_bounds = array<i64: 2>, scalar_prefetch = 0 : i64, scratch_operands = 5 : i64, tpu.core_type = #tpu.core_type<tc>, window_params = [{transform_indices = @transform_0, window_bounds = array<i64: 1, 4, 32>}, {pipeline_mode = #tpu.pipeline_mode<synchronous>, transform_indices = @transform_1, window_bounds = array<i64: 4, 32, 128>}, {pipeline_mode = #tpu.pipeline_mode<synchronous>, transform_indices = @transform_2, window_bounds = array<i64: 2, 8, 4>}, {pipeline_mode = #tpu.pipeline_mode<synchronous>, transform_indices = @transform_3, window_bounds = array<i64: 1, 128>}, {pipeline_mode = #tpu.pipeline_mode<synchronous>, transform_indices = @transform_4, window_bounds = array<i64: 4, 128, 128>}, {pipeline_mode = #tpu.pipeline_mode<synchronous>, transform_indices = @transform_5, window_bounds = array<i64: 2, 16, 8>}, {pipeline_mode = #tpu.pipeline_mode<synchronous>, transform_indices = @transform_6, window_bounds = array<i64: 1, 128>}, {pipeline_mode = #tpu.pipeline_mode<synchronous>, transform_indices = @transform_7, window_bounds = array<i64: 4, 128, 128>}, {pipeline_mode = #tpu.pipeline_mode<synchronous>, transform_indices = @transform_8, window_bounds = array<i64: 2, 32, 16>}, {pipeline_mode = #tpu.pipeline_mode<synchronous>, transform_indices = @transform_9, window_bounds = array<i64: 1, 128>}, {pipeline_mode = #tpu.pipeline_mode<synchronous>, transform_indices = @transform_10, window_bounds = array<i64: 4, 128, 256>}, {pipeline_mode = #tpu.pipeline_mode<synchronous>, transform_indices = @transform_11, window_bounds = array<i64: 2, 64, 32>}, {pipeline_mode = #tpu.pipeline_mode<synchronous>, transform_indices = @transform_12, window_bounds = array<i64: 1, 256>}, {pipeline_mode = #tpu.pipeline_mode<synchronous>, transform_indices = @transform_13, window_bounds = array<i64: 4, 256, 128>}, {pipeline_mode = #tpu.pipeline_mode<synchronous>, transform_indices = @transform_14, window_bounds = array<i64: 2, 128, 64>}, {pipeline_mode = #tpu.pipeline_mode<synchronous>, transform_indices = @transform_15, window_bounds = array<i64: 1, 128>}, {transform_indices = @transform_16, window_bounds = array<i64: 1, 128, 128>}]} {
    %cst = arith.constant 0.000000e+00 : f32
    %0 = vector.broadcast %cst : f32 to vector<1x32xf32>
    %c0 = arith.constant 0 : index
    %c0_0 = arith.constant 0 : index
    %1 = vector.load %arg18[%c0, %c0_0] : memref<6x32xf32, #tpu.memory_space<vmem>>, vector<1x32xf32>
    tpu.vector_store %arg18[%c0, %c0_0], %0 {strides = array<i32>} : memref<6x32xf32, #tpu.memory_space<vmem>>, vector<1x32xf32>,
    %cst_1 = arith.constant 0.000000e+00 : f32
    %2 = vector.broadcast %cst_1 : f32 to vector<1x32xf32>
    %c5 = arith.constant 5 : index
    %c0_2 = arith.constant 0 : index
    %3 = vector.load %arg18[%c5, %c0_2] : memref<6x32xf32, #tpu.memory_space<vmem>>, vector<1x32xf32>
    tpu.vector_store %arg18[%c5, %c0_2], %2 {strides = array<i32>} : memref<6x32xf32, #tpu.memory_space<vmem>>, vector<1x32xf32>,
    %cst_3 = arith.constant 0.000000e+00 : f32
    %4 = vector.broadcast %cst_3 : f32 to vector<1x128xf32>
    %c0_4 = arith.constant 0 : index
    %c0_5 = arith.constant 0 : index
    %5 = vector.load %arg19[%c0_4, %c0_5] : memref<10x128xf32, #tpu.memory_space<vmem>>, vector<1x128xf32>
    tpu.vector_store %arg19[%c0_4, %c0_5], %4 {strides = array<i32>} : memref<10x128xf32, #tpu.memory_space<vmem>>, vector<1x128xf32>,
    %cst_6 = arith.constant 0.000000e+00 : f32
    %6 = vector.broadcast %cst_6 : f32 to vector<1x128xf32>
    %c9 = arith.constant 9 : index
    %c0_7 = arith.constant 0 : index
    %7 = vector.load %arg19[%c9, %c0_7] : memref<10x128xf32, #tpu.memory_space<vmem>>, vector<1x128xf32>
    tpu.vector_store %arg19[%c9, %c0_7], %6 {strides = array<i32>} : memref<10x128xf32, #tpu.memory_space<vmem>>, vector<1x128xf32>,
    %cst_8 = arith.constant 0.000000e+00 : f32
    %8 = vector.broadcast %cst_8 : f32 to vector<1x128xf32>
    %c0_9 = arith.constant 0 : index
    %c0_10 = arith.constant 0 : index
    %9 = vector.load %arg20[%c0_9, %c0_10] : memref<18x128xf32, #tpu.memory_space<vmem>>, vector<1x128xf32>
    tpu.vector_store %arg20[%c0_9, %c0_10], %8 {strides = array<i32>} : memref<18x128xf32, #tpu.memory_space<vmem>>, vector<1x128xf32>,
    %cst_11 = arith.constant 0.000000e+00 : f32
    %10 = vector.broadcast %cst_11 : f32 to vector<1x128xf32>
    %c17 = arith.constant 17 : index
    %c0_12 = arith.constant 0 : index
    %11 = vector.load %arg20[%c17, %c0_12] : memref<18x128xf32, #tpu.memory_space<vmem>>, vector<1x128xf32>
    tpu.vector_store %arg20[%c17, %c0_12], %10 {strides = array<i32>} : memref<18x128xf32, #tpu.memory_space<vmem>>, vector<1x128xf32>,
    %cst_13 = arith.constant 0.000000e+00 : f32
    %12 = vector.broadcast %cst_13 : f32 to vector<1x128xf32>
    %c0_14 = arith.constant 0 : index
    %c0_15 = arith.constant 0 : index
    %13 = vector.load %arg21[%c0_14, %c0_15] : memref<34x128xf32, #tpu.memory_space<vmem>>, vector<1x128xf32>
    tpu.vector_store %arg21[%c0_14, %c0_15], %12 {strides = array<i32>} : memref<34x128xf32, #tpu.memory_space<vmem>>, vector<1x128xf32>,
    %cst_16 = arith.constant 0.000000e+00 : f32
    %14 = vector.broadcast %cst_16 : f32 to vector<1x128xf32>
    %c33 = arith.constant 33 : index
    %c0_17 = arith.constant 0 : index
    %15 = vector.load %arg21[%c33, %c0_17] : memref<34x128xf32, #tpu.memory_space<vmem>>, vector<1x128xf32>
    tpu.vector_store %arg21[%c33, %c0_17], %14 {strides = array<i32>} : memref<34x128xf32, #tpu.memory_space<vmem>>, vector<1x128xf32>,
    %cst_18 = arith.constant 0.000000e+00 : f32
    %16 = vector.broadcast %cst_18 : f32 to vector<1x256xf32>
    %c0_19 = arith.constant 0 : index
    %c0_20 = arith.constant 0 : index
    %17 = vector.load %arg22[%c0_19, %c0_20] : memref<66x256xf32, #tpu.memory_space<vmem>>, vector<1x256xf32>
    tpu.vector_store %arg22[%c0_19, %c0_20], %16 {strides = array<i32>} : memref<66x256xf32, #tpu.memory_space<vmem>>, vector<1x256xf32>,
    %cst_21 = arith.constant 0.000000e+00 : f32
    %18 = vector.broadcast %cst_21 : f32 to vector<1x256xf32>
    %c65 = arith.constant 65 : index
    %c0_22 = arith.constant 0 : index
    %19 = vector.load %arg22[%c65, %c0_22] : memref<66x256xf32, #tpu.memory_space<vmem>>, vector<1x256xf32>
    tpu.vector_store %arg22[%c65, %c0_22], %18 {strides = array<i32>} : memref<66x256xf32, #tpu.memory_space<vmem>>, vector<1x256xf32>,
    %c0_23 = arith.constant 0 : index
    %c0_24 = arith.constant 0 : index
    %c0_25 = arith.constant 0 : index
    %20 = vector.load %arg1[%c0_23, %c0_24, %c0_25] : memref<1x4x32xf32, #tpu.memory_space<vmem>>, vector<1x4x32xf32>
    %21 = vector.shape_cast %20 : vector<1x4x32xf32> to vector<4x32xf32>
    %c1 = arith.constant 1 : index
    %c0_26 = arith.constant 0 : index
    %22 = vector.load %arg18[%c1, %c0_26] : memref<6x32xf32, #tpu.memory_space<vmem>>, vector<4x32xf32>
    tpu.vector_store %arg18[%c1, %c0_26], %21 {strides = array<i32>} : memref<6x32xf32, #tpu.memory_space<vmem>>, vector<4x32xf32>,
    %c1_27 = arith.constant 1 : index
    %c0_28 = arith.constant 0 : index
    %23 = vector.load %arg18[%c1_27, %c0_28] : memref<6x32xf32, #tpu.memory_space<vmem>>, vector<4x32xf32>
    %24 = arith.truncf %23 : vector<4x32xf32> to vector<4x32xbf16>
    %c0_29 = arith.constant 0 : index
    %c0_30 = arith.constant 0 : index
    %c0_31 = arith.constant 0 : index
    %25 = vector.load %arg2[%c0_29, %c0_30, %c0_31] : memref<4x32x128xbf16, #tpu.memory_space<vmem>>, vector<1x32x128xbf16>
    %26 = vector.shape_cast %25 : vector<1x32x128xbf16> to vector<32x128xbf16>
    %cst_32 = arith.constant dense<0.000000e+00> : vector<4x128xf32>
    %27 = tpu.matmul %24, %26, %cst_32 {dimension_numbers = #tpu.dot_dimension_numbers<[1], [0], [0], [1], [0, 0, 1, 1], [], []>} : vector<4x32xbf16>, vector<32x128xbf16>, vector<4x128xf32> -> vector<4x128xf32>
    %c0_33 = arith.constant 0 : index
    %c0_34 = arith.constant 0 : index
    %28 = vector.load %arg18[%c0_33, %c0_34] : memref<6x32xf32, #tpu.memory_space<vmem>>, vector<4x32xf32>
    %29 = arith.truncf %28 : vector<4x32xf32> to vector<4x32xbf16>
    %c1_35 = arith.constant 1 : index
    %c0_36 = arith.constant 0 : index
    %c0_37 = arith.constant 0 : index
    %30 = vector.load %arg2[%c1_35, %c0_36, %c0_37] : memref<4x32x128xbf16, #tpu.memory_space<vmem>>, vector<1x32x128xbf16>
    %31 = vector.shape_cast %30 : vector<1x32x128xbf16> to vector<32x128xbf16>
    %cst_38 = arith.constant dense<0.000000e+00> : vector<4x128xf32>
    %32 = tpu.matmul %29, %31, %cst_38 {dimension_numbers = #tpu.dot_dimension_numbers<[1], [0], [0], [1], [0, 0, 1, 1], [], []>} : vector<4x32xbf16>, vector<32x128xbf16>, vector<4x128xf32> -> vector<4x128xf32>
    %33 = arith.addf %27, %32 : vector<4x128xf32>
    %c2 = arith.constant 2 : index
    %c0_39 = arith.constant 0 : index
    %34 = vector.load %arg18[%c2, %c0_39] : memref<6x32xf32, #tpu.memory_space<vmem>>, vector<4x32xf32>
    %35 = arith.truncf %34 : vector<4x32xf32> to vector<4x32xbf16>
    %c2_40 = arith.constant 2 : index
    %c0_41 = arith.constant 0 : index
    %c0_42 = arith.constant 0 : index
    %36 = vector.load %arg2[%c2_40, %c0_41, %c0_42] : memref<4x32x128xbf16, #tpu.memory_space<vmem>>, vector<1x32x128xbf16>
    %37 = vector.shape_cast %36 : vector<1x32x128xbf16> to vector<32x128xbf16>
    %cst_43 = arith.constant dense<0.000000e+00> : vector<4x128xf32>
    %38 = tpu.matmul %35, %37, %cst_43 {dimension_numbers = #tpu.dot_dimension_numbers<[1], [0], [0], [1], [0, 0, 1, 1], [], []>} : vector<4x32xbf16>, vector<32x128xbf16>, vector<4x128xf32> -> vector<4x128xf32>
    %c1_44 = arith.constant 1 : index
    %c0_45 = arith.constant 0 : index
    %39 = vector.load %arg18[%c1_44, %c0_45] : memref<6x32xf32, #tpu.memory_space<vmem>>, vector<4x32xf32>
    %40 = arith.truncf %39 : vector<4x32xf32> to vector<4x32xbf16>
    %c3 = arith.constant 3 : index
    %c0_46 = arith.constant 0 : index
    %c0_47 = arith.constant 0 : index
    %41 = vector.load %arg2[%c3, %c0_46, %c0_47] : memref<4x32x128xbf16, #tpu.memory_space<vmem>>, vector<1x32x128xbf16>
    %42 = vector.shape_cast %41 : vector<1x32x128xbf16> to vector<32x128xbf16>
    %cst_48 = arith.constant dense<0.000000e+00> : vector<4x128xf32>
    %43 = tpu.matmul %40, %42, %cst_48 {dimension_numbers = #tpu.dot_dimension_numbers<[1], [0], [0], [1], [0, 0, 1, 1], [], []>} : vector<4x32xbf16>, vector<32x128xbf16>, vector<4x128xf32> -> vector<4x128xf32>
    %44 = arith.addf %38, %43 : vector<4x128xf32>
    %c0_49 = arith.constant 0 : index
    %c0_50 = arith.constant 0 : index
    %45 = vector.load %arg4[%c0_49, %c0_50] : memref<1x128xf32, #tpu.memory_space<vmem>>, vector<1x128xf32>
    %46 = vector.broadcast %45 : vector<1x128xf32> to vector<4x128xf32>
    %47 = arith.addf %33, %46 : vector<4x128xf32>
    %cst_51 = arith.constant 0.000000e+00 : f32
    %48 = vector.broadcast %cst_51 : f32 to vector<4x128xf32>
    %49 = arith.maximumf %47, %48 : vector<4x128xf32>
    %c0_52 = arith.constant 0 : index
    %c0_53 = arith.constant 0 : index
    %c0_54 = arith.constant 0 : index
    %50 = vector.load %arg3[%c0_52, %c0_53, %c0_54] : memref<2x8x4xf32, #tpu.memory_space<vmem>>, vector<1x8x4xf32>
    %51 = vector.shape_cast %50 : vector<1x8x4xf32> to vector<8x4xf32>
    %cst_55 = arith.constant dense<0.000000e+00> : vector<8x128xf32>
    %52 = tpu.matmul %51, %49, %cst_55 {dimension_numbers = #tpu.dot_dimension_numbers<[1], [0], [0], [1], [0, 0, 1, 1], [], []>} : vector<8x4xf32>, vector<4x128xf32>, vector<8x128xf32> -> vector<8x128xf32>
    %53 = vector.broadcast %45 : vector<1x128xf32> to vector<4x128xf32>
    %54 = arith.addf %44, %53 : vector<4x128xf32>
    %cst_56 = arith.constant 0.000000e+00 : f32
    %55 = vector.broadcast %cst_56 : f32 to vector<4x128xf32>
    %56 = arith.maximumf %54, %55 : vector<4x128xf32>
    %c1_57 = arith.constant 1 : index
    %c0_58 = arith.constant 0 : index
    %c0_59 = arith.constant 0 : index
    %57 = vector.load %arg3[%c1_57, %c0_58, %c0_59] : memref<2x8x4xf32, #tpu.memory_space<vmem>>, vector<1x8x4xf32>
    %58 = vector.shape_cast %57 : vector<1x8x4xf32> to vector<8x4xf32>
    %cst_60 = arith.constant dense<0.000000e+00> : vector<8x128xf32>
    %59 = tpu.matmul %58, %56, %cst_60 {dimension_numbers = #tpu.dot_dimension_numbers<[1], [0], [0], [1], [0, 0, 1, 1], [], []>} : vector<8x4xf32>, vector<4x128xf32>, vector<8x128xf32> -> vector<8x128xf32>
    %60 = arith.addf %52, %59 : vector<8x128xf32>
    %c1_61 = arith.constant 1 : index
    %c0_62 = arith.constant 0 : index
    %61 = vector.load %arg19[%c1_61, %c0_62] : memref<10x128xf32, #tpu.memory_space<vmem>>, vector<8x128xf32>
    tpu.vector_store %arg19[%c1_61, %c0_62], %60 {strides = array<i32>} : memref<10x128xf32, #tpu.memory_space<vmem>>, vector<8x128xf32>,
    %c1_63 = arith.constant 1 : index
    %c0_64 = arith.constant 0 : index
    %62 = vector.load %arg19[%c1_63, %c0_64] : memref<10x128xf32, #tpu.memory_space<vmem>>, vector<8x128xf32>
    %63 = arith.truncf %62 : vector<8x128xf32> to vector<8x128xbf16>
    %c0_65 = arith.constant 0 : index
    %c0_66 = arith.constant 0 : index
    %c0_67 = arith.constant 0 : index
    %64 = vector.load %arg5[%c0_65, %c0_66, %c0_67] : memref<4x128x128xbf16, #tpu.memory_space<vmem>>, vector<1x128x128xbf16>
    %65 = vector.shape_cast %64 : vector<1x128x128xbf16> to vector<128x128xbf16>
    %cst_68 = arith.constant dense<0.000000e+00> : vector<8x128xf32>
    %66 = tpu.matmul %63, %65, %cst_68 {dimension_numbers = #tpu.dot_dimension_numbers<[1], [0], [0], [1], [0, 0, 1, 1], [], []>} : vector<8x128xbf16>, vector<128x128xbf16>, vector<8x128xf32> -> vector<8x128xf32>
    %c0_69 = arith.constant 0 : index
    %c0_70 = arith.constant 0 : index
    %67 = vector.load %arg19[%c0_69, %c0_70] : memref<10x128xf32, #tpu.memory_space<vmem>>, vector<8x128xf32>
    %68 = arith.truncf %67 : vector<8x128xf32> to vector<8x128xbf16>
    %c1_71 = arith.constant 1 : index
    %c0_72 = arith.constant 0 : index
    %c0_73 = arith.constant 0 : index
    %69 = vector.load %arg5[%c1_71, %c0_72, %c0_73] : memref<4x128x128xbf16, #tpu.memory_space<vmem>>, vector<1x128x128xbf16>
    %70 = vector.shape_cast %69 : vector<1x128x128xbf16> to vector<128x128xbf16>
    %cst_74 = arith.constant dense<0.000000e+00> : vector<8x128xf32>
    %71 = tpu.matmul %68, %70, %cst_74 {dimension_numbers = #tpu.dot_dimension_numbers<[1], [0], [0], [1], [0, 0, 1, 1], [], []>} : vector<8x128xbf16>, vector<128x128xbf16>, vector<8x128xf32> -> vector<8x128xf32>
    %72 = arith.addf %66, %71 : vector<8x128xf32>
    %c2_75 = arith.constant 2 : index
    %c0_76 = arith.constant 0 : index
    %73 = vector.load %arg19[%c2_75, %c0_76] : memref<10x128xf32, #tpu.memory_space<vmem>>, vector<8x128xf32>
    %74 = arith.truncf %73 : vector<8x128xf32> to vector<8x128xbf16>
    %c2_77 = arith.constant 2 : index
    %c0_78 = arith.constant 0 : index
    %c0_79 = arith.constant 0 : index
    %75 = vector.load %arg5[%c2_77, %c0_78, %c0_79] : memref<4x128x128xbf16, #tpu.memory_space<vmem>>, vector<1x128x128xbf16>
    %76 = vector.shape_cast %75 : vector<1x128x128xbf16> to vector<128x128xbf16>
    %cst_80 = arith.constant dense<0.000000e+00> : vector<8x128xf32>
    %77 = tpu.matmul %74, %76, %cst_80 {dimension_numbers = #tpu.dot_dimension_numbers<[1], [0], [0], [1], [0, 0, 1, 1], [], []>} : vector<8x128xbf16>, vector<128x128xbf16>, vector<8x128xf32> -> vector<8x128xf32>
    %c1_81 = arith.constant 1 : index
    %c0_82 = arith.constant 0 : index
    %78 = vector.load %arg19[%c1_81, %c0_82] : memref<10x128xf32, #tpu.memory_space<vmem>>, vector<8x128xf32>
    %79 = arith.truncf %78 : vector<8x128xf32> to vector<8x128xbf16>
    %c3_83 = arith.constant 3 : index
    %c0_84 = arith.constant 0 : index
    %c0_85 = arith.constant 0 : index
    %80 = vector.load %arg5[%c3_83, %c0_84, %c0_85] : memref<4x128x128xbf16, #tpu.memory_space<vmem>>, vector<1x128x128xbf16>
    %81 = vector.shape_cast %80 : vector<1x128x128xbf16> to vector<128x128xbf16>
    %cst_86 = arith.constant dense<0.000000e+00> : vector<8x128xf32>
    %82 = tpu.matmul %79, %81, %cst_86 {dimension_numbers = #tpu.dot_dimension_numbers<[1], [0], [0], [1], [0, 0, 1, 1], [], []>} : vector<8x128xbf16>, vector<128x128xbf16>, vector<8x128xf32> -> vector<8x128xf32>
    %83 = arith.addf %77, %82 : vector<8x128xf32>
    %c0_87 = arith.constant 0 : index
    %c0_88 = arith.constant 0 : index
    %84 = vector.load %arg7[%c0_87, %c0_88] : memref<1x128xf32, #tpu.memory_space<vmem>>, vector<1x128xf32>
    %85 = vector.broadcast %84 : vector<1x128xf32> to vector<8x128xf32>
    %86 = arith.addf %72, %85 : vector<8x128xf32>
    %cst_89 = arith.constant 0.000000e+00 : f32
    %87 = vector.broadcast %cst_89 : f32 to vector<8x128xf32>
    %88 = arith.maximumf %86, %87 : vector<8x128xf32>
    %c0_90 = arith.constant 0 : index
    %c0_91 = arith.constant 0 : index
    %c0_92 = arith.constant 0 : index
    %89 = vector.load %arg6[%c0_90, %c0_91, %c0_92] : memref<2x16x8xf32, #tpu.memory_space<vmem>>, vector<1x16x8xf32>
    %90 = vector.shape_cast %89 : vector<1x16x8xf32> to vector<16x8xf32>
    %cst_93 = arith.constant dense<0.000000e+00> : vector<16x128xf32>
    %91 = tpu.matmul %90, %88, %cst_93 {dimension_numbers = #tpu.dot_dimension_numbers<[1], [0], [0], [1], [0, 0, 1, 1], [], []>} : vector<16x8xf32>, vector<8x128xf32>, vector<16x128xf32> -> vector<16x128xf32>
    %92 = vector.broadcast %84 : vector<1x128xf32> to vector<8x128xf32>
    %93 = arith.addf %83, %92 : vector<8x128xf32>
    %cst_94 = arith.constant 0.000000e+00 : f32
    %94 = vector.broadcast %cst_94 : f32 to vector<8x128xf32>
    %95 = arith.maximumf %93, %94 : vector<8x128xf32>
    %c1_95 = arith.constant 1 : index
    %c0_96 = arith.constant 0 : index
    %c0_97 = arith.constant 0 : index
    %96 = vector.load %arg6[%c1_95, %c0_96, %c0_97] : memref<2x16x8xf32, #tpu.memory_space<vmem>>, vector<1x16x8xf32>
    %97 = vector.shape_cast %96 : vector<1x16x8xf32> to vector<16x8xf32>
    %cst_98 = arith.constant dense<0.000000e+00> : vector<16x128xf32>
    %98 = tpu.matmul %97, %95, %cst_98 {dimension_numbers = #tpu.dot_dimension_numbers<[1], [0], [0], [1], [0, 0, 1, 1], [], []>} : vector<16x8xf32>, vector<8x128xf32>, vector<16x128xf32> -> vector<16x128xf32>
    %99 = arith.addf %91, %98 : vector<16x128xf32>
    %c1_99 = arith.constant 1 : index
    %c0_100 = arith.constant 0 : index
    %100 = vector.load %arg20[%c1_99, %c0_100] : memref<18x128xf32, #tpu.memory_space<vmem>>, vector<16x128xf32>
    tpu.vector_store %arg20[%c1_99, %c0_100], %99 {strides = array<i32>} : memref<18x128xf32, #tpu.memory_space<vmem>>, vector<16x128xf32>,
    %c1_101 = arith.constant 1 : index
    %c0_102 = arith.constant 0 : index
    %101 = vector.load %arg20[%c1_101, %c0_102] : memref<18x128xf32, #tpu.memory_space<vmem>>, vector<16x128xf32>
    %102 = arith.truncf %101 : vector<16x128xf32> to vector<16x128xbf16>
    %c0_103 = arith.constant 0 : index
    %c0_104 = arith.constant 0 : index
    %c0_105 = arith.constant 0 : index
    %103 = vector.load %arg8[%c0_103, %c0_104, %c0_105] : memref<4x128x128xbf16, #tpu.memory_space<vmem>>, vector<1x128x128xbf16>
    %104 = vector.shape_cast %103 : vector<1x128x128xbf16> to vector<128x128xbf16>
    %cst_106 = arith.constant dense<0.000000e+00> : vector<16x128xf32>
    %105 = tpu.matmul %102, %104, %cst_106 {dimension_numbers = #tpu.dot_dimension_numbers<[1], [0], [0], [1], [0, 0, 1, 1], [], []>} : vector<16x128xbf16>, vector<128x128xbf16>, vector<16x128xf32> -> vector<16x128xf32>
    %c0_107 = arith.constant 0 : index
    %c0_108 = arith.constant 0 : index
    %106 = vector.load %arg20[%c0_107, %c0_108] : memref<18x128xf32, #tpu.memory_space<vmem>>, vector<16x128xf32>
    %107 = arith.truncf %106 : vector<16x128xf32> to vector<16x128xbf16>
    %c1_109 = arith.constant 1 : index
    %c0_110 = arith.constant 0 : index
    %c0_111 = arith.constant 0 : index
    %108 = vector.load %arg8[%c1_109, %c0_110, %c0_111] : memref<4x128x128xbf16, #tpu.memory_space<vmem>>, vector<1x128x128xbf16>
    %109 = vector.shape_cast %108 : vector<1x128x128xbf16> to vector<128x128xbf16>
    %cst_112 = arith.constant dense<0.000000e+00> : vector<16x128xf32>
    %110 = tpu.matmul %107, %109, %cst_112 {dimension_numbers = #tpu.dot_dimension_numbers<[1], [0], [0], [1], [0, 0, 1, 1], [], []>} : vector<16x128xbf16>, vector<128x128xbf16>, vector<16x128xf32> -> vector<16x128xf32>
    %111 = arith.addf %105, %110 : vector<16x128xf32>
    %c2_113 = arith.constant 2 : index
    %c0_114 = arith.constant 0 : index
    %112 = vector.load %arg20[%c2_113, %c0_114] : memref<18x128xf32, #tpu.memory_space<vmem>>, vector<16x128xf32>
    %113 = arith.truncf %112 : vector<16x128xf32> to vector<16x128xbf16>
    %c2_115 = arith.constant 2 : index
    %c0_116 = arith.constant 0 : index
    %c0_117 = arith.constant 0 : index
    %114 = vector.load %arg8[%c2_115, %c0_116, %c0_117] : memref<4x128x128xbf16, #tpu.memory_space<vmem>>, vector<1x128x128xbf16>
    %115 = vector.shape_cast %114 : vector<1x128x128xbf16> to vector<128x128xbf16>
    %cst_118 = arith.constant dense<0.000000e+00> : vector<16x128xf32>
    %116 = tpu.matmul %113, %115, %cst_118 {dimension_numbers = #tpu.dot_dimension_numbers<[1], [0], [0], [1], [0, 0, 1, 1], [], []>} : vector<16x128xbf16>, vector<128x128xbf16>, vector<16x128xf32> -> vector<16x128xf32>
    %c1_119 = arith.constant 1 : index
    %c0_120 = arith.constant 0 : index
    %117 = vector.load %arg20[%c1_119, %c0_120] : memref<18x128xf32, #tpu.memory_space<vmem>>, vector<16x128xf32>
    %118 = arith.truncf %117 : vector<16x128xf32> to vector<16x128xbf16>
    %c3_121 = arith.constant 3 : index
    %c0_122 = arith.constant 0 : index
    %c0_123 = arith.constant 0 : index
    %119 = vector.load %arg8[%c3_121, %c0_122, %c0_123] : memref<4x128x128xbf16, #tpu.memory_space<vmem>>, vector<1x128x128xbf16>
    %120 = vector.shape_cast %119 : vector<1x128x128xbf16> to vector<128x128xbf16>
    %cst_124 = arith.constant dense<0.000000e+00> : vector<16x128xf32>
    %121 = tpu.matmul %118, %120, %cst_124 {dimension_numbers = #tpu.dot_dimension_numbers<[1], [0], [0], [1], [0, 0, 1, 1], [], []>} : vector<16x128xbf16>, vector<128x128xbf16>, vector<16x128xf32> -> vector<16x128xf32>
    %122 = arith.addf %116, %121 : vector<16x128xf32>
    %c0_125 = arith.constant 0 : index
    %c0_126 = arith.constant 0 : index
    %123 = vector.load %arg10[%c0_125, %c0_126] : memref<1x128xf32, #tpu.memory_space<vmem>>, vector<1x128xf32>
    %124 = vector.broadcast %123 : vector<1x128xf32> to vector<16x128xf32>
    %125 = arith.addf %111, %124 : vector<16x128xf32>
    %cst_127 = arith.constant 0.000000e+00 : f32
    %126 = vector.broadcast %cst_127 : f32 to vector<16x128xf32>
    %127 = arith.maximumf %125, %126 : vector<16x128xf32>
    %c0_128 = arith.constant 0 : index
    %c0_129 = arith.constant 0 : index
    %c0_130 = arith.constant 0 : index
    %128 = vector.load %arg9[%c0_128, %c0_129, %c0_130] : memref<2x32x16xf32, #tpu.memory_space<vmem>>, vector<1x32x16xf32>
    %129 = vector.shape_cast %128 : vector<1x32x16xf32> to vector<32x16xf32>
    %cst_131 = arith.constant dense<0.000000e+00> : vector<32x128xf32>
    %130 = tpu.matmul %129, %127, %cst_131 {dimension_numbers = #tpu.dot_dimension_numbers<[1], [0], [0], [1], [0, 0, 1, 1], [], []>} : vector<32x16xf32>, vector<16x128xf32>, vector<32x128xf32> -> vector<32x128xf32>
    %131 = vector.broadcast %123 : vector<1x128xf32> to vector<16x128xf32>
    %132 = arith.addf %122, %131 : vector<16x128xf32>
    %cst_132 = arith.constant 0.000000e+00 : f32
    %133 = vector.broadcast %cst_132 : f32 to vector<16x128xf32>
    %134 = arith.maximumf %132, %133 : vector<16x128xf32>
    %c1_133 = arith.constant 1 : index
    %c0_134 = arith.constant 0 : index
    %c0_135 = arith.constant 0 : index
    %135 = vector.load %arg9[%c1_133, %c0_134, %c0_135] : memref<2x32x16xf32, #tpu.memory_space<vmem>>, vector<1x32x16xf32>
    %136 = vector.shape_cast %135 : vector<1x32x16xf32> to vector<32x16xf32>
    %cst_136 = arith.constant dense<0.000000e+00> : vector<32x128xf32>
    %137 = tpu.matmul %136, %134, %cst_136 {dimension_numbers = #tpu.dot_dimension_numbers<[1], [0], [0], [1], [0, 0, 1, 1], [], []>} : vector<32x16xf32>, vector<16x128xf32>, vector<32x128xf32> -> vector<32x128xf32>
    %138 = arith.addf %130, %137 : vector<32x128xf32>
    %c1_137 = arith.constant 1 : index
    %c0_138 = arith.constant 0 : index
    %139 = vector.load %arg21[%c1_137, %c0_138] : memref<34x128xf32, #tpu.memory_space<vmem>>, vector<32x128xf32>
    tpu.vector_store %arg21[%c1_137, %c0_138], %138 {strides = array<i32>} : memref<34x128xf32, #tpu.memory_space<vmem>>, vector<32x128xf32>,
    %c1_139 = arith.constant 1 : index
    %c0_140 = arith.constant 0 : index
    %140 = vector.load %arg21[%c1_139, %c0_140] : memref<34x128xf32, #tpu.memory_space<vmem>>, vector<32x128xf32>
    %141 = arith.truncf %140 : vector<32x128xf32> to vector<32x128xbf16>
    %c0_141 = arith.constant 0 : index
    %c0_142 = arith.constant 0 : index
    %c0_143 = arith.constant 0 : index
    %142 = vector.load %arg11[%c0_141, %c0_142, %c0_143] : memref<4x128x256xbf16, #tpu.memory_space<vmem>>, vector<1x128x256xbf16>
    %143 = vector.shape_cast %142 : vector<1x128x256xbf16> to vector<128x256xbf16>
    %cst_144 = arith.constant dense<0.000000e+00> : vector<32x256xf32>
    %144 = tpu.matmul %141, %143, %cst_144 {dimension_numbers = #tpu.dot_dimension_numbers<[1], [0], [0], [1], [0, 0, 1, 1], [], []>} : vector<32x128xbf16>, vector<128x256xbf16>, vector<32x256xf32> -> vector<32x256xf32>
    %c0_145 = arith.constant 0 : index
    %c0_146 = arith.constant 0 : index
    %145 = vector.load %arg21[%c0_145, %c0_146] : memref<34x128xf32, #tpu.memory_space<vmem>>, vector<32x128xf32>
    %146 = arith.truncf %145 : vector<32x128xf32> to vector<32x128xbf16>
    %c1_147 = arith.constant 1 : index
    %c0_148 = arith.constant 0 : index
    %c0_149 = arith.constant 0 : index
    %147 = vector.load %arg11[%c1_147, %c0_148, %c0_149] : memref<4x128x256xbf16, #tpu.memory_space<vmem>>, vector<1x128x256xbf16>
    %148 = vector.shape_cast %147 : vector<1x128x256xbf16> to vector<128x256xbf16>
    %cst_150 = arith.constant dense<0.000000e+00> : vector<32x256xf32>
    %149 = tpu.matmul %146, %148, %cst_150 {dimension_numbers = #tpu.dot_dimension_numbers<[1], [0], [0], [1], [0, 0, 1, 1], [], []>} : vector<32x128xbf16>, vector<128x256xbf16>, vector<32x256xf32> -> vector<32x256xf32>
    %150 = arith.addf %144, %149 : vector<32x256xf32>
    %c2_151 = arith.constant 2 : index
    %c0_152 = arith.constant 0 : index
    %151 = vector.load %arg21[%c2_151, %c0_152] : memref<34x128xf32, #tpu.memory_space<vmem>>, vector<32x128xf32>
    %152 = arith.truncf %151 : vector<32x128xf32> to vector<32x128xbf16>
    %c2_153 = arith.constant 2 : index
    %c0_154 = arith.constant 0 : index
    %c0_155 = arith.constant 0 : index
    %153 = vector.load %arg11[%c2_153, %c0_154, %c0_155] : memref<4x128x256xbf16, #tpu.memory_space<vmem>>, vector<1x128x256xbf16>
    %154 = vector.shape_cast %153 : vector<1x128x256xbf16> to vector<128x256xbf16>
    %cst_156 = arith.constant dense<0.000000e+00> : vector<32x256xf32>
    %155 = tpu.matmul %152, %154, %cst_156 {dimension_numbers = #tpu.dot_dimension_numbers<[1], [0], [0], [1], [0, 0, 1, 1], [], []>} : vector<32x128xbf16>, vector<128x256xbf16>, vector<32x256xf32> -> vector<32x256xf32>
    %c1_157 = arith.constant 1 : index
    %c0_158 = arith.constant 0 : index
    %156 = vector.load %arg21[%c1_157, %c0_158] : memref<34x128xf32, #tpu.memory_space<vmem>>, vector<32x128xf32>
    %157 = arith.truncf %156 : vector<32x128xf32> to vector<32x128xbf16>
    %c3_159 = arith.constant 3 : index
    %c0_160 = arith.constant 0 : index
    %c0_161 = arith.constant 0 : index
    %158 = vector.load %arg11[%c3_159, %c0_160, %c0_161] : memref<4x128x256xbf16, #tpu.memory_space<vmem>>, vector<1x128x256xbf16>
    %159 = vector.shape_cast %158 : vector<1x128x256xbf16> to vector<128x256xbf16>
    %cst_162 = arith.constant dense<0.000000e+00> : vector<32x256xf32>
    %160 = tpu.matmul %157, %159, %cst_162 {dimension_numbers = #tpu.dot_dimension_numbers<[1], [0], [0], [1], [0, 0, 1, 1], [], []>} : vector<32x128xbf16>, vector<128x256xbf16>, vector<32x256xf32> -> vector<32x256xf32>
    %161 = arith.addf %155, %160 : vector<32x256xf32>
    %c0_163 = arith.constant 0 : index
    %c0_164 = arith.constant 0 : index
    %162 = vector.load %arg13[%c0_163, %c0_164] : memref<1x256xf32, #tpu.memory_space<vmem>>, vector<1x256xf32>
    %163 = vector.broadcast %162 : vector<1x256xf32> to vector<32x256xf32>
    %164 = arith.addf %150, %163 : vector<32x256xf32>
    %cst_165 = arith.constant 0.000000e+00 : f32
    %165 = vector.broadcast %cst_165 : f32 to vector<32x256xf32>
    %166 = arith.maximumf %164, %165 : vector<32x256xf32>
    %c0_166 = arith.constant 0 : index
    %c0_167 = arith.constant 0 : index
    %c0_168 = arith.constant 0 : index
    %167 = vector.load %arg12[%c0_166, %c0_167, %c0_168] : memref<2x64x32xf32, #tpu.memory_space<vmem>>, vector<1x64x32xf32>
    %168 = vector.shape_cast %167 : vector<1x64x32xf32> to vector<64x32xf32>
    %cst_169 = arith.constant dense<0.000000e+00> : vector<64x256xf32>
    %169 = tpu.matmul %168, %166, %cst_169 {dimension_numbers = #tpu.dot_dimension_numbers<[1], [0], [0], [1], [0, 0, 1, 1], [], []>} : vector<64x32xf32>, vector<32x256xf32>, vector<64x256xf32> -> vector<64x256xf32>
    %170 = vector.broadcast %162 : vector<1x256xf32> to vector<32x256xf32>
    %171 = arith.addf %161, %170 : vector<32x256xf32>
    %cst_170 = arith.constant 0.000000e+00 : f32
    %172 = vector.broadcast %cst_170 : f32 to vector<32x256xf32>
    %173 = arith.maximumf %171, %172 : vector<32x256xf32>
    %c1_171 = arith.constant 1 : index
    %c0_172 = arith.constant 0 : index
    %c0_173 = arith.constant 0 : index
    %174 = vector.load %arg12[%c1_171, %c0_172, %c0_173] : memref<2x64x32xf32, #tpu.memory_space<vmem>>, vector<1x64x32xf32>
    %175 = vector.shape_cast %174 : vector<1x64x32xf32> to vector<64x32xf32>
    %cst_174 = arith.constant dense<0.000000e+00> : vector<64x256xf32>
    %176 = tpu.matmul %175, %173, %cst_174 {dimension_numbers = #tpu.dot_dimension_numbers<[1], [0], [0], [1], [0, 0, 1, 1], [], []>} : vector<64x32xf32>, vector<32x256xf32>, vector<64x256xf32> -> vector<64x256xf32>
    %177 = arith.addf %169, %176 : vector<64x256xf32>
    %c1_175 = arith.constant 1 : index
    %c0_176 = arith.constant 0 : index
    %178 = vector.load %arg22[%c1_175, %c0_176] : memref<66x256xf32, #tpu.memory_space<vmem>>, vector<64x256xf32>
    tpu.vector_store %arg22[%c1_175, %c0_176], %177 {strides = array<i32>} : memref<66x256xf32, #tpu.memory_space<vmem>>, vector<64x256xf32>,
    %c1_177 = arith.constant 1 : index
    %c0_178 = arith.constant 0 : index
    %179 = vector.load %arg22[%c1_177, %c0_178] : memref<66x256xf32, #tpu.memory_space<vmem>>, vector<64x256xf32>
    %180 = arith.truncf %179 : vector<64x256xf32> to vector<64x256xbf16>
    %c0_179 = arith.constant 0 : index
    %c0_180 = arith.constant 0 : index
    %c0_181 = arith.constant 0 : index
    %181 = vector.load %arg14[%c0_179, %c0_180, %c0_181] : memref<4x256x128xbf16, #tpu.memory_space<vmem>>, vector<1x256x128xbf16>
    %182 = vector.shape_cast %181 : vector<1x256x128xbf16> to vector<256x128xbf16>
    %cst_182 = arith.constant dense<0.000000e+00> : vector<64x128xf32>
    %183 = tpu.matmul %180, %182, %cst_182 {dimension_numbers = #tpu.dot_dimension_numbers<[1], [0], [0], [1], [0, 0, 1, 1], [], []>} : vector<64x256xbf16>, vector<256x128xbf16>, vector<64x128xf32> -> vector<64x128xf32>
    %c0_183 = arith.constant 0 : index
    %c0_184 = arith.constant 0 : index
    %184 = vector.load %arg22[%c0_183, %c0_184] : memref<66x256xf32, #tpu.memory_space<vmem>>, vector<64x256xf32>
    %185 = arith.truncf %184 : vector<64x256xf32> to vector<64x256xbf16>
    %c1_185 = arith.constant 1 : index
    %c0_186 = arith.constant 0 : index
    %c0_187 = arith.constant 0 : index
    %186 = vector.load %arg14[%c1_185, %c0_186, %c0_187] : memref<4x256x128xbf16, #tpu.memory_space<vmem>>, vector<1x256x128xbf16>
    %187 = vector.shape_cast %186 : vector<1x256x128xbf16> to vector<256x128xbf16>
    %cst_188 = arith.constant dense<0.000000e+00> : vector<64x128xf32>
    %188 = tpu.matmul %185, %187, %cst_188 {dimension_numbers = #tpu.dot_dimension_numbers<[1], [0], [0], [1], [0, 0, 1, 1], [], []>} : vector<64x256xbf16>, vector<256x128xbf16>, vector<64x128xf32> -> vector<64x128xf32>
    %189 = arith.addf %183, %188 : vector<64x128xf32>
    %c2_189 = arith.constant 2 : index
    %c0_190 = arith.constant 0 : index
    %190 = vector.load %arg22[%c2_189, %c0_190] : memref<66x256xf32, #tpu.memory_space<vmem>>, vector<64x256xf32>
    %191 = arith.truncf %190 : vector<64x256xf32> to vector<64x256xbf16>
    %c2_191 = arith.constant 2 : index
    %c0_192 = arith.constant 0 : index
    %c0_193 = arith.constant 0 : index
    %192 = vector.load %arg14[%c2_191, %c0_192, %c0_193] : memref<4x256x128xbf16, #tpu.memory_space<vmem>>, vector<1x256x128xbf16>
    %193 = vector.shape_cast %192 : vector<1x256x128xbf16> to vector<256x128xbf16>
    %cst_194 = arith.constant dense<0.000000e+00> : vector<64x128xf32>
    %194 = tpu.matmul %191, %193, %cst_194 {dimension_numbers = #tpu.dot_dimension_numbers<[1], [0], [0], [1], [0, 0, 1, 1], [], []>} : vector<64x256xbf16>, vector<256x128xbf16>, vector<64x128xf32> -> vector<64x128xf32>
    %c1_195 = arith.constant 1 : index
    %c0_196 = arith.constant 0 : index
    %195 = vector.load %arg22[%c1_195, %c0_196] : memref<66x256xf32, #tpu.memory_space<vmem>>, vector<64x256xf32>
    %196 = arith.truncf %195 : vector<64x256xf32> to vector<64x256xbf16>
    %c3_197 = arith.constant 3 : index
    %c0_198 = arith.constant 0 : index
    %c0_199 = arith.constant 0 : index
    %197 = vector.load %arg14[%c3_197, %c0_198, %c0_199] : memref<4x256x128xbf16, #tpu.memory_space<vmem>>, vector<1x256x128xbf16>
    %198 = vector.shape_cast %197 : vector<1x256x128xbf16> to vector<256x128xbf16>
    %cst_200 = arith.constant dense<0.000000e+00> : vector<64x128xf32>
    %199 = tpu.matmul %196, %198, %cst_200 {dimension_numbers = #tpu.dot_dimension_numbers<[1], [0], [0], [1], [0, 0, 1, 1], [], []>} : vector<64x256xbf16>, vector<256x128xbf16>, vector<64x128xf32> -> vector<64x128xf32>
    %200 = arith.addf %194, %199 : vector<64x128xf32>
    %c0_201 = arith.constant 0 : index
    %c0_202 = arith.constant 0 : index
    %201 = vector.load %arg16[%c0_201, %c0_202] : memref<1x128xf32, #tpu.memory_space<vmem>>, vector<1x128xf32>
    %202 = vector.broadcast %201 : vector<1x128xf32> to vector<64x128xf32>
    %203 = arith.addf %189, %202 : vector<64x128xf32>
    %204 = arith.negf %203 : vector<64x128xf32>
    %205 = math.exp %204 : vector<64x128xf32>
    %cst_203 = arith.constant 1.000000e+00 : f32
    %206 = vector.broadcast %cst_203 : f32 to vector<64x128xf32>
    %207 = arith.addf %206, %205 : vector<64x128xf32>
    %208 = arith.divf %206, %207 : vector<64x128xf32>
    %c0_204 = arith.constant 0 : index
    %c0_205 = arith.constant 0 : index
    %c0_206 = arith.constant 0 : index
    %209 = vector.load %arg15[%c0_204, %c0_205, %c0_206] : memref<2x128x64xf32, #tpu.memory_space<vmem>>, vector<1x128x64xf32>
    %210 = vector.shape_cast %209 : vector<1x128x64xf32> to vector<128x64xf32>
    %cst_207 = arith.constant dense<0.000000e+00> : vector<128x128xf32>
    %211 = tpu.matmul %210, %208, %cst_207 {dimension_numbers = #tpu.dot_dimension_numbers<[1], [0], [0], [1], [0, 0, 1, 1], [], []>} : vector<128x64xf32>, vector<64x128xf32>, vector<128x128xf32> -> vector<128x128xf32>
    %212 = vector.broadcast %201 : vector<1x128xf32> to vector<64x128xf32>
    %213 = arith.addf %200, %212 : vector<64x128xf32>
    %214 = arith.negf %213 : vector<64x128xf32>
    %215 = math.exp %214 : vector<64x128xf32>
    %cst_208 = arith.constant 1.000000e+00 : f32
    %216 = vector.broadcast %cst_208 : f32 to vector<64x128xf32>
    %217 = arith.addf %216, %215 : vector<64x128xf32>
    %218 = arith.divf %216, %217 : vector<64x128xf32>
    %c1_209 = arith.constant 1 : index
    %c0_210 = arith.constant 0 : index
    %c0_211 = arith.constant 0 : index
    %219 = vector.load %arg15[%c1_209, %c0_210, %c0_211] : memref<2x128x64xf32, #tpu.memory_space<vmem>>, vector<1x128x64xf32>
    %220 = vector.shape_cast %219 : vector<1x128x64xf32> to vector<128x64xf32>
    %cst_212 = arith.constant dense<0.000000e+00> : vector<128x128xf32>
    %221 = tpu.matmul %220, %218, %cst_212 {dimension_numbers = #tpu.dot_dimension_numbers<[1], [0], [0], [1], [0, 0, 1, 1], [], []>} : vector<128x64xf32>, vector<64x128xf32>, vector<128x128xf32> -> vector<128x128xf32>
    %222 = arith.addf %211, %221 : vector<128x128xf32>
    %c0_213 = arith.constant 0 : index
    %c0_214 = arith.constant 0 : index
    %c0_215 = arith.constant 0 : index
    %223 = vector.load %arg17[%c0_213, %c0_214, %c0_215] : memref<1x128x128xf32, #tpu.memory_space<vmem>>, vector<1x128x128xf32>
    %224 = vector.shape_cast %223 : vector<1x128x128xf32> to vector<128x128xf32>
    %225 = vector.shape_cast %222 : vector<128x128xf32> to vector<1x128x128xf32>
    tpu.vector_store %arg17[%c0_213, %c0_214, %c0_215], %225 {strides = array<i32>} : memref<1x128x128xf32, #tpu.memory_space<vmem>>, vector<1x128x128xf32>,
    return
  }
  func.func @transform_0(%arg0: i32) -> (i32, i32, i32) {
    %c0_i32 = arith.constant 0 : i32
    %c0_i32_0 = arith.constant 0 : i32
    %c0_i32_1 = arith.constant 0 : i32
    return %arg0, %c0_i32, %c0_i32_0 : i32, i32, i32
  }
  func.func @transform_1(%arg0: i32) -> (i32, i32, i32) {
    %c0_i32 = arith.constant 0 : i32
    %c0_i32_0 = arith.constant 0 : i32
    %c0_i32_1 = arith.constant 0 : i32
    %c0_i32_2 = arith.constant 0 : i32
    return %c0_i32, %c0_i32_0, %c0_i32_1 : i32, i32, i32
  }
  func.func @transform_2(%arg0: i32) -> (i32, i32, i32) {
    %c0_i32 = arith.constant 0 : i32
    %c0_i32_0 = arith.constant 0 : i32
    %c0_i32_1 = arith.constant 0 : i32
    %c0_i32_2 = arith.constant 0 : i32
    return %c0_i32, %c0_i32_0, %c0_i32_1 : i32, i32, i32
  }
  func.func @transform_3(%arg0: i32) -> (i32, i32) {
    %c0_i32 = arith.constant 0 : i32
    %c0_i32_0 = arith.constant 0 : i32
    %c0_i32_1 = arith.constant 0 : i32
    return %c0_i32, %c0_i32_0 : i32, i32
  }
  func.func @transform_4(%arg0: i32) -> (i32, i32, i32) {
    %c0_i32 = arith.constant 0 : i32
    %c0_i32_0 = arith.constant 0 : i32
    %c0_i32_1 = arith.constant 0 : i32
    %c0_i32_2 = arith.constant 0 : i32
    return %c0_i32, %c0_i32_0, %c0_i32_1 : i32, i32, i32
  }
  func.func @transform_5(%arg0: i32) -> (i32, i32, i32) {
    %c0_i32 = arith.constant 0 : i32
    %c0_i32_0 = arith.constant 0 : i32
    %c0_i32_1 = arith.constant 0 : i32
    %c0_i32_2 = arith.constant 0 : i32
    return %c0_i32, %c0_i32_0, %c0_i32_1 : i32, i32, i32
  }
  func.func @transform_6(%arg0: i32) -> (i32, i32) {
    %c0_i32 = arith.constant 0 : i32
    %c0_i32_0 = arith.constant 0 : i32
    %c0_i32_1 = arith.constant 0 : i32
    return %c0_i32, %c0_i32_0 : i32, i32
  }
  func.func @transform_7(%arg0: i32) -> (i32, i32, i32) {
    %c0_i32 = arith.constant 0 : i32
    %c0_i32_0 = arith.constant 0 : i32
    %c0_i32_1 = arith.constant 0 : i32
    %c0_i32_2 = arith.constant 0 : i32
    return %c0_i32, %c0_i32_0, %c0_i32_1 : i32, i32, i32
  }
  func.func @transform_8(%arg0: i32) -> (i32, i32, i32) {
    %c0_i32 = arith.constant 0 : i32
    %c0_i32_0 = arith.constant 0 : i32
    %c0_i32_1 = arith.constant 0 : i32
    %c0_i32_2 = arith.constant 0 : i32
    return %c0_i32, %c0_i32_0, %c0_i32_1 : i32, i32, i32
  }
  func.func @transform_9(%arg0: i32) -> (i32, i32) {
    %c0_i32 = arith.constant 0 : i32
    %c0_i32_0 = arith.constant 0 : i32
    %c0_i32_1 = arith.constant 0 : i32
    return %c0_i32, %c0_i32_0 : i32, i32
  }
  func.func @transform_10(%arg0: i32) -> (i32, i32, i32) {
    %c0_i32 = arith.constant 0 : i32
    %c0_i32_0 = arith.constant 0 : i32
    %c0_i32_1 = arith.constant 0 : i32
    %c0_i32_2 = arith.constant 0 : i32
    return %c0_i32, %c0_i32_0, %c0_i32_1 : i32, i32, i32
  }
  func.func @transform_11(%arg0: i32) -> (i32, i32, i32) {
    %c0_i32 = arith.constant 0 : i32
    %c0_i32_0 = arith.constant 0 : i32
    %c0_i32_1 = arith.constant 0 : i32
    %c0_i32_2 = arith.constant 0 : i32
    return %c0_i32, %c0_i32_0, %c0_i32_1 : i32, i32, i32
  }
  func.func @transform_12(%arg0: i32) -> (i32, i32) {
    %c0_i32 = arith.constant 0 : i32
    %c0_i32_0 = arith.constant 0 : i32
    %c0_i32_1 = arith.constant 0 : i32
    return %c0_i32, %c0_i32_0 : i32, i32
  }
  func.func @transform_13(%arg0: i32) -> (i32, i32, i32) {
    %c0_i32 = arith.constant 0 : i32
    %c0_i32_0 = arith.constant 0 : i32
    %c0_i32_1 = arith.constant 0 : i32
    %c0_i32_2 = arith.constant 0 : i32
    return %c0_i32, %c0_i32_0, %c0_i32_1 : i32, i32, i32
  }
  func.func @transform_14(%arg0: i32) -> (i32, i32, i32) {
    %c0_i32 = arith.constant 0 : i32
    %c0_i32_0 = arith.constant 0 : i32
    %c0_i32_1 = arith.constant 0 : i32
    %c0_i32_2 = arith.constant 0 : i32
    return %c0_i32, %c0_i32_0, %c0_i32_1 : i32, i32, i32
  }
  func.func @transform_15(%arg0: i32) -> (i32, i32) {
    %c0_i32 = arith.constant 0 : i32
    %c0_i32_0 = arith.constant 0 : i32
    %c0_i32_1 = arith.constant 0 : i32
    return %c0_i32, %c0_i32_0 : i32, i32
  }
  func.func @transform_16(%arg0: i32) -> (i32, i32, i32) {
    %c0_i32 = arith.constant 0 : i32
    %c0_i32_0 = arith.constant 0 : i32
    %c0_i32_1 = arith.constant 0 : i32
    return %arg0, %c0_i32, %c0_i32_0 : i32, i32, i32
  }
}

</mosaic_0001>

<bundles_post_ra>
// kernel: tpu_custom_call.1
= control target key start
LH: loop header
LB: loop body
LE: loop exit
PB: predicated region body
PF: predicated region fallthrough
CT: control target
= control target key end

     0   :  { %s7785_s0 = inlined_call_operand.vmem [shape: f32[2,4,32], index: 0, kind: input, shape index: {}]   ;;  %s7786_s1 = inlined_call_operand.hbm [shape: bf16[4,32,128], index: 1, kind: input, shape index: {}]   ;;  %s7787_s2 = inlined_call_operand.vmem [shape: f32[2,8,4], index: 2, kind: input, shape index: {}]   ;;  %s7788_s3 = inlined_call_operand.vmem [shape: f32[1,128], index: 3, kind: input, shape index: {}]   ;;  %s7789_s4 = inlined_call_operand.vmem [shape: bf16[4,128,128], index: 4, kind: input, shape index: {}]   ;;  %s7790_s5 = inlined_call_operand.vmem [shape: f32[2,16,8], index: 5, kind: input, shape index: {}]   ;;  %s7791_s6 = inlined_call_operand.vmem [shape: f32[1,128], index: 6, kind: input, shape index: {}]   ;;  %s7792_s7 = inlined_call_operand.hbm [shape: bf16[4,128,128], index: 7, kind: input, shape index: {}]   ;;  %s7793_s8 = inlined_call_operand.vmem [shape: f32[2,32,16], index: 8, kind: input, shape index: {}]   ;;  %s7794_s9 = inlined_call_operand.vmem [shape: f32[1,128], index: 9, kind: input, shape index: {}]   ;;  %s7795_s10 = inlined_call_operand.vmem [shape: bf16[4,128,256], index: 10, kind: input, shape index: {}]   ;;  %s7796_s11 = inlined_call_operand.vmem [shape: f32[2,64,32], index: 11, kind: input, shape index: {}]   ;;  %s7797_s12 = inlined_call_operand.vmem [shape: f32[1,256], index: 12, kind: input, shape index: {}]   ;;  %s7798_s13 = inlined_call_operand.hbm [shape: bf16[4,256,128], index: 13, kind: input, shape index: {}]   ;;  %s7799_s14 = inlined_call_operand.vmem [shape: f32[2,128,64], index: 14, kind: input, shape index: {}]   ;;  %s7800_s15 = inlined_call_operand.vmem [shape: f32[1,128], index: 15, kind: input, shape index: {}]   ;;  %s7801_s16 = inlined_call_operand.hbm [shape: f32[2,128,128], index: 16, kind: output, shape index: {}]  }
   0x1   :  { %7817 = sst [smem:[#allocation25_spill]] %s7785_s0 }
   0x2   :  { %7818 = sst [smem:[#allocation26_spill]] %s7799_s14 }
   0x3   :  { %7819 = sst [smem:[#allocation27_spill]] %s7800_s15 }
   0x4   :  { %7820 = sst [smem:[#allocation28_spill]] %s7801_s16 }
   0x5   :  { %21 = vsyncpa [#allocation8], 0 }
   0x6   :  { %22 = vsyncpa [#allocation11], 0 }
   0x7   :  { %23 = vsyncpa [#allocation9], 0 }
   0x8   :  { %25 = vsyncpa [#allocation9 + $0x1], 0  ;;  %s6682_s21 = smov 0   ;;  %s6684_s22 = smov 0  }
   0x9   :  { %s6686_s23 = smov 0   ;;  %s6688_s24 = smov 0  }
   0xa LB: > { %7821 = sst [smem:[#allocation17_spill]] %s6572_s21  ;;  %s6703_s25 = sadd.s32 4294967295, %s6584_s24   ;;  %s6584_s24 = sphi %s6688_s24, %s7851_s24   ;;  %s6580_s23 = sphi %s6686_s23, %s7854_s23   ;;  %s6576_s22 = sphi %s6684_s22, %s7853_s22   ;;  %s6572_s21 = sphi %s6682_s21, %s7852_s21  }
   0xb   : > { %7822 = sst [smem:[#allocation18_spill]] %s6576_s22  ;;  %s4886_s26 = sadd.s32 4294967294, %s6584_s24  }
   0xc   : > { %7823 = sst [smem:[#allocation19_spill]] %s6580_s23  ;;  %s6707_s27 = sadd.s32 1, %s6584_s24  }
   0xd   : > { %7824 = sst [smem:[#allocation20_spill]] %s6584_s24  ;;  %s379_s28 = sadd.s32 1, %s6580_s23 }
   0xe   : > { %7825 = sst [smem:[#allocation21_spill]] %s6707_s27  ;;  %s376_s29 = ssub.s32 %s6584_s24, %s6707_s27 }
   0xf   : > { %p389_p0 = scmp.ne.s32.totalorder %s6580_s23, %s6576_s22  ;;  %p377_p1 = scmp.eq.s32.totalorder %s376_s29, 0 }
  0x10   : > { %p390_p2 = scmp.eq.s32.totalorder %s6703_s25, 1  ;;  %p395_p3 = scmp.ne.s32.totalorder %s6576_s22, %s6572_s21 }
  0x11   : > { %p396_p4 = scmp.eq.s32.totalorder %s4886_s26, 1  ;;  %p4887_p7 = scmp.ge.s32.totalorder %s6584_s24, 1 }
  0x12   : > { %s6718_s30 = scalar_select %p377_p1, %s6580_s23, %s379_s28  }
  0x13   : > { %p6720_p5 = por %p390_p2, %p389_p0  ;;  %p6724_p6 = por %p396_p4, %p395_p3 }
  0x14   : > { %7826 = sst [smem:[#allocation22_spill]] %s6718_s30  ;;  %p403_p8 = scmp.lt.s32.totalorder %s6584_s24, 3 }
  0x15   : > { %s7827_s0 = scalar_select %p6720_p5, 1, 0 }
  0x16   : > { %s7829_s17 = scalar_select %p6724_p6, 1, 0 }
  0x17   : > { %7828 = sst [smem:[#allocation23_spill]] %s7827_s0  ;;  %p7809_p9 = scmp.eq.s32.totalorder %s6703_s25, 0 }
  0x18   : > { %7830 = sst [smem:[#allocation24_spill]] %s7829_s17  ;;  %p6731_p10 = pnand %p4887_p7, %p403_p8 }
  0x19   : > { %s6586_s19 = smov [#allocation10]   ;;  %s6587_s28 = smov [#allocation7]  }
  0x1a   : > { %s7831_s18 = scalar_select %p6731_p10, 1, 0 }
  0x1b   : > { %p6071_p11 = pneg %p6731_p10  ;;  %s443_s20 = sshll.u32 %s6586_s19, 4  ;;  %s6737_s20 = int_to_ptr.vmem [resolvable:$true] %s443_s20 }
  0x1c   : > { %s415_s29 = sshll.u32 %s6587_s28, 4  ;;  %s6588_s30 = smov [#allocation12]   ;;  %s6745_s29 = int_to_ptr.vmem [resolvable:$true] %s415_s29 }
  0x1d   : > { %p6741_p12 = pnand %p7809_p9, %p6071_p11  ;;  %s6747_s23 = sshll.u32 %s6588_s30, 4  ;;  %s472_s23 = int_to_ptr.vmem [resolvable:$true] %s6747_s23 }
  0x1e   : > { %s6430_s21 = scalar_lea.hbm %s7792_s7, 4096 }
  0x1f   : > { %p6431_p13 = scmp.ne.s32.totalorder %s7792_s7, %s6430_s21  ;;  %p6757_p0 = pneg %p6741_p12 }
  0x20   : > { %p6437_p3 = scmp.lt.u32.totalorder %s6430_s21, %s7792_s7 }
  0x21   : > { %p6433_p1 = pnand %p6757_p0, %p6431_p13 }
  0x23   : > { %p6434_p2 = pneg %p6433_p1 }
  0x25   : > { %p6439_p4 = pnand %p6437_p3, %p6434_p2 }
  0x27   : > { %6442 = shalt.err (!%p6439_p4)
}
  0x28   : > { %s6443_s24 = scalar_lea.vmem %s6737_s20, 4096  ;;  %p6451_p9 = scmp.lt.s32.totalorder %s6737_s20, %s6737_s20 }
  0x29   : > { %p6444_p7 = scmp.ne.s32.totalorder %s6737_s20, %s6443_s24  ;;  %p6452_p6 = scmp.lt.s32.totalorder %s6443_s24, %s6443_s24 }
  0x2b   : > { %p6446_p8 = pnand %p6444_p7, %p6757_p0  ;;  %p6453_p13 = por %p6452_p6, %p6451_p9 }
  0x2d   : > { %p6447_p11 = pneg %p6446_p8 }
  0x2f   : > { %p6454_p1 = pnand %p6453_p13, %p6447_p11 }
  0x31   : > { %6457 = shalt.err (!%p6454_p1)
}
  0x32   : > { %s6589_s27 = smov 64   ;;  %s6590_s21 = smov 4  }
  0x33   : > { %6077 = dma.hbm_to_vmem [thread:$0]  (!%p6741_p12), %s7792_s7, 4096, %s6737_s20, [#allocation11], %s6589_s27, %s6589_s27, %s6590_s21  }
  0x34   : > { %s6458_s24 = scalar_lea.hbm %s7786_s1, 1024 }
  0x35   : > { %p6459_p6 = scmp.ne.s32.totalorder %s7786_s1, %s6458_s24  ;;  %p6465_p3 = scmp.lt.u32.totalorder %s6458_s24, %s7786_s1 }
  0x37   : > { %p6461_p9 = pnand %p6459_p6, %p6757_p0 }
  0x39   : > { %p6462_p2 = pneg %p6461_p9 }
  0x3b   : > { %p6467_p4 = pnand %p6465_p3, %p6462_p2 }
  0x3d   : > { %6470 = shalt.err (!%p6467_p4)
}
  0x3e   : > { %s6471_s20 = scalar_lea.vmem %s6745_s29, 1024  ;;  %p6479_p13 = scmp.lt.s32.totalorder %s6745_s29, %s6745_s29 }
  0x3f   : > { %p6472_p7 = scmp.ne.s32.totalorder %s6745_s29, %s6471_s20  ;;  %p6480_p1 = scmp.lt.s32.totalorder %s6471_s20, %s6471_s20 }
  0x41   : > { %p6474_p8 = pnand %p6472_p7, %p6757_p0  ;;  %p6481_p6 = por %p6480_p1, %p6479_p13 }
  0x43   : > { %p6475_p11 = pneg %p6474_p8 }
  0x45   : > { %p6482_p9 = pnand %p6481_p6, %p6475_p11 }
  0x47   : > { %6485 = shalt.err (!%p6482_p9)
}
  0x48   : > { %6074 = dma.hbm_to_vmem [thread:$0]  (!%p6741_p12), %s7786_s1, 1024, %s6745_s29, [#allocation8], %s6589_s27, %s6589_s27, %s6590_s21  }
  0x49   : > { %s6486_s17 = scalar_lea.hbm %s7798_s13, 8192 }
  0x4a   : > { %p6487_p2 = scmp.ne.s32.totalorder %s7798_s13, %s6486_s17  ;;  %p6493_p7 = scmp.lt.u32.totalorder %s6486_s17, %s7798_s13 }
  0x4c   : > { %p6489_p3 = pnand %p6487_p2, %p6757_p0 }
  0x4e   : > { %p6490_p4 = pneg %p6489_p3 }
  0x50   : > { %p6495_p8 = pnand %p6493_p7, %p6490_p4 }
  0x52   : > { %6498 = shalt.err (!%p6495_p8)
}
  0x53   : > { %s6499_s20 = scalar_lea.vmem %s472_s23, 8192  ;;  %p6507_p6 = scmp.lt.s32.totalorder %s472_s23, %s472_s23 }
  0x54   : > { %p6500_p11 = scmp.ne.s32.totalorder %s472_s23, %s6499_s20  ;;  %p6508_p9 = scmp.lt.s32.totalorder %s6499_s20, %s6499_s20 }
  0x56   : > { %p6502_p13 = pnand %p6500_p11, %p6757_p0  ;;  %p6509_p5 = por %p6508_p9, %p6507_p6 }
  0x58   : > { %p6503_p1 = pneg %p6502_p13 }
  0x5a   : > { %p6510_p10 = pnand %p6509_p5, %p6503_p1 }
  0x5c   : > { %6513 = shalt.err (!%p6510_p10)
}
  0x5d   : > { %6080 = dma.hbm_to_vmem [thread:$0]  (!%p6741_p12), %s7798_s13, 8192, %s472_s23, [#allocation11], %s6589_s27, %s6589_s27, %s6590_s21  }
  0x5e   : > { %p7834_p2 = scmp.ne.s32.totalorder %s7831_s18, 0 }
  0x5f   : > { %p7835_p0 = scmp.eq.s32.totalorder (!%p7834_p2), %s6703_s25, 0 }
  0x60   : > { %500 = sbr.rel (%p7834_p2) target bundleno = 2685 (0xa7d), region = 84 }
  0x67   : > { %6559 = dma.done.wait (%p7835_p0), [#allocation8], 1024   ;;  %p7836_p3 = pmov %p7835_p0 }
  0x68   : > { %p7837_p5 = pmov %p7835_p0 }
  0x69   : > { %6561 = vsyncadd (%p7836_p3), [#allocation8], 4294966272 }
  0x6a   : > { %6563 = dma.done.wait (%p7837_p5), [#allocation11], 12288   ;;  %p7838_p10 = pmov %p7835_p0 }
  0x6b   : > { %p557_p4 = scmp.lt.s32.totalorder %s6703_s25, 1  ;;  %vm562_vm0 = vcmask 253952   ;;  %v6591_v0 = vmov 0.0   ;;  %vm6592_vm1 = vmmov 0   ;;  %s7839_s27 = sld [smem:[#allocation25_spill]]  ;;  %v6134_v1 = vld [vmem:[#allocation7 + $0x10] sm:$0xff]  }
  0x6c   : > { %6565 = vsyncadd (%p7838_p10), [#allocation11], 4294955008  ;;  %5633 = vmatprep.subr.bf16.mxu1 %v6591_v0  ;;  %565 = vst [vmem:[#allocation3] sm:$0x1] %v6591_v0  ;;  %5637 = vmatprep.mubr.msk.bf16.mxu1 %vm6592_vm1, %v6591_v0  ;;  %vm581_vm2 = vcmask 257024   ;;  %v6135_v2 = vld [vmem:[#allocation7 + $0x18] sm:$0xff]  }
  0x6d   : > { %566 = vst [vmem:[#allocation3 + $0x9] sm:$0x1] %v6591_v0  ;;  %567 = vst [vmem:[#allocation4] sm:$0x1] %v6591_v0  ;;  %s558_s16 = scalar_select %p557_p4, %s6703_s25, 1  ;;  %5649 = vmatprep.subr.bf16.mxu0 %v6591_v0  ;;  %5653 = vmatprep.mubr.msk.bf16.mxu0 %vm6592_vm1, %v6591_v0  ;;  %v6138_v4 = vld [vmem:[#allocation7 + $0x30] sm:$0xff]  }
  0x6e   : > { %568 = vst [vmem:[#allocation4 + $0x11] sm:$0x1] %v6591_v0  ;;  %569 = vst [vmem:[#allocation5] sm:$0x1] %v6591_v0  ;;  %5634 = vmatpush3.bf16.msra.mxu1 %v6134_v1  ;;  %5650 = vmatpush3.bf16.msra.mxu0 %v6138_v4  ;;  %v6140_v5 = vld [vmem:[#allocation7 + $0x38] sm:$0xff]   ;;  %vm608_vm3 = vcmask 261120  }
  0x6f   : > { %570 = vst [vmem:[#allocation5 + $0x21] sm:$0x1] %v6591_v0  ;;  %563 = vst.msk [vmem:[#allocation2] sm:$0x1] %vm562_vm0, %v6591_v0  ;;  %s4897_s23 = sshll.u32 %s558_s16, 2  ;;  %5635 = vmatprep.subr.bf16.mxu1 %v6591_v0  ;;  %5651 = vmatprep.subr.bf16.mxu0 %v6591_v0  ;;  %v6136_v7 = vld [vmem:[#allocation7] sm:$0xff]  }
  0x70   : > { %564 = vst.msk [vmem:[#allocation2 + $0x5] sm:$0x1] %vm562_vm0, %v6591_v0  ;;  %v6137_v10 = vld [vmem:[#allocation7 + $0x8] sm:$0xff]   ;;  %v6139_v12 = vld [vmem:[#allocation7 + $0x20] sm:$0xff]   ;;  %v6142_v16 = vld [vmem:[%s7789_s4 + $0x40] sm:$0xff]   ;;  %vm844_vm4 = vcmask 1043456  }
  0x71   : > { %s560_s21 = scalar_lea.vmem %s7839_s27, %s4897_s23  ;;  %v6141_v13 = vld [vmem:[#allocation7 + $0x28] sm:$0xff]   ;;  %v6144_v17 = vld [vmem:[%s7789_s4 + $0x48] sm:$0xff]   ;;  %v6148_v19 = vld [vmem:[%s7789_s4 + $0x58] sm:$0xff]   ;;  %vm840_vm5 = vcmask 31744   ;;  %vm1436_vm6 = vcmask 64512   ;;  %vm2057_vm7 = vcmask 130048  }
  0x72   : > { %v580_v3 = vld [vmem:[%s560_s21] sm:$0xf]  ;;  %5636 = vmatpush3.bf16.msra.mxu1 %v6135_v2  ;;  %5652 = vmatpush3.bf16.msra.mxu0 %v6140_v5  ;;  %v6146_v18 = vld [vmem:[%s7789_s4 + $0x50] sm:$0xff]   ;;  %v6152_v21 = vld [vmem:[%s7789_s4 + $0x68] sm:$0xff]   ;;  %vm3224_vm9 = vcmask 1040384   ;;  %vm4036_vm11 = vcmask 1046528  }
  0x73   : > { %582 = vst.msk [vmem:[#allocation2 + $0x1] sm:$0xf] %vm581_vm2, %v580_v3  ;;  %5641 = vmatprep.subr.bf16.mxu1 %v6591_v0  ;;  %5665 = vmatprep.subr.mxu0 %v6591_v0  ;;  %v6150_v20 = vld [vmem:[%s7789_s4 + $0x60] sm:$0xff]   ;;  %v4911_v44 = vld [vmem:[%s7787_s2 + $0x8] sm:$0xff]  ;;  %v6147_v49 = vld [vmem:[%s7789_s4 + $0x10] sm:$0xff]   ;;  %s7840_s24 = sld [smem:[#allocation26_spill]] }
  0x74   : > { %v4910_v35 = vld [vmem:[%s7788_s3] ss:$0 sm:$0xff]  ;;  %v6145_v48 = vld [vmem:[%s7789_s4 + $0x8] sm:$0xff]   ;;  %v6149_v50 = vld [vmem:[%s7789_s4 + $0x18] sm:$0xff]   ;;  %vm3549_vm10 = vsmask.f32 7424 }
  0x75   : > { %v835_v46 = vld [vmem:[%s7787_s2] sm:$0xff]  ;;  %v6153_v52 = vld [vmem:[%s7789_s4 + $0x28] sm:$0xff]   ;;  %v6155_v53 = vld [vmem:[%s7789_s4 + $0x30] sm:$0xff]   ;;  %vm4376_vm12 = vcmask 523264   ;;  %s7842_s16 = sld [smem:[#allocation27_spill]]  ;;  %s7843_s23 = sld [smem:[#allocation18_spill]] }
  0x76   : > { %v6143_v47 = vld [vmem:[%s7789_s4] sm:$0xff]   ;;  %v6157_v54 = vld [vmem:[%s7789_s4 + $0x38] sm:$0xff]   ;;  %v6154_v55 = vld [vmem:[%s7789_s4 + $0x70] sm:$0xff]   ;;  %s7844_s27 = sld [smem:[#allocation23_spill]]  ;;  %s5318_s21 = sshll.u32 %s6703_s25, 11 }
  0x77   : > { %v6151_v51 = vld [vmem:[%s7789_s4 + $0x20] sm:$0xff]   ;;  %v6156_v56 = vld [vmem:[%s7789_s4 + $0x78] sm:$0xff]   ;;  %v6161_v61 = vld [vmem:[%s7789_s4 + $0x88] sm:$0xff]   ;;  %s7845_s17 = sld [smem:[#allocation28_spill]]  ;;  %s6594_s30 = smov [#allocation13]  }
  0x78   : > { %v6159_v58 = vld [vmem:[%s7789_s4 + $0x80] sm:$0xff]   ;;  %v6163_v1 = vld [vmem:[%s7789_s4 + $0x90] sm:$0xff]   ;;  %v6160_v3 = vld [vmem:[%s7789_s4 + $0xc8] sm:$0xff]  }
  0x79   : > { %v6158_v63 = vld [vmem:[%s7789_s4 + $0xc0] sm:$0xff]   ;;  %v6165_v4 = vld [vmem:[%s7789_s4 + $0x98] sm:$0xff]   ;;  %v6162_v5 = vld [vmem:[%s7789_s4 + $0xd0] sm:$0xff]   ;;  %s7841_s20 = smov %s7840_s24 }
  0x7a   : > { %v589_v6 = vld [vmem:[#allocation2] sm:$0xf] }
  0x7b   : > { %v583_v8 = vld [vmem:[#allocation2 + $0x1] sm:$0xf]  ;;  %v590_v9 = vpack.c.bf16 %v589_v6, %v589_v6 }
  0x7c   : > { %v584_v11 = vpack.c.bf16 %v583_v8, %v583_v8  ;;  %v707_v14 = vld [vmem:[#allocation2 + $0x2] sm:$0xf]  ;;  %v6169_v8 = vld [vmem:[%s7789_s4 + $0xa8] sm:$0xff]   ;;  %p7846_p7 = scmp.ne.s32.totalorder %s7844_s27, 0 }
  0x7d   : > { %5638 = vmatmul.mubr.msk.bf16.vlgmr.msra.gmra.mrb[0].mxu1 %vm608_vm3, %v590_v9  ;;  %v708_v15 = vpack.c.bf16 %v707_v14, %v707_v14  ;;  %v6167_v6 = vld [vmem:[%s7789_s4 + $0xa0] sm:$0xff]   ;;  %v6170_v14 = vld [vmem:[%s7789_s4 + $0xf0] sm:$0xff]   ;;  %s7736_s19 = scalar_lea.hbm %s7845_s17, %s5318_s21 }
  0x7e   : > { %5642 = vmatpush3.bf16.msra.mxu1 %v6136_v7  ;;  %5645 = vmatprep.mubr.msk.bf16.mxu1 %vm6592_vm1, %v6591_v0  ;;  %v6164_v7 = vld [vmem:[%s7789_s4 + $0xd8] sm:$0xff]   ;;  %v6166_v9 = vld [vmem:[%s7789_s4 + $0xe0] sm:$0xff]  }
  0x7f   : > { %5643 = vmatprep.subr.bf16.mxu1 %v6591_v0  ;;  %5654 = vmatmul.mubr.msk.bf16.vlgmr.msra.gmra.mrb[0].mxu0 %vm608_vm3, %v584_v11 }
  0x80   : > { %5667 = vmatprep.mubr.msk.f32.mxu0 %vm6592_vm1, %v6591_v0 }
  0x82   : > { %5644 = vmatpush3.bf16.msra.mxu1 %v6137_v10  ;;  %v6171_v10 = vld [vmem:[%s7789_s4 + $0xb0] sm:$0xff]  }
  0x83   : > { %5657 = vmatprep.subr.bf16.mxu1 %v6591_v0 }
  0x85   : > { %5646 = vmatmul.mubr.msk.bf16.vlgmr.msra.gmra.mrb[4].mxu1 %vm608_vm3, %v584_v11  ;;  %v6168_v11 = vld [vmem:[%s7789_s4 + $0xe8] sm:$0xff]  }
  0x86   : > { %5658 = vmatpush3.bf16.msra.mxu1 %v6139_v12  ;;  %5661 = vmatprep.mubr.msk.bf16.mxu1 %vm6592_vm1, %v6591_v0  ;;  %v6173_v12 = vld [vmem:[%s7789_s4 + $0xb8] sm:$0xff]  }
  0x87   : > { %5659 = vmatprep.subr.bf16.mxu1 %v6591_v0 }
  0x8a   : > { %5660 = vmatpush3.bf16.msra.mxu1 %v6141_v13 }
  0x8b   : > { %5675 = vmatprep.subr.bf16.mxu1 %v6591_v0 }
  0x8d   : > { %5662 = vmatmul.mubr.msk.bf16.vlgmr.msra.gmra.mrb[8].mxu1 %vm608_vm3, %v708_v15 }
  0x8e   : > { %5691 = vmatprep.mubr.msk.bf16.mxu1 %vm6592_vm1, %v6591_v0  ;;  %5676 = vmatpush3.bf16.msra.mxu1 %v6142_v16  ;;  %v6172_v16 = vld [vmem:[%s7789_s4 + $0xf8] sm:$0xff]  }
  0x8f   : > { %5677 = vmatprep.subr.bf16.mxu1 %v6591_v0 }
  0x92   : > { %5678 = vmatpush3.bf16.msra.mxu1 %v6144_v17  ;;  %v4997_v17 = vld [vmem:[%s7790_s5 + $0x10] sm:$0xff] }
  0x93   : > { %5679 = vmatprep.subr.bf16.mxu1 %v6591_v0 }
  0x96   : > { %5680 = vmatpush3.bf16.msra.mxu1 %v6146_v18  ;;  %v6174_v18 = vld [vmem:[#allocation10 + $0x40] sm:$0xff]  }
  0x97   : > { %5681 = vmatprep.subr.bf16.mxu1 %v6591_v0 }
  0x9a   : > { %5682 = vmatpush3.bf16.msra.mxu1 %v6148_v19  ;;  %v6176_v19 = vld [vmem:[#allocation10 + $0x48] sm:$0xff]  }
  0x9b   : > { %5683 = vmatprep.subr.bf16.mxu1 %v6591_v0 }
  0x9e   : > { %5684 = vmatpush3.bf16.msra.mxu1 %v6150_v20  ;;  %v6178_v20 = vld [vmem:[#allocation10 + $0x50] sm:$0xff]  }
  0x9f   : > { %5685 = vmatprep.subr.bf16.mxu1 %v6591_v0 }
  0xa2   : > { %5686 = vmatpush3.bf16.msra.mxu1 %v6152_v21  ;;  %v6180_v21 = vld [vmem:[#allocation10 + $0x58] sm:$0xff]  }
  0xa3   : > { %5687 = vmatprep.subr.bf16.mxu1 %v6591_v0 }
  0xa6   : > { %5688 = vmatpush3.bf16.msra.mxu1 %v6154_v55  ;;  %v6187_v55 = vld [vmem:[#allocation10 + $0x30] sm:$0xff]  }
  0xa7   : > { %5689 = vmatprep.subr.bf16.mxu1 %v6591_v0 }
  0xaa   : > { %5690 = vmatpush3.bf16.msra.mxu1 %v6156_v56  ;;  %v6184_v56 = vld [vmem:[#allocation10 + $0x68] sm:$0xff]  }
  0xab   : > { %5715 = vmatprep.subr.bf16.mxu1 %v6591_v0 }
 0x150   : > { %v646_v22 = vpop.f32.mrb[0].mxu1 }
 0x151   : > { %v5639_v23 = vpop.f32.mrb[1].mxu1 }
 0x152   : > { %v649_v24 = vpop.f32.mrb[2].mxu1  ;;  %v765_v25 = vpop.f32.mrb[0].mxu0 }
 0x153   : > { %v5640_v26 = vpop.f32.mrb[3].mxu1  ;;  %v5655_v27 = vpop.f32.mrb[1].mxu0 }
 0x154   : > { %v768_v28 = vpop.f32.mrb[2].mxu0 }
 0x155   : > { %v5656_v29 = vpop.f32.mrb[3].mxu0 }
 0x158   : > { %v701_v30 = vpop.f32.mrb[4].mxu1 }
 0x159   : > { %v702_v31 = vadd.f32 %v701_v30, %v646_v22  ;;  %v5647_v32 = vpop.f32.mrb[5].mxu1  ;;  %v6182_v22 = vld [vmem:[#allocation10 + $0x60] sm:$0xff]  }
 0x15a   : > { %v704_v33 = vpop.f32.mrb[6].mxu1 }
 0x15b   : > { %v5648_v34 = vpop.f32.mrb[7].mxu1  ;;  %v833_v40 = vadd.f32 %v4910_v35, %v702_v31 }
 0x15d   : > { %v834_v45 = vmax.f32 %v833_v40, 0.0 }
 0x160   : > { %v820_v36 = vpop.f32.mrb[8].mxu1 }
 0x161   : > { %v821_v37 = vadd.f32 %v820_v36, %v765_v25  ;;  %v5663_v38 = vpop.f32.mrb[9].mxu1  ;;  %v4996_v36 = vld [vmem:[%s7791_s6] ss:$0 sm:$0xff] }
 0x162   : > { %v823_v39 = vpop.f32.mrb[10].mxu1 }
 0x163   : > { %v836_v41 = vadd.f32 %v4910_v35, %v821_v37  ;;  %v5664_v42 = vpop.f32.mrb[11].mxu1 }
 0x165   : > { %v837_v43 = vmax.f32 %v836_v41, 0.0 }
 0x167   : > { %5666 = vmatpush3.msk.msra.mxu0 %vm844_vm4, %v837_v43 }
 0x168   : > { %5668 = vmatmul.mubr.msk.f32.vlgmr.msra.gmra.mrb[4].mxu0 %vm840_vm5, %v4911_v44  ;;  %5670 = vmatprep.subr.mxu0 %v6591_v0 }
 0x169   : > { %5671 = vmatpush3.msk.msra.mxu0 %vm844_vm4, %v834_v45  ;;  %5672 = vmatprep.mubr.msk.f32.mxu0 %vm6592_vm1, %v6591_v0  ;;  %v4998_v45 = vld [vmem:[%s7790_s5 + $0x18] sm:$0xff] }
 0x16a   : > { %5695 = vmatprep.subr.bf16.mxu0 %v6591_v0 }
 0x170   : > { %5673 = vmatmul.mubr.msk.f32.vlgmr.msra.gmra.mrb[4].mxu0 %vm840_vm5, %v835_v46 }
 0x171   : > { %5696 = vmatpush3.bf16.msra.mxu0 %v6143_v47  ;;  %5711 = vmatprep.mubr.msk.bf16.mxu0 %vm6592_vm1, %v6591_v0  ;;  %v1429_v47 = vld [vmem:[%s7790_s5] sm:$0xff] }
 0x172   : > { %5697 = vmatprep.subr.bf16.mxu0 %v6591_v0 }
 0x175   : > { %5698 = vmatpush3.bf16.msra.mxu0 %v6145_v48  ;;  %v1430_v48 = vld [vmem:[%s7790_s5 + $0x8] sm:$0xff] }
 0x176   : > { %5699 = vmatprep.subr.bf16.mxu0 %v6591_v0 }
 0x179   : > { %5700 = vmatpush3.bf16.msra.mxu0 %v6147_v49  ;;  %v6175_v49 = vld [vmem:[#allocation10] sm:$0xff]  }
 0x17a   : > { %5701 = vmatprep.subr.bf16.mxu0 %v6591_v0 }
 0x17d   : > { %5702 = vmatpush3.bf16.msra.mxu0 %v6149_v50  ;;  %v6177_v50 = vld [vmem:[#allocation10 + $0x8] sm:$0xff]  }
 0x17e   : > { %5703 = vmatprep.subr.bf16.mxu0 %v6591_v0 }
 0x181   : > { %5704 = vmatpush3.bf16.msra.mxu0 %v6151_v51  ;;  %v6179_v51 = vld [vmem:[#allocation10 + $0x10] sm:$0xff]  }
 0x182   : > { %5705 = vmatprep.subr.bf16.mxu0 %v6591_v0 }
 0x185   : > { %5706 = vmatpush3.bf16.msra.mxu0 %v6153_v52  ;;  %v6181_v52 = vld [vmem:[#allocation10 + $0x18] sm:$0xff]  }
 0x186   : > { %5707 = vmatprep.subr.bf16.mxu0 %v6591_v0 }
 0x189   : > { %5708 = vmatpush3.bf16.msra.mxu0 %v6155_v53  ;;  %v6183_v53 = vld [vmem:[#allocation10 + $0x20] sm:$0xff]  }
 0x18a   : > { %5709 = vmatprep.subr.bf16.mxu0 %v6591_v0 }
 0x18d   : > { %5710 = vmatpush3.bf16.msra.mxu0 %v6157_v54  ;;  %v6185_v54 = vld [vmem:[#allocation10 + $0x28] sm:$0xff]  }
 0x18e   : > { %5735 = vmatprep.subr.bf16.mxu0 %v6591_v0 }
 0x243   : > { %v990_v57 = vpop.f32.mrb[4].mxu0 }
 0x244   : > { %994 = vst [vmem:[#allocation3 + $0x1] sm:$0xff] %v990_v57  ;;  %v5674_v59 = vpop.f32.mrb[5].mxu0  ;;  %v996_v60 = vpack.c.bf16 %v990_v57, %v990_v57  ;;  %v6189_v57 = vld [vmem:[#allocation10 + $0x38] sm:$0xff]  }
 0x245   : > { %v6188_v59 = vld [vmem:[#allocation10 + $0x78] sm:$0xff]  }
 0x246   : > { %5712 = vmatmul.mubr.bf16.vlgmr.msra.gmra.mrb[8].mxu0 %v996_v60 }
 0x247   : > { %5736 = vmatpush3.bf16.msra.mxu0 %v6159_v58  ;;  %5751 = vmatprep.mubr.msk.bf16.mxu0 %vm6592_vm1, %v6591_v0  ;;  %v6186_v58 = vld [vmem:[#allocation10 + $0x70] sm:$0xff]  }
 0x248   : > { %5737 = vmatprep.subr.bf16.mxu0 %v6591_v0 }
 0x24b   : > { %v1013_v62 = vld [vmem:[#allocation3] sm:$0xff]  ;;  %5738 = vmatpush3.bf16.msra.mxu0 %v6161_v61 }
 0x24c   : > { %v1014_v2 = vpack.c.bf16 %v1013_v62, %v1013_v62  ;;  %5739 = vmatprep.subr.bf16.mxu0 %v6591_v0  ;;  %v1208_v13 = vld [vmem:[#allocation3 + $0x2] sm:$0xff] }
 0x24d   : > { %v1209_v15 = vpack.c.bf16 %v1208_v13, %v1208_v13  ;;  %v6191_v62 = vld [vmem:[#allocation10 + $0x80] sm:$0xff]  }
 0x24e   : > { %5692 = vmatmul.mubr.bf16.vlgmr.msra.gmra.mrb[12].mxu1 %v1014_v2  ;;  %v6190_v2 = vld [vmem:[#allocation10 + $0xc0] sm:$0xff]  }
 0x24f   : > { %5716 = vmatpush3.bf16.msra.mxu1 %v6158_v63  ;;  %5740 = vmatpush3.bf16.msra.mxu0 %v6163_v1  ;;  %v6193_v1 = vld [vmem:[#allocation10 + $0x88] sm:$0xff]   ;;  %v6198_v13 = vld [vmem:[#allocation10 + $0xe0] sm:$0xff]  }
 0x250   : > { %5717 = vmatprep.subr.bf16.mxu1 %v6591_v0  ;;  %5741 = vmatprep.subr.bf16.mxu0 %v6591_v0 }
 0x251   : > { %5731 = vmatprep.mubr.msk.bf16.mxu1 %vm6592_vm1, %v6591_v0 }
 0x253   : > { %5718 = vmatpush3.bf16.msra.mxu1 %v6160_v3  ;;  %5742 = vmatpush3.bf16.msra.mxu0 %v6165_v4 }
 0x254   : > { %5719 = vmatprep.subr.bf16.mxu1 %v6591_v0  ;;  %5743 = vmatprep.subr.bf16.mxu0 %v6591_v0 }
 0x257   : > { %5720 = vmatpush3.bf16.msra.mxu1 %v6162_v5  ;;  %5744 = vmatpush3.bf16.msra.mxu0 %v6167_v6  ;;  %v6195_v5 = vld [vmem:[#allocation10 + $0x90] sm:$0xff]  }
 0x258   : > { %5721 = vmatprep.subr.bf16.mxu1 %v6591_v0  ;;  %5745 = vmatprep.subr.bf16.mxu0 %v6591_v0 }
 0x25b   : > { %5722 = vmatpush3.bf16.msra.mxu1 %v6164_v7  ;;  %5746 = vmatpush3.bf16.msra.mxu0 %v6169_v8  ;;  %v6192_v7 = vld [vmem:[#allocation10 + $0xc8] sm:$0xff]   ;;  %v6197_v8 = vld [vmem:[#allocation10 + $0x98] sm:$0xff]  }
 0x25c   : > { %5723 = vmatprep.subr.bf16.mxu1 %v6591_v0  ;;  %5747 = vmatprep.subr.bf16.mxu0 %v6591_v0 }
 0x25f   : > { %5724 = vmatpush3.bf16.msra.mxu1 %v6166_v9  ;;  %5748 = vmatpush3.bf16.msra.mxu0 %v6171_v10  ;;  %v6194_v9 = vld [vmem:[#allocation10 + $0xd0] sm:$0xff]   ;;  %v6199_v10 = vld [vmem:[#allocation10 + $0xa0] sm:$0xff]  }
 0x260   : > { %5725 = vmatprep.subr.bf16.mxu1 %v6591_v0  ;;  %5749 = vmatprep.subr.bf16.mxu0 %v6591_v0 }
 0x263   : > { %5726 = vmatpush3.bf16.msra.mxu1 %v6168_v11  ;;  %5750 = vmatpush3.bf16.msra.mxu0 %v6173_v12  ;;  %v6196_v11 = vld [vmem:[#allocation10 + $0xd8] sm:$0xff]   ;;  %v6201_v12 = vld [vmem:[#allocation10 + $0xa8] sm:$0xff]  }
 0x264   : > { %5727 = vmatprep.subr.bf16.mxu1 %v6591_v0  ;;  %5765 = vmatprep.subr.bf16.mxu0 %v6591_v0 }
 0x266   : > { %5752 = vmatmul.mubr.bf16.vlgmr.msra.gmra.mrb[12].mxu0 %v1209_v15  ;;  %v6200_v15 = vld [vmem:[#allocation10 + $0xe8] sm:$0xff]  }
 0x267   : > { %5728 = vmatpush3.bf16.msra.mxu1 %v6170_v14  ;;  %5781 = vmatprep.mubr.msk.bf16.mxu0 %vm6592_vm1, %v6591_v0  ;;  %v6203_v14 = vld [vmem:[#allocation10 + $0xb0] sm:$0xff]  }
 0x268   : > { %5729 = vmatprep.subr.bf16.mxu1 %v6591_v0  ;;  %5766 = vmatpush3.bf16.msra.mxu0 %v6174_v18 }
 0x269   : > { %5767 = vmatprep.subr.bf16.mxu0 %v6591_v0 }
 0x26b   : > { %5730 = vmatpush3.bf16.msra.mxu1 %v6172_v16  ;;  %v6205_v16 = vld [vmem:[#allocation10 + $0xb8] sm:$0xff]  }
 0x26c   : > { %5768 = vmatpush3.bf16.msra.mxu0 %v6176_v19  ;;  %v6202_v19 = vld [vmem:[#allocation10 + $0xf0] sm:$0xff]  }
 0x26d   : > { %5769 = vmatprep.subr.bf16.mxu0 %v6591_v0 }
 0x26e   : > { %5732 = vmatmul.mubr.bf16.vlgmr.msra.gmra.mrb[16].mxu1 %v996_v60 }
 0x26f   : > { %5757 = vmatprep.mubr.msk.f32.mxu1 %vm1436_vm6, %v4997_v17 }
 0x270   : > { %5770 = vmatpush3.bf16.msra.mxu0 %v6178_v20 }
 0x271   : > { %5771 = vmatprep.subr.bf16.mxu0 %v6591_v0 }
 0x274   : > { %5772 = vmatpush3.bf16.msra.mxu0 %v6180_v21  ;;  %v6204_v21 = vld [vmem:[#allocation10 + $0xf8] sm:$0xff]  }
 0x275   : > { %5773 = vmatprep.subr.bf16.mxu0 %v6591_v0 }
 0x278   : > { %5774 = vmatpush3.bf16.msra.mxu0 %v6182_v22  ;;  %v5036_v22 = vld [vmem:[%s7793_s8 + $0x20] sm:$0xff] }
 0x279   : > { %5775 = vmatprep.subr.bf16.mxu0 %v6591_v0 }
 0x27c   : > { %5776 = vmatpush3.bf16.msra.mxu0 %v6184_v56 }
 0x27d   : > { %5777 = vmatprep.subr.bf16.mxu0 %v6591_v0 }
 0x280   : > { %5778 = vmatpush3.bf16.msra.mxu0 %v6186_v58 }
 0x281   : > { %5779 = vmatprep.subr.bf16.mxu0 %v6591_v0 }
 0x284   : > { %5780 = vmatpush3.bf16.msra.mxu0 %v6188_v59 }
 0x285   : > { %5805 = vmatprep.subr.bf16.mxu0 %v6591_v0 }
 0x319   : > { %v1202_v23 = vpop.f32.mrb[8].mxu0 }
 0x31a   : > { %v5713_v24 = vpop.f32.mrb[9].mxu0 }
 0x31b   : > { %v1205_v25 = vpop.f32.mrb[10].mxu0  ;;  %v6208_v24 = vld [vmem:[%s7795_s10 + $0x84] ss:$8 sps:$4 sm:$0xff]  }
 0x31c   : > { %v5714_v26 = vpop.f32.mrb[11].mxu0  ;;  %v6214_v25 = vld [vmem:[%s7795_s10 + $0x94] ss:$8 sps:$4 sm:$0xff]  }
 0x31d   : > { %v6212_v26 = vld [vmem:[%s7795_s10 + $0x90] ss:$8 sps:$4 sm:$0xff]  }
 0x321   : > { %v1114_v27 = vpop.f32.mrb[12].mxu1 }
 0x322   : > { %v1203_v28 = vadd.f32 %v1202_v23, %v1114_v27  ;;  %v5693_v29 = vpop.f32.mrb[13].mxu1  ;;  %v6206_v23 = vld [vmem:[%s7795_s10 + $0x80] ss:$8 sps:$4 sm:$0xff]   ;;  %v6220_v27 = vld [vmem:[%s7795_s10 + $0xa4] ss:$8 sps:$4 sm:$0xff]  }
 0x323   : > { %v1117_v30 = vpop.f32.mrb[14].mxu1  ;;  %v6226_v29 = vld [vmem:[%s7795_s10 + $0xb4] ss:$8 sps:$4 sm:$0xff]  }
 0x324   : > { %v5694_v31 = vpop.f32.mrb[15].mxu1  ;;  %v1427_v41 = vadd.f32 %v4996_v36, %v1203_v28  ;;  %v6218_v28 = vld [vmem:[%s7795_s10 + $0xa0] ss:$8 sps:$4 sm:$0xff]   ;;  %v6224_v30 = vld [vmem:[%s7795_s10 + $0xb0] ss:$8 sps:$4 sm:$0xff]  }
 0x325   : > { %v6232_v31 = vld [vmem:[%s7795_s10 + $0xc4] ss:$8 sps:$4 sm:$0xff]  }
 0x326   : > { %v1428_v46 = vmax.f32 %v1427_v41, 0.0 }
 0x339   : > { %v1414_v32 = vpop.f32.mrb[12].mxu0 }
 0x33a   : > { %v5753_v33 = vpop.f32.mrb[13].mxu0 }
 0x33b   : > { %v1417_v34 = vpop.f32.mrb[14].mxu0  ;;  %v6238_v33 = vld [vmem:[%s7795_s10 + $0xd4] ss:$8 sps:$4 sm:$0xff]  }
 0x33c   : > { %v5754_v35 = vpop.f32.mrb[15].mxu0  ;;  %v6236_v34 = vld [vmem:[%s7795_s10 + $0xd0] ss:$8 sps:$4 sm:$0xff]  }
 0x341   : > { %v1326_v37 = vpop.f32.mrb[16].mxu1 }
 0x342   : > { %v1415_v38 = vadd.f32 %v1414_v32, %v1326_v37  ;;  %v5733_v39 = vpop.f32.mrb[17].mxu1  ;;  %v6230_v32 = vld [vmem:[%s7795_s10 + $0xc0] ss:$8 sps:$4 sm:$0xff]  }
 0x343   : > { %v1329_v40 = vpop.f32.mrb[18].mxu1 }
 0x344   : > { %v1431_v42 = vadd.f32 %v4996_v36, %v1415_v38  ;;  %v5734_v43 = vpop.f32.mrb[19].mxu1  ;;  %v5035_v40 = vld [vmem:[%s7794_s9] ss:$0 sm:$0xff] }
 0x346   : > { %v1432_v44 = vmax.f32 %v1431_v42, 0.0 }
 0x348   : > { %5755 = vmatprep.subr.mxu1 %v1432_v44 }
 0x349   : > { %5756 = vmatpush3.msra.mxu1 %v1432_v44 }
 0x34a   : > { %5758 = vmatmul.mubr.msk.f32.vlgmr.msra.gmra.mrb[20].mxu1 %vm1436_vm6, %v4998_v45  ;;  %5760 = vmatprep.subr.mxu1 %v1428_v46 }
 0x34b   : > { %5761 = vmatpush3.msra.mxu1 %v1428_v46  ;;  %5762 = vmatprep.mubr.msk.f32.mxu1 %vm1436_vm6, %v1429_v47 }
 0x34c   : > { %5785 = vmatprep.subr.bf16.mxu1 %v6591_v0 }
 0x352   : > { %5763 = vmatmul.mubr.msk.f32.vlgmr.msra.gmra.mrb[20].mxu1 %vm1436_vm6, %v1430_v48 }
 0x353   : > { %5786 = vmatpush3.bf16.msra.mxu1 %v6175_v49  ;;  %5801 = vmatprep.mubr.msk.bf16.mxu1 %vm6592_vm1, %v6591_v0 }
 0x354   : > { %5787 = vmatprep.subr.bf16.mxu1 %v6591_v0 }
 0x357   : > { %5788 = vmatpush3.bf16.msra.mxu1 %v6177_v50 }
 0x358   : > { %5789 = vmatprep.subr.bf16.mxu1 %v6591_v0 }
 0x35b   : > { %5790 = vmatpush3.bf16.msra.mxu1 %v6179_v51 }
 0x35c   : > { %5791 = vmatprep.subr.bf16.mxu1 %v6591_v0 }
 0x35f   : > { %5792 = vmatpush3.bf16.msra.mxu1 %v6181_v52 }
 0x360   : > { %5793 = vmatprep.subr.bf16.mxu1 %v6591_v0 }
 0x363   : > { %5794 = vmatpush3.bf16.msra.mxu1 %v6183_v53 }
 0x364   : > { %5795 = vmatprep.subr.bf16.mxu1 %v6591_v0 }
 0x367   : > { %5796 = vmatpush3.bf16.msra.mxu1 %v6185_v54 }
 0x368   : > { %5797 = vmatprep.subr.bf16.mxu1 %v6591_v0 }
 0x36b   : > { %5798 = vmatpush3.bf16.msra.mxu1 %v6187_v55 }
 0x36c   : > { %5799 = vmatprep.subr.bf16.mxu1 %v6591_v0 }
 0x36f   : > { %5800 = vmatpush3.bf16.msra.mxu1 %v6189_v57 }
 0x370   : > { %5825 = vmatprep.subr.bf16.mxu1 %v6591_v0 }
 0x425   : > { %v5764_v60 = vpop.f32.mrb[20].mxu1 }
 0x426   : > { %1600 = vst [vmem:[#allocation4 + $0x9] sm:$0xff] %v5764_v60  ;;  %v1590_v61 = vpop.f32.mrb[21].mxu1 }
 0x427   : > { %1599 = vst [vmem:[#allocation4 + $0x1] sm:$0xff] %v1590_v61  ;;  %v1603_v63 = vpack.c.bf16 %v5764_v60, %v1590_v61 }
 0x429   : > { %5802 = vmatmul.mubr.bf16.vlgmr.msra.gmra.mrb[24].mxu1 %v1603_v63 }
 0x42a   : > { %5826 = vmatpush3.bf16.msra.mxu1 %v6191_v62  ;;  %5841 = vmatprep.mubr.msk.bf16.mxu1 %vm6592_vm1, %v6591_v0 }
 0x42b   : > { %5827 = vmatprep.subr.bf16.mxu1 %v6591_v0 }
 0x42d   : > { %v1819_v18 = vld [vmem:[#allocation4 + $0xa] sm:$0xff] }
 0x42e   : > { %v1620_v3 = vld [vmem:[#allocation4] sm:$0xff]  ;;  %v1621_v4 = vld [vmem:[#allocation4 + $0x8] sm:$0xff]  ;;  %5828 = vmatpush3.bf16.msra.mxu1 %v6193_v1 }
 0x42f   : > { %v1622_v6 = vpack.c.bf16 %v1621_v4, %v1620_v3  ;;  %5829 = vmatprep.subr.bf16.mxu1 %v6591_v0  ;;  %v1818_v17 = vld [vmem:[#allocation4 + $0x2] sm:$0xff]  ;;  %v5037_v3 = vld [vmem:[%s7793_s8 + $0x28] sm:$0xff]  ;;  %v5038_v4 = vld [vmem:[%s7793_s8 + $0x30] sm:$0xff] }
 0x430   : > { %v1820_v20 = vpack.c.bf16 %v1819_v18, %v1818_v17  ;;  %v6227_v17 = vld [vmem:[%s7795_s10 + $0x1b0] ss:$8 sps:$4 sm:$0xff]   ;;  %v6235_v18 = vld [vmem:[%s7795_s10 + $0x1c4] ss:$8 sps:$4 sm:$0xff]  }
 0x431   : > { %5782 = vmatmul.mubr.bf16.vlgmr.msra.gmra.mrb[16].mxu0 %v1622_v6  ;;  %v5039_v6 = vld [vmem:[%s7793_s8 + $0x38] sm:$0xff] }
 0x432   : > { %5806 = vmatpush3.bf16.msra.mxu0 %v6190_v2  ;;  %5830 = vmatpush3.bf16.msra.mxu1 %v6195_v5  ;;  %v6211_v5 = vld [vmem:[%s7795_s10 + $0x184] ss:$8 sps:$4 sm:$0xff]  }
 0x433   : > { %5807 = vmatprep.subr.bf16.mxu0 %v6591_v0  ;;  %5831 = vmatprep.subr.bf16.mxu1 %v6591_v0 }
 0x434   : > { %5821 = vmatprep.mubr.msk.bf16.mxu0 %vm6592_vm1, %v6591_v0 }
 0x436   : > { %5808 = vmatpush3.bf16.msra.mxu0 %v6192_v7  ;;  %5832 = vmatpush3.bf16.msra.mxu1 %v6197_v8  ;;  %v2044_v7 = vld [vmem:[%s7793_s8] sm:$0xff]  ;;  %v2045_v8 = vld [vmem:[%s7793_s8 + $0x8] sm:$0xff] }
 0x437   : > { %5809 = vmatprep.subr.bf16.mxu0 %v6591_v0  ;;  %5833 = vmatprep.subr.bf16.mxu1 %v6591_v0 }
 0x43a   : > { %5810 = vmatpush3.bf16.msra.mxu0 %v6194_v9  ;;  %5834 = vmatpush3.bf16.msra.mxu1 %v6199_v10  ;;  %v6209_v9 = vld [vmem:[%s7795_s10 + $0x180] ss:$8 sps:$4 sm:$0xff]   ;;  %v2046_v10 = vld [vmem:[%s7793_s8 + $0x10] sm:$0xff] }
 0x43b   : > { %5811 = vmatprep.subr.bf16.mxu0 %v6591_v0  ;;  %5835 = vmatprep.subr.bf16.mxu1 %v6591_v0 }
 0x43e   : > { %5812 = vmatpush3.bf16.msra.mxu0 %v6196_v11  ;;  %5836 = vmatpush3.bf16.msra.mxu1 %v6201_v12  ;;  %v6217_v11 = vld [vmem:[%s7795_s10 + $0x194] ss:$8 sps:$4 sm:$0xff]  }
 0x43f   : > { %5813 = vmatprep.subr.bf16.mxu0 %v6591_v0  ;;  %5837 = vmatprep.subr.bf16.mxu1 %v6591_v0  ;;  %v2047_v12 = vld [vmem:[%s7793_s8 + $0x18] sm:$0xff] }
 0x442   : > { %5814 = vmatpush3.bf16.msra.mxu0 %v6198_v13  ;;  %5838 = vmatpush3.bf16.msra.mxu1 %v6203_v14  ;;  %v6215_v13 = vld [vmem:[%s7795_s10 + $0x190] ss:$8 sps:$4 sm:$0xff]   ;;  %v6223_v14 = vld [vmem:[%s7795_s10 + $0x1a4] ss:$8 sps:$4 sm:$0xff]  }
 0x443   : > { %5815 = vmatprep.subr.bf16.mxu0 %v6591_v0  ;;  %5839 = vmatprep.subr.bf16.mxu1 %v6591_v0 }
 0x446   : > { %5816 = vmatpush3.bf16.msra.mxu0 %v6200_v15  ;;  %5840 = vmatpush3.bf16.msra.mxu1 %v6205_v16  ;;  %v6221_v15 = vld [vmem:[%s7795_s10 + $0x1a0] ss:$8 sps:$4 sm:$0xff]   ;;  %v6229_v16 = vld [vmem:[%s7795_s10 + $0x1b4] ss:$8 sps:$4 sm:$0xff]  }
 0x447   : > { %5817 = vmatprep.subr.bf16.mxu0 %v6591_v0  ;;  %2381 = vmatprep.subr.bf16.mxu1 %v6208_v24  ;;  %v6253_v24 = vld [vmem:[%s7795_s10 + $0x1f4] ss:$8 sps:$4 sm:$0xff]  }
 0x449   : > { %5842 = vmatmul.mubr.bf16.vlgmr.msra.gmra.mrb[28].mxu1 %v1820_v20  ;;  %v6241_v20 = vld [vmem:[%s7795_s10 + $0x1d4] ss:$8 sps:$4 sm:$0xff]  }
 0x44a   : > { %5818 = vmatpush3.bf16.msra.mxu0 %v6202_v19  ;;  %2382 = vmatpush1.bf16.msra.mxu1 %v6206_v23  ;;  %v6233_v19 = vld [vmem:[%s7795_s10 + $0x1c0] ss:$8 sps:$4 sm:$0xff]  }
 0x44b   : > { %5819 = vmatprep.subr.bf16.mxu0 %v6591_v0  ;;  %2383 = vmatprep.subr.bf16.mxu1 %v6214_v25  ;;  %v6245_v23 = vld [vmem:[%s7795_s10 + $0x1e0] ss:$8 sps:$4 sm:$0xff]   ;;  %v6251_v25 = vld [vmem:[%s7795_s10 + $0x1f0] ss:$8 sps:$4 sm:$0xff]  }
 0x44e   : > { %5820 = vmatpush3.bf16.msra.mxu0 %v6204_v21  ;;  %2384 = vmatpush1.bf16.msra.mxu1 %v6212_v26  ;;  %v6239_v21 = vld [vmem:[%s7795_s10 + $0x1d0] ss:$8 sps:$4 sm:$0xff]   ;;  %v6244_v26 = vld [vmem:[%s7795_s10 + $0xe4] ss:$8 sps:$4 sm:$0xff]  }
 0x44f   : > { %2385 = vmatprep.subr.bf16.mxu1 %v6220_v27  ;;  %v6259_v27 = vld [vmem:[%s7795_s10 + $0x104] ss:$8 sps:$4 sm:$0xff]  }
 0x451   : > { %5822 = vmatmul.mubr.bf16.vlgmr.msra.gmra.mrb[20].mxu0 %v1603_v63 }
 0x452   : > { %5849 = vmatprep.mubr.msk.f32.mxu0 %vm2057_vm7, %v5036_v22  ;;  %2386 = vmatpush1.bf16.msra.mxu1 %v6218_v28  ;;  %v6247_v22 = vld [vmem:[%s7795_s10 + $0x1e4] ss:$8 sps:$4 sm:$0xff]   ;;  %v6242_v28 = vld [vmem:[%s7795_s10 + $0xe0] ss:$8 sps:$4 sm:$0xff]  }
 0x453   : > { %2387 = vmatprep.subr.bf16.mxu1 %v6226_v29  ;;  %v6593_v29 = vmov 0  }
 0x454   : > { %2413 = vmatprep.mubr.bf16.mxu1 %v6593_v29 }
 0x456   : > { %2388 = vmatpush1.bf16.msra.mxu1 %v6224_v30  ;;  %v6250_v30 = vld [vmem:[%s7795_s10 + $0xf4] ss:$8 sps:$4 sm:$0xff]  }
 0x457   : > { %2389 = vmatprep.subr.bf16.mxu1 %v6232_v31  ;;  %v6248_v31 = vld [vmem:[%s7795_s10 + $0xf0] ss:$8 sps:$4 sm:$0xff]  }
 0x45a   : > { %2390 = vmatpush1.bf16.msra.mxu1 %v6230_v32  ;;  %v6256_v32 = vld [vmem:[%s7795_s10 + $0x4] ss:$8 sps:$4 sm:$0xff]  }
 0x45b   : > { %2391 = vmatprep.subr.bf16.mxu1 %v6238_v33 }
 0x45e   : > { %2392 = vmatpush1.bf16.msra.mxu1 %v6236_v34 }
 0x45f   : > { %2393 = vmatprep.subr.bf16.mxu1 %v6244_v26 }
 0x462   : > { %2394 = vmatpush1.bf16.msra.mxu1 %v6242_v28 }
 0x463   : > { %2395 = vmatprep.subr.bf16.mxu1 %v6250_v30 }
 0x466   : > { %2396 = vmatpush1.bf16.msra.mxu1 %v6248_v31 }
 0x467   : > { %2514 = vmatprep.subr.bf16.mxu1 %v6256_v32 }
 0x4fc   : > { %v1811_v35 = vpop.f32.mrb[24].mxu1 }
 0x4fd   : > { %v5803_v36 = vpop.f32.mrb[25].mxu1 }
 0x4fe   : > { %v1814_v37 = vpop.f32.mrb[26].mxu1 }
 0x4ff   : > { %v5804_v38 = vpop.f32.mrb[27].mxu1 }
 0x504   : > { %v1722_v39 = vpop.f32.mrb[16].mxu0 }
 0x505   : > { %v1812_v41 = vadd.f32 %v1811_v35, %v1722_v39  ;;  %v5783_v42 = vpop.f32.mrb[17].mxu0  ;;  %v6257_v35 = vld [vmem:[%s7795_s10 + $0x100] ss:$8 sps:$4 sm:$0xff]  }
 0x506   : > { %v1725_v43 = vpop.f32.mrb[18].mxu0 }
 0x507   : > { %v2040_v44 = vadd.f32 %v5035_v40, %v1812_v41  ;;  %v1815_v45 = vadd.f32 %v1814_v37, %v1725_v43  ;;  %v5784_v46 = vpop.f32.mrb[19].mxu0  ;;  %v6265_v37 = vld [vmem:[%s7795_s10 + $0x114] ss:$8 sps:$4 sm:$0xff]   ;;  %v6271_v41 = vld [vmem:[%s7795_s10 + $0x124] ss:$8 sps:$4 sm:$0xff]  }
 0x508   : > { %v6254_v43 = vld [vmem:[%s7795_s10] ss:$8 sps:$4 sm:$0xff]  }
 0x509   : > { %v2041_v47 = vadd.f32 %v5035_v40, %v1815_v45  ;;  %v2042_v48 = vmax.f32 %v2040_v44, 0.0 }
 0x50b   : > { %v2043_v49 = vmax.f32 %v2041_v47, 0.0  ;;  %v6262_v47 = vld [vmem:[%s7795_s10 + $0x14] ss:$8 sps:$4 sm:$0xff]  }
 0x50d   : > { %v5949_v50 = vpack.c.bf16 %v2043_v49, %v2042_v48  ;;  %v6269_v48 = vld [vmem:[%s7795_s10 + $0x120] ss:$8 sps:$4 sm:$0xff]   ;;  %v6277_v49 = vld [vmem:[%s7795_s10 + $0x134] ss:$8 sps:$4 sm:$0xff]  }
 0x51c   : > { %v2026_v51 = vpop.f32.mrb[28].mxu1 }
 0x51d   : > { %v5843_v52 = vpop.f32.mrb[29].mxu1 }
 0x51e   : > { %v2029_v53 = vpop.f32.mrb[30].mxu1  ;;  %v6275_v52 = vld [vmem:[%s7795_s10 + $0x130] ss:$8 sps:$4 sm:$0xff]  }
 0x51f   : > { %v5844_v54 = vpop.f32.mrb[31].mxu1 }
 0x524   : > { %v1937_v55 = vpop.f32.mrb[20].mxu0 }
 0x525   : > { %v2027_v56 = vadd.f32 %v2026_v51, %v1937_v55  ;;  %v5823_v57 = vpop.f32.mrb[21].mxu0  ;;  %v6268_v51 = vld [vmem:[%s7795_s10 + $0x24] ss:$8 sps:$4 sm:$0xff]  }
 0x526   : > { %v1940_v58 = vpop.f32.mrb[22].mxu0  ;;  %v6283_v55 = vld [vmem:[%s7795_s10 + $0x144] ss:$8 sps:$4 sm:$0xff]  }
 0x527   : > { %v2048_v59 = vadd.f32 %v5035_v40, %v2027_v56  ;;  %v2030_v60 = vadd.f32 %v2029_v53, %v1940_v58  ;;  %v5824_v61 = vpop.f32.mrb[23].mxu0  ;;  %v6266_v56 = vld [vmem:[%s7795_s10 + $0x20] ss:$8 sps:$4 sm:$0xff]   ;;  %v6274_v58 = vld [vmem:[%s7795_s10 + $0x34] ss:$8 sps:$4 sm:$0xff]  }
 0x528   : > { %v6272_v61 = vld [vmem:[%s7795_s10 + $0x30] ss:$8 sps:$4 sm:$0xff]  }
 0x529   : > { %v2049_v62 = vadd.f32 %v5035_v40, %v2030_v60  ;;  %v2050_v63 = vmax.f32 %v2048_v59, 0.0  ;;  %v6263_v40 = vld [vmem:[%s7795_s10 + $0x110] ss:$8 sps:$4 sm:$0xff]   ;;  %v6281_v59 = vld [vmem:[%s7795_s10 + $0x140] ss:$8 sps:$4 sm:$0xff]  }
 0x52a   : > { %v6289_v60 = vld [vmem:[%s7795_s10 + $0x154] ss:$8 sps:$4 sm:$0xff]  }
 0x52b   : > { %v2051_v1 = vmax.f32 %v2049_v62, 0.0  ;;  %v6280_v62 = vld [vmem:[%s7795_s10 + $0x44] ss:$8 sps:$4 sm:$0xff]  }
 0x52d   : > { %v5945_v2 = vpack.c.bf16 %v2051_v1, %v2050_v63  ;;  %v6287_v63 = vld [vmem:[%s7795_s10 + $0x150] ss:$8 sps:$4 sm:$0xff]   ;;  %v6295_v1 = vld [vmem:[%s7795_s10 + $0x164] ss:$8 sps:$4 sm:$0xff]  }
 0x52f   : > { %5946 = vmatprep.subr.bf16.mxu0 %v5945_v2 }
 0x530   : > { %5948 = vmatpush3.bf16.msra.mxu0 %v5945_v2  ;;  %v6278_v2 = vld [vmem:[%s7795_s10 + $0x40] ss:$8 sps:$4 sm:$0xff]  }
 0x531   : > { %5950 = vmatprep.subr.bf16.mxu0 %v5949_v50 }
 0x533   : > { %5850 = vmatmul.mubr.msk.f32.vlgmr.msra.gmra.mrb[6].mxu0 %vm2057_vm7, %v5037_v3  ;;  %v6286_v3 = vld [vmem:[%s7795_s10 + $0x54] ss:$8 sps:$4 sm:$0xff]  }
 0x534   : > { %5952 = vmatpush3.bf16.msra.mxu0 %v5949_v50  ;;  %5852 = vmatprep.mubr.msk.f32.mxu0 %vm2057_vm7, %v5038_v4  ;;  %v6260_v50 = vld [vmem:[%s7795_s10 + $0x10] ss:$8 sps:$4 sm:$0xff]   ;;  %v6293_v4 = vld [vmem:[%s7795_s10 + $0x160] ss:$8 sps:$4 sm:$0xff]  }
 0x535   : > { %2687 = vmatprep.subr.bf16.mxu0 %v6211_v5  ;;  %v6301_v5 = vld [vmem:[%s7795_s10 + $0x174] ss:$8 sps:$4 sm:$0xff]  }
 0x537   : > { %5853 = vmatmul.mubr.msk.f32.gmra.mrb[24].mxu0 %vm2057_vm7, %v5039_v6  ;;  %v6284_v6 = vld [vmem:[%s7795_s10 + $0x50] ss:$8 sps:$4 sm:$0xff]  }
 0x538   : > { %5859 = vmatprep.mubr.msk.f32.mxu0 %vm2057_vm7, %v2044_v7  ;;  %v6292_v7 = vld [vmem:[%s7795_s10 + $0x64] ss:$8 sps:$4 sm:$0xff]  }
 0x53b   : > { %5860 = vmatmul.mubr.msk.f32.vlgmr.msra.gmra.mrb[6].mxu0 %vm2057_vm7, %v2045_v8  ;;  %v6299_v8 = vld [vmem:[%s7795_s10 + $0x170] ss:$8 sps:$4 sm:$0xff]  }
 0x53c   : > { %5862 = vmatprep.mubr.msk.f32.mxu0 %vm2057_vm7, %v2046_v10  ;;  %2688 = vmatpush1.bf16.msra.mxu0 %v6209_v9  ;;  %v6290_v10 = vld [vmem:[%s7795_s10 + $0x60] ss:$8 sps:$4 sm:$0xff]  }
 0x53d   : > { %2689 = vmatprep.subr.bf16.mxu0 %v6217_v11  ;;  %v6298_v11 = vld [vmem:[%s7795_s10 + $0x74] ss:$8 sps:$4 sm:$0xff]  }
 0x53f   : > { %5863 = vmatmul.mubr.msk.f32.gmra.mrb[24].mxu0 %vm2057_vm7, %v2047_v12 }
 0x540   : > { %2690 = vmatpush1.bf16.msra.mxu0 %v6215_v13  ;;  %2719 = vmatprep.mubr.bf16.mxu0 %v6593_v29 }
 0x541   : > { %2691 = vmatprep.subr.bf16.mxu0 %v6223_v14  ;;  %v6296_v14 = vld [vmem:[%s7795_s10 + $0x70] ss:$8 sps:$4 sm:$0xff]  }
 0x544   : > { %2692 = vmatpush1.bf16.msra.mxu0 %v6221_v15 }
 0x545   : > { %2693 = vmatprep.subr.bf16.mxu0 %v6229_v16 }
 0x548   : > { %2694 = vmatpush1.bf16.msra.mxu0 %v6227_v17 }
 0x549   : > { %2695 = vmatprep.subr.bf16.mxu0 %v6235_v18  ;;  %v571_v18 = vlaneseq }
 0x54b   : > { %vm573_vm8 = vcmp.lt.s32.totalorder %v571_v18, 256 }
 0x54c   : > { %2696 = vmatpush1.bf16.msra.mxu0 %v6233_v19  ;;  %v2876_v19 = vshrl.u32 %v571_v18, 7  ;;  %575 = vst.msk [vmem:[#allocation6] ss:$8 sm:$0x3] %vm573_vm8, %v6591_v0  ;;  %v6330_v18 = vld [vmem:[#allocation12 + $0x1e8] sm:$0xff]  }
 0x54d   : > { %2697 = vmatprep.subr.bf16.mxu0 %v6241_v20  ;;  %578 = vst.msk [vmem:[#allocation6 + $0x81] ss:$8 sm:$0x3] %vm573_vm8, %v6591_v0 }
 0x54e   : > { %v2877_v20 = vsub.s32 0, %v2876_v19 }
 0x550   : > { %2698 = vmatpush1.bf16.msra.mxu0 %v6239_v21  ;;  %v2873_v21 = vld [vmem:[%s7797_s12] sm:$0x3] }
 0x551   : > { %2699 = vmatprep.subr.bf16.mxu0 %v6247_v22  ;;  %v2881_v22 = vsub.s32 1, %v2876_v19 }
 0x554   : > { %2700 = vmatpush1.bf16.msra.mxu0 %v6245_v23  ;;  %v2878_v23 = vrot.slane %v2873_v21, %v2877_v20 }
 0x555   : > { %2701 = vmatprep.subr.bf16.mxu0 %v6253_v24  ;;  %v2882_v24 = vrot.slane %v2873_v21, %v2881_v22 }
 0x558   : > { %2702 = vmatpush1.bf16.msra.mxu0 %v6251_v25 }
 0x559   : > { %2820 = vmatprep.subr.bf16.mxu0 %v6259_v27 }
 0x60e   : > { %v5861_v33 = vpop.f32.mrb[6].mxu0 }
 0x60f   : > { %2253 = vst [vmem:[#allocation5 + $0x9] sm:$0xff] %v5861_v33  ;;  %v2233_v34 = vpop.f32.mrb[7].mxu0 }
 0x610   : > { %2252 = vst [vmem:[#allocation5 + $0x1] sm:$0xff] %v2233_v34  ;;  %v7226_v36 = vpack.c.bf16 %v5861_v33, %v2233_v34 }
 0x612   : > { %v5864_v38 = vpop.f32.mrb[24].mxu0  ;;  %2720 = vmatmul.mubr.bf16.vlgmr.msra.gmra.mrb[28].mxu0 %v7226_v36 }
 0x613   : > { %2255 = vst [vmem:[#allocation5 + $0x19] sm:$0xff] %v5864_v38  ;;  %v2243_v39 = vpop.f32.mrb[25].mxu0  ;;  %2821 = vmatpush1.bf16.msra.mxu0 %v6257_v35  ;;  %2729 = vmatprep.mubr.bf16.mxu0 %v6593_v29 }
 0x614   : > { %2254 = vst [vmem:[#allocation5 + $0x11] sm:$0xff] %v2243_v39  ;;  %2822 = vmatprep.subr.bf16.mxu0 %v6265_v37  ;;  %v7239_v42 = vpack.c.bf16 %v5864_v38, %v2243_v39 }
 0x617   : > { %v2278_v44 = vld [vmem:[#allocation5] sm:$0xff]  ;;  %v2279_v45 = vld [vmem:[#allocation5 + $0x8] sm:$0xff]  ;;  %2823 = vmatpush1.bf16.msra.mxu0 %v6263_v40 }
 0x618   : > { %v2282_v46 = vpack.c.bf16 %v2279_v45, %v2278_v44  ;;  %2824 = vmatprep.subr.bf16.mxu0 %v6271_v41  ;;  %v2567_v12 = vld [vmem:[#allocation5 + $0x2] sm:$0xff] }
 0x61a   : > { %2414 = vmatmul.mubr.bf16.vlgmr.msra.gmra.mrb[32].mxu1 %v2282_v46  ;;  %2730 = vmatmul.mubr.bf16.gmra.mrb[32].mxu0 %v7239_v42  ;;  %v2570_v16 = vld [vmem:[#allocation5 + $0x1a] sm:$0xff] }
 0x61b   : > { %2515 = vmatpush1.bf16.msra.mxu1 %v6254_v43  ;;  %2423 = vmatprep.mubr.bf16.mxu1 %v6593_v29  ;;  %v2280_v53 = vld [vmem:[#allocation5 + $0x10] sm:$0xff]  ;;  %v2281_v54 = vld [vmem:[#allocation5 + $0x18] sm:$0xff] }
 0x61c   : > { %2516 = vmatprep.subr.bf16.mxu1 %v6262_v47  ;;  %2825 = vmatpush1.bf16.msra.mxu0 %v6269_v48  ;;  %v2283_v57 = vpack.c.bf16 %v2281_v54, %v2280_v53  ;;  %v2568_v9 = vld [vmem:[#allocation5 + $0xa] sm:$0xff]  ;;  %v2569_v15 = vld [vmem:[#allocation5 + $0x12] sm:$0xff] }
 0x61d   : > { %2826 = vmatprep.subr.bf16.mxu0 %v6277_v49  ;;  %2852 = vmatprep.mubr.bf16.mxu0 %v6593_v29  ;;  %v2571_v13 = vpack.c.bf16 %v2568_v9, %v2567_v12  ;;  %v2572_v17 = vpack.c.bf16 %v2570_v16, %v2569_v15 }
 0x61f   : > { %2517 = vmatpush1.bf16.msra.mxu1 %v6260_v50 }
 0x620   : > { %2518 = vmatprep.subr.bf16.mxu1 %v6268_v51  ;;  %2827 = vmatpush1.bf16.msra.mxu0 %v6275_v52 }
 0x621   : > { %2828 = vmatprep.subr.bf16.mxu0 %v6283_v55 }
 0x622   : > { %2424 = vmatmul.mubr.bf16.gmra.mrb[36].mxu1 %v2283_v57 }
 0x623   : > { %2519 = vmatpush1.bf16.msra.mxu1 %v6266_v56  ;;  %2546 = vmatprep.mubr.bf16.mxu1 %v6593_v29 }
 0x624   : > { %2520 = vmatprep.subr.bf16.mxu1 %v6274_v58  ;;  %2829 = vmatpush1.bf16.msra.mxu0 %v6281_v59 }
 0x625   : > { %2830 = vmatprep.subr.bf16.mxu0 %v6289_v60 }
 0x627   : > { %2521 = vmatpush1.bf16.msra.mxu1 %v6272_v61 }
 0x628   : > { %2522 = vmatprep.subr.bf16.mxu1 %v6280_v62  ;;  %2831 = vmatpush1.bf16.msra.mxu0 %v6287_v63 }
 0x629   : > { %2832 = vmatprep.subr.bf16.mxu0 %v6295_v1 }
 0x62b   : > { %2523 = vmatpush1.bf16.msra.mxu1 %v6278_v2 }
 0x62c   : > { %2524 = vmatprep.subr.bf16.mxu1 %v6286_v3  ;;  %2833 = vmatpush1.bf16.msra.mxu0 %v6293_v4 }
 0x62d   : > { %2834 = vmatprep.subr.bf16.mxu0 %v6301_v5 }
 0x62f   : > { %2525 = vmatpush1.bf16.msra.mxu1 %v6284_v6 }
 0x630   : > { %2526 = vmatprep.subr.bf16.mxu1 %v6292_v7  ;;  %2835 = vmatpush1.bf16.msra.mxu0 %v6299_v8  ;;  %v6302_v7 = vld [vmem:[#allocation12 + $0xc0] sm:$0xff]  }
 0x633   : > { %2527 = vmatpush1.bf16.msra.mxu1 %v6290_v10  ;;  %2853 = vmatmul.mubr.bf16.vlgmr.msra.gmra.mrb[28].mxu0 %v2571_v13  ;;  %v5160_v13 = vld [vmem:[%s7796_s11 + $0x40] sm:$0xff] }
 0x634   : > { %2528 = vmatprep.subr.bf16.mxu1 %v6298_v11  ;;  %2862 = vmatprep.mubr.bf16.mxu0 %v6593_v29 }
 0x637   : > { %2529 = vmatpush1.bf16.msra.mxu1 %v6296_v14  ;;  %v6303_v14 = vld [vmem:[#allocation12 + $0x80] sm:$0xff]  }
 0x63a   : > { %2547 = vmatmul.mubr.bf16.vlgmr.msra.gmra.mrb[32].mxu1 %v7226_v36 }
 0x63b   : > { %2556 = vmatprep.mubr.bf16.mxu1 %v6593_v29  ;;  %2863 = vmatmul.mubr.bf16.gmra.mrb[32].mxu0 %v2572_v17  ;;  %v6304_v17 = vld [vmem:[#allocation12 + $0xc8] sm:$0xff]  }
 0x63c   : > { %3022 = vmatprep.mubr.f32.mxu0 %v6591_v0 }
 0x642   : > { %2557 = vmatmul.mubr.bf16.gmra.mrb[36].mxu1 %v7239_v42 }
 0x643   : > { %3159 = vmatprep.mubr.f32.mxu1 %v6591_v0 }
 0x706   : > { %v2854_v25 = vpop.f32.mrb[28].mxu0 }
 0x707   : > { %v2909_v26 = vadd.f32 %v2878_v23, %v2854_v25  ;;  %v2856_v27 = vpop.f32.mrb[29].mxu0  ;;  %v6306_v25 = vld [vmem:[#allocation12 + $0xd0] sm:$0xff]  }
 0x708   : > { %v2910_v28 = vadd.f32 %v2882_v24, %v2856_v27  ;;  %v2858_v29 = vpop.f32.mrb[30].mxu0  ;;  %v5162_v27 = vld [vmem:[%s7796_s11 + $0x50] sm:$0xff] }
 0x709   : > { %v2911_v30 = vadd.f32 %v2878_v23, %v2858_v29  ;;  %v2860_v31 = vpop.f32.mrb[31].mxu0  ;;  %v2917_v33 = vmax.f32 %v2909_v26, 0.0  ;;  %v2901_v26 = vld [vmem:[%s7796_s11] sm:$0xff]  ;;  %v2902_v29 = vld [vmem:[%s7796_s11 + $0x8] sm:$0xff] }
 0x70a   : > { %v2912_v32 = vadd.f32 %v2882_v24, %v2860_v31  ;;  %v2918_v35 = vmax.f32 %v2910_v28, 0.0  ;;  %v6307_v28 = vld [vmem:[#allocation12 + $0x90] sm:$0xff]   ;;  %v2903_v31 = vld [vmem:[%s7796_s11 + $0x10] sm:$0xff] }
 0x70b   : > { %v2919_v34 = vmax.f32 %v2911_v30, 0.0  ;;  %v5163_v30 = vld [vmem:[%s7796_s11 + $0x58] sm:$0xff] }
 0x70c   : > { %v2920_v36 = vmax.f32 %v2912_v32, 0.0  ;;  %v5164_v32 = vld [vmem:[%s7796_s11 + $0x60] sm:$0xff] }
 0x70d   : > { %v2548_v37 = vpop.f32.mrb[32].mxu1  ;;  %v5955_v38 = vpack.c.bf16 %v2919_v34, %v2917_v33  ;;  %v2904_v33 = vld [vmem:[%s7796_s11 + $0x18] sm:$0xff]  ;;  %v5165_v34 = vld [vmem:[%s7796_s11 + $0x68] sm:$0xff] }
 0x70e   : > { %v2885_v39 = vadd.f32 %v2878_v23, %v2548_v37  ;;  %v2550_v40 = vpop.f32.mrb[33].mxu1  ;;  %v5953_v41 = vpack.c.bf16 %v2920_v36, %v2918_v35  ;;  %v2864_v42 = vpop.f32.mrb[32].mxu0  ;;  %v2905_v35 = vld [vmem:[%s7796_s11 + $0x20] sm:$0xff]  ;;  %v5166_v36 = vld [vmem:[%s7796_s11 + $0x70] sm:$0xff]  ;;  %v2906_v37 = vld [vmem:[%s7796_s11 + $0x28] sm:$0xff] }
 0x70f   : > { %v2886_v43 = vadd.f32 %v2882_v24, %v2550_v40  ;;  %v2552_v44 = vpop.f32.mrb[34].mxu1  ;;  %v2913_v45 = vadd.f32 %v2878_v23, %v2864_v42  ;;  %v2866_v46 = vpop.f32.mrb[33].mxu0  ;;  %v2908_v40 = vld [vmem:[%s7796_s11 + $0x38] sm:$0xff]  ;;  %v6311_v42 = vld [vmem:[#allocation12 + $0x180] sm:$0xff]  }
 0x710   : > { %v2887_v47 = vadd.f32 %v2878_v23, %v2552_v44  ;;  %v2554_v48 = vpop.f32.mrb[35].mxu1  ;;  %v2914_v49 = vadd.f32 %v2882_v24, %v2866_v46  ;;  %v2868_v50 = vpop.f32.mrb[34].mxu0  ;;  %5954 = vmatprep.subr.bf16.mxu0 %v5953_v41  ;;  %v2893_v54 = vmax.f32 %v2885_v39, 0.0  ;;  %v2907_v39 = vld [vmem:[%s7796_s11 + $0x30] sm:$0xff]  ;;  %v6310_v41 = vld [vmem:[#allocation12 + $0x1c0] sm:$0xff]   ;;  %v6309_v44 = vld [vmem:[#allocation12 + $0x98] sm:$0xff]  }
 0x711   : > { %v2888_v51 = vadd.f32 %v2882_v24, %v2554_v48  ;;  %v2915_v52 = vadd.f32 %v2878_v23, %v2868_v50  ;;  %v2870_v53 = vpop.f32.mrb[35].mxu0  ;;  %5956 = vmatpush1.bf16.msra.mxu0 %v5955_v38  ;;  %v2894_v57 = vmax.f32 %v2886_v43, 0.0  ;;  %v2921_v59 = vmax.f32 %v2913_v45, 0.0  ;;  %v5167_v38 = vld [vmem:[%s7796_s11 + $0x78] sm:$0xff]  ;;  %v6308_v43 = vld [vmem:[#allocation12 + $0xd8] sm:$0xff]   ;;  %v6314_v45 = vld [vmem:[#allocation12 + $0x1c8] sm:$0xff]  }
 0x712   : > { %v2895_v55 = vmax.f32 %v2887_v47, 0.0  ;;  %v2916_v56 = vadd.f32 %v2882_v24, %v2870_v53  ;;  %v2922_v62 = vmax.f32 %v2914_v49, 0.0  ;;  %v6315_v46 = vld [vmem:[#allocation12 + $0x188] sm:$0xff]   ;;  %v6312_v47 = vld [vmem:[#allocation12 + $0xe0] sm:$0xff]   ;;  %v6318_v49 = vld [vmem:[#allocation12 + $0x1d0] sm:$0xff]  }
 0x713   : > { %v2896_v58 = vmax.f32 %v2888_v51, 0.0  ;;  %v2923_v60 = vmax.f32 %v2915_v52, 0.0  ;;  %v6313_v48 = vld [vmem:[#allocation12 + $0xa0] sm:$0xff]   ;;  %v6319_v50 = vld [vmem:[#allocation12 + $0x190] sm:$0xff]   ;;  %v6316_v51 = vld [vmem:[#allocation12 + $0xe8] sm:$0xff]  }
 0x714   : > { %v5963_v61 = vpack.c.bf16 %v2895_v55, %v2893_v54  ;;  %v2924_v63 = vmax.f32 %v2916_v56, 0.0  ;;  %v6317_v52 = vld [vmem:[#allocation12 + $0xa8] sm:$0xff]   ;;  %v6322_v53 = vld [vmem:[#allocation12 + $0x1d8] sm:$0xff]   ;;  %v6320_v55 = vld [vmem:[#allocation12 + $0xf0] sm:$0xff]  }
 0x715   : > { %v5961_v1 = vpack.c.bf16 %v2896_v58, %v2894_v57  ;;  %v2558_v2 = vpop.f32.mrb[36].mxu1  ;;  %v5959_v3 = vpack.c.bf16 %v2923_v60, %v2921_v59  ;;  %v6323_v54 = vld [vmem:[#allocation12 + $0x198] sm:$0xff]   ;;  %v6321_v56 = vld [vmem:[#allocation12 + $0xb0] sm:$0xff]   ;;  %v6326_v57 = vld [vmem:[#allocation12 + $0x1e0] sm:$0xff]  }
 0x716   : > { %v2889_v4 = vadd.f32 %v2878_v23, %v2558_v2  ;;  %v2560_v5 = vpop.f32.mrb[37].mxu1  ;;  %v5957_v6 = vpack.c.bf16 %v2924_v63, %v2922_v62  ;;  %v6327_v58 = vld [vmem:[#allocation12 + $0x1a0] sm:$0xff]   ;;  %v6324_v59 = vld [vmem:[#allocation12 + $0xf8] sm:$0xff]   ;;  %v6335_v63 = vld [vmem:[#allocation12 + $0x1b0] sm:$0xff]  }
 0x717   : > { %v2890_v8 = vadd.f32 %v2882_v24, %v2560_v5  ;;  %v2562_v9 = vpop.f32.mrb[38].mxu1  ;;  %5962 = vmatprep.subr.bf16.mxu1 %v5961_v1  ;;  %v6325_v60 = vld [vmem:[#allocation12 + $0xb8] sm:$0xff]   ;;  %v6328_v62 = vld [vmem:[#allocation12 + $0x40] sm:$0xff]  }
 0x718   : > { %v2891_v10 = vadd.f32 %v2878_v23, %v2562_v9  ;;  %v2564_v11 = vpop.f32.mrb[39].mxu1  ;;  %5964 = vmatpush1.bf16.msra.mxu1 %v5963_v61  ;;  %5958 = vmatprep.subr.bf16.mxu0 %v5957_v6  ;;  %v2897_v15 = vmax.f32 %v2889_v4, 0.0  ;;  %v5161_v23 = vld [vmem:[%s7796_s11 + $0x48] sm:$0xff]  ;;  %v6331_v61 = vld [vmem:[#allocation12 + $0x1a8] sm:$0xff]   ;;  %v6338_v1 = vld [vmem:[#allocation12 + $0x1f8] sm:$0xff]  }
 0x719   : > { %v2892_v12 = vadd.f32 %v2882_v24, %v2564_v11  ;;  %5960 = vmatpush1.bf16.msra.mxu0 %v5959_v3  ;;  %v2898_v19 = vmax.f32 %v2890_v8, 0.0  ;;  %v6305_v24 = vld [vmem:[#allocation12 + $0x88] sm:$0xff]   ;;  %v6339_v2 = vld [vmem:[#allocation12 + $0x1b8] sm:$0xff]  }
 0x71a   : > { %v2899_v16 = vmax.f32 %v2891_v10, 0.0  ;;  %5425 = vmatprep.subr.bf16.mxu0 %v6302_v7 }
 0x71b   : > { %v2900_v20 = vmax.f32 %v2892_v12, 0.0 }
 0x71c   : > { %v5967_v21 = vpack.c.bf16 %v2899_v16, %v2897_v15  ;;  %5168 = vmatmul.mubr.msk.f32.vlgmr.msra.gmra.mrb[26].mxu0 %vm608_vm3, %v5160_v13 }
 0x71d   : > { %v5965_v22 = vpack.c.bf16 %v2900_v20, %v2898_v19  ;;  %3028 = vmatprep.mubr.f32.mxu0 %v6591_v0  ;;  %5426 = vmatpush3.bf16.msra.mxu0 %v6303_v14 }
 0x71e   : > { %5427 = vmatprep.subr.bf16.mxu0 %v6304_v17 }
 0x71f   : > { %5966 = vmatprep.subr.bf16.mxu1 %v5965_v22 }
 0x720   : > { %5968 = vmatpush1.bf16.msra.mxu1 %v5967_v21  ;;  %5169 = vmatmul.mubr.msk.f32.gmra.mrb[36].mxu0 %vm608_vm3, %v5161_v23 }
 0x721   : > { %3034 = vmatprep.mubr.f32.mxu0 %v6591_v0  ;;  %5428 = vmatpush3.bf16.msra.mxu0 %v6305_v24 }
 0x722   : > { %5429 = vmatprep.subr.bf16.mxu0 %v6306_v25  ;;  %5505 = vmatprep.subr.bf16.mxu1 %v6310_v41 }
 0x723   : > { %5176 = vmatmul.mubr.msk.f32.vlgmr.msra.gmra.mrb[22].mxu1 %vm608_vm3, %v2901_v26 }
 0x724   : > { %3165 = vmatprep.mubr.f32.mxu1 %v6591_v0  ;;  %5170 = vmatmul.mubr.msk.f32.gmra.mrb[38].mxu0 %vm608_vm3, %v5162_v27 }
 0x725   : > { %3040 = vmatprep.mubr.f32.mxu0 %v6591_v0  ;;  %5430 = vmatpush3.bf16.msra.mxu0 %v6307_v28 }
 0x726   : > { %5506 = vmatpush3.bf16.msra.mxu1 %v6311_v42  ;;  %5431 = vmatprep.subr.bf16.mxu0 %v6308_v43 }
 0x727   : > { %5177 = vmatmul.mubr.msk.f32.gmra.mrb[40].mxu1 %vm608_vm3, %v2902_v29  ;;  %5507 = vmatprep.subr.bf16.mxu1 %v6314_v45 }
 0x728   : > { %3171 = vmatprep.mubr.f32.mxu1 %v6591_v0  ;;  %5171 = vmatmul.mubr.msk.f32.gmra.mrb[40].mxu0 %vm608_vm3, %v5163_v30 }
 0x729   : > { %3046 = vmatprep.mubr.f32.mxu0 %v6591_v0  ;;  %5432 = vmatpush3.bf16.msra.mxu0 %v6309_v44 }
 0x72a   : > { %5508 = vmatpush3.bf16.msra.mxu1 %v6315_v46  ;;  %5433 = vmatprep.subr.bf16.mxu0 %v6312_v47 }
 0x72b   : > { %5178 = vmatmul.mubr.msk.f32.gmra.mrb[42].mxu1 %vm608_vm3, %v2903_v31  ;;  %5509 = vmatprep.subr.bf16.mxu1 %v6318_v49  ;;  %v6329_v49 = vld [vmem:[#allocation12] sm:$0xff]  }
 0x72c   : > { %3177 = vmatprep.mubr.f32.mxu1 %v6591_v0  ;;  %5172 = vmatmul.mubr.msk.f32.gmra.mrb[42].mxu0 %vm608_vm3, %v5164_v32 }
 0x72d   : > { %3052 = vmatprep.mubr.f32.mxu0 %v6591_v0  ;;  %5434 = vmatpush3.bf16.msra.mxu0 %v6313_v48 }
 0x72e   : > { %5510 = vmatpush3.bf16.msra.mxu1 %v6319_v50  ;;  %5435 = vmatprep.subr.bf16.mxu0 %v6316_v51 }
 0x72f   : > { %5179 = vmatmul.mubr.msk.f32.gmra.mrb[44].mxu1 %vm608_vm3, %v2904_v33  ;;  %5511 = vmatprep.subr.bf16.mxu1 %v6322_v53  ;;  %v6332_v53 = vld [vmem:[#allocation12 + $0x48] sm:$0xff]  }
 0x730   : > { %3183 = vmatprep.mubr.f32.mxu1 %v6591_v0  ;;  %5173 = vmatmul.mubr.msk.f32.gmra.mrb[44].mxu0 %vm608_vm3, %v5165_v34 }
 0x731   : > { %3058 = vmatprep.mubr.f32.mxu0 %v6591_v0  ;;  %5436 = vmatpush3.bf16.msra.mxu0 %v6317_v52 }
 0x732   : > { %5512 = vmatpush3.bf16.msra.mxu1 %v6323_v54  ;;  %5437 = vmatprep.subr.bf16.mxu0 %v6320_v55 }
 0x733   : > { %5180 = vmatmul.mubr.msk.f32.gmra.mrb[46].mxu1 %vm608_vm3, %v2905_v35  ;;  %5513 = vmatprep.subr.bf16.mxu1 %v6326_v57 }
 0x734   : > { %3189 = vmatprep.mubr.f32.mxu1 %v6591_v0  ;;  %5174 = vmatmul.mubr.msk.f32.gmra.mrb[46].mxu0 %vm608_vm3, %v5166_v36 }
 0x735   : > { %3064 = vmatprep.mubr.f32.mxu0 %v6591_v0  ;;  %5438 = vmatpush3.bf16.msra.mxu0 %v6321_v56 }
 0x736   : > { %5514 = vmatpush3.bf16.msra.mxu1 %v6327_v58  ;;  %5439 = vmatprep.subr.bf16.mxu0 %v6324_v59 }
 0x737   : > { %5181 = vmatmul.mubr.msk.f32.gmra.mrb[48].mxu1 %vm608_vm3, %v2906_v37  ;;  %5515 = vmatprep.subr.bf16.mxu1 %v6330_v18 }
 0x738   : > { %3195 = vmatprep.mubr.f32.mxu1 %v6591_v0  ;;  %5175 = vmatmul.mubr.msk.f32.gmra.mrb[48].mxu0 %vm608_vm3, %v5167_v38 }
 0x739   : > { %5440 = vmatpush3.bf16.msra.mxu0 %v6325_v60 }
 0x73a   : > { %5516 = vmatpush3.bf16.msra.mxu1 %v6331_v61  ;;  %5465 = vmatprep.subr.bf16.mxu0 %v6328_v62 }
 0x73b   : > { %5182 = vmatmul.mubr.msk.f32.gmra.mrb[50].mxu1 %vm608_vm3, %v2907_v39 }
 0x73c   : > { %3201 = vmatprep.mubr.f32.mxu1 %v6591_v0  ;;  %v6334_v0 = vld [vmem:[#allocation12 + $0x1f0] sm:$0xff]  }
 0x73d   : > { %5517 = vmatprep.subr.bf16.mxu1 %v6334_v0 }
 0x73e   : > { %5518 = vmatpush3.bf16.msra.mxu1 %v6335_v63 }
 0x73f   : > { %5183 = vmatmul.mubr.msk.f32.gmra.mrb[52].mxu1 %vm608_vm3, %v2908_v40  ;;  %5519 = vmatprep.subr.bf16.mxu1 %v6338_v1 }
 0x742   : > { %5520 = vmatpush3.bf16.msra.mxu1 %v6339_v2 }
 0x7ef   : > { %v3024_v3 = vpop.f32.mrb[26].mxu0 }
 0x7f0   : > { %v3026_v4 = vpop.f32.mrb[27].mxu0 }
 0x7f3   : > { %v3030_v5 = vpop.f32.mrb[36].mxu0 }
 0x7f4   : > { %v3032_v6 = vpop.f32.mrb[37].mxu0 }
 0x7f6   : > { %v3161_v7 = vpop.f32.mrb[22].mxu1 }
 0x7f7   : > { %v3162_v8 = vadd.f32 %v3161_v7, %v3024_v3  ;;  %v3163_v9 = vpop.f32.mrb[23].mxu1  ;;  %v3036_v10 = vpop.f32.mrb[38].mxu0  ;;  %v6333_v3 = vld [vmem:[#allocation12 + $0x8] sm:$0xff]  }
 0x7f8   : > { %v3164_v11 = vadd.f32 %v3163_v9, %v3026_v4  ;;  %v3038_v12 = vpop.f32.mrb[39].mxu0 }
 0x7f9   : > { %v3225_v13 = vrot.slane %v3162_v8, 7  ;;  %v6336_v8 = vld [vmem:[#allocation12 + $0x50] sm:$0xff]  }
 0x7fa   : > { %v3226_v14 = vrot.slane %v3164_v11, 7  ;;  %v3167_v15 = vpop.f32.mrb[40].mxu1 }
 0x7fb   : > { %3273 = vst [vmem:[#allocation6] sm:$0xfe] %v3225_v13  ;;  %v3168_v16 = vadd.f32 %v3167_v15, %v3030_v5  ;;  %v3169_v17 = vpop.f32.mrb[41].mxu1  ;;  %v3042_v19 = vpop.f32.mrb[40].mxu0 }
 0x7fc   : > { %3274 = vst [vmem:[#allocation6 + $0x8] sm:$0xfe] %v3226_v14  ;;  %v3170_v20 = vadd.f32 %v3169_v17, %v3032_v6  ;;  %v3044_v21 = vpop.f32.mrb[41].mxu0 }
 0x7fd   : > { %v3227_v22 = vrot.slane %v3168_v16, 7 }
 0x7fe   : > { %v3229_v23 = vrot.slane %v3170_v20, 7  ;;  %v3173_v24 = vpop.f32.mrb[42].mxu1 }
 0x7ff   : > { %v7415_v25 = vsel %vm3224_vm9, %v3225_v13, %v3227_v22  ;;  %v3174_v26 = vadd.f32 %v3173_v24, %v3036_v10  ;;  %v3175_v27 = vpop.f32.mrb[43].mxu1  ;;  %v3048_v28 = vpop.f32.mrb[42].mxu0 }
 0x800   : > { %v3230_v29 = vsel %vm3224_vm9, %v3226_v14, %v3229_v23  ;;  %v3176_v30 = vadd.f32 %v3175_v27, %v3038_v12  ;;  %v3050_v31 = vpop.f32.mrb[43].mxu0  ;;  %v6337_v27 = vld [vmem:[#allocation12 + $0x10] sm:$0xff]  }
 0x801   : > { %v3231_v32 = vrot.slane %v3174_v26, 7 }
 0x802   : > { %v3233_v33 = vrot.slane %v3176_v30, 7  ;;  %v3179_v34 = vpop.f32.mrb[44].mxu1  ;;  %v3351_v35 = vld [vmem:[#allocation6] sm:$0xff]  ;;  %v6340_v30 = vld [vmem:[#allocation12 + $0x58] sm:$0xff]  }
 0x803   : > { %v3291_v36 = vld [vmem:[#allocation6] sm:$0xfe]  ;;  %v3232_v37 = vsel %vm3224_vm9, %v3227_v22, %v3231_v32  ;;  %v3180_v38 = vadd.f32 %v3179_v34, %v3042_v19  ;;  %v3181_v39 = vpop.f32.mrb[45].mxu1  ;;  %v3054_v40 = vpop.f32.mrb[44].mxu0  ;;  %v3292_v41 = vld [vmem:[#allocation6 + $0x8] sm:$0xfe]  ;;  %v3353_v52 = vpack.c.bf16 %v7415_v25, %v3351_v35 }
 0x804   : > { %v3352_v42 = vld [vmem:[#allocation6 + $0x8] sm:$0xff]  ;;  %v3309_v43 = vpack.c.bf16 %v7415_v25, %v3291_v36  ;;  %v3234_v44 = vsel %vm3224_vm9, %v3229_v23, %v3233_v33  ;;  %v3182_v45 = vadd.f32 %v3181_v39, %v3044_v21  ;;  %v3056_v46 = vpop.f32.mrb[45].mxu0  ;;  %v3310_v47 = vpack.c.bf16 %v3230_v29, %v3292_v41  ;;  %v3791_v0 = vld [vmem:[#allocation6] sm:$0xfc] }
 0x805   : > { %v3354_v48 = vpack.c.bf16 %v3230_v29, %v3352_v42  ;;  %v3792_v50 = vld [vmem:[#allocation6 + $0x8] sm:$0xfc]  ;;  %v3235_v51 = vrot.slane %v3180_v38, 7  ;;  %v3795_v15 = vpack.c.bf16 %v7415_v25, %v3791_v0  ;;  %v6343_v0 = vld [vmem:[#allocation12 + $0x20] sm:$0xff]  }
 0x806   : > { %v3553_v54 = vshll.u32 %v3309_v43, 16  ;;  %v3237_v55 = vrot.slane %v3182_v45, 7  ;;  %v3185_v56 = vpop.f32.mrb[46].mxu1  ;;  %v3565_v57 = vshll.u32 %v3310_v47, 16  ;;  %v3796_v58 = vpack.c.bf16 %v3230_v29, %v3792_v50  ;;  %v6341_v45 = vld [vmem:[#allocation12 + $0x18] sm:$0xff]  }
 0x807   : > { %3516 = vmatprep.mubr.bf16.mxu0 %v3354_v48  ;;  %v3236_v59 = vsel %vm3224_vm9, %v3231_v32, %v3235_v51  ;;  %v3186_v60 = vadd.f32 %v3185_v56, %v3048_v28  ;;  %v3187_v18 = vpop.f32.mrb[47].mxu1  ;;  %v3060_v61 = vpop.f32.mrb[46].mxu0  ;;  %v3551_v5 = vshrl.u32 %v3309_v43, 16  ;;  %v3563_v9 = vshrl.u32 %v3310_v47, 16 }
 0x808   : > { %3517 = vmatmul.mubr.bf16.vlgmr.msra.gmra.mrb[52].mxu0 %v3353_v52  ;;  %v3555_v62 = vrot.slane %v3553_v54, 1  ;;  %v3238_v63 = vsel %vm3224_vm9, %v3233_v33, %v3237_v55  ;;  %v3188_v1 = vadd.f32 %v3187_v18, %v3050_v31  ;;  %v3062_v2 = vpop.f32.mrb[47].mxu0  ;;  %v7424_v4 = vpack.c.bf16 %v3236_v59, %v3232_v37 }
 0x809   : > { %5466 = vmatpush3.bf16.msra.mxu0 %v6329_v49  ;;  %v3239_v6 = vrot.slane %v3186_v60, 7  ;;  %v7426_v7 = vpack.c.bf16 %v3238_v63, %v3234_v44  ;;  %v3567_v10 = vrot.slane %v3565_v57, 1  ;;  %v4040_v14 = vrot.slane %v3796_v58, 1  ;;  %v6342_v49 = vld [vmem:[#allocation12 + $0x60] sm:$0xff]  }
 0x80a   : > { %5467 = vmatprep.subr.bf16.mxu0 %v6332_v53  ;;  %v3241_v11 = vrot.slane %v3188_v1, 7  ;;  %v3191_v12 = vpop.f32.mrb[48].mxu1  ;;  %v3558_v13 = vshll.u32 %v7424_v4, 16  ;;  %v3556_v22 = vor.u32 %v3555_v62, %v3551_v5  ;;  %v4038_v33 = vrot.slane %v7424_v4, 1 }
 0x80b   : > { %v3240_v16 = vsel %vm3224_vm9, %v3235_v51, %v3239_v6  ;;  %v3192_v17 = vadd.f32 %v3191_v12, %v3054_v40  ;;  %v3193_v19 = vpop.f32.mrb[49].mxu1  ;;  %v3066_v20 = vpop.f32.mrb[48].mxu0  ;;  %3524 = vmatprep.mubr.bf16.mxu0 %v7426_v7  ;;  %v3570_v21 = vshll.u32 %v7426_v7, 16  ;;  %v4041_v29 = vrot.slane %v7426_v7, 1 }
 0x80c   : > { %v3242_v23 = vsel %vm3224_vm9, %v3237_v55, %v3241_v11  ;;  %v3194_v24 = vadd.f32 %v3193_v19, %v3056_v46  ;;  %v3068_v26 = vpop.f32.mrb[49].mxu0  ;;  %v3560_v28 = vrot.slane %v3558_v13, 1  ;;  %v3568_v31 = vor.u32 %v3567_v10, %v3563_v9  ;;  %v6345_v13 = vld [vmem:[#allocation12 + $0x28] sm:$0xff]  }
 0x80d   : > { %5468 = vmatpush3.bf16.msra.mxu0 %v6333_v3  ;;  %v3243_v25 = vrot.slane %v3192_v17, 7  ;;  %v3572_v32 = vrot.slane %v3570_v21, 1  ;;  %v7440_v37 = vsel %vm4036_vm11, %v4040_v14, %v4041_v29  ;;  %v4037_v42 = vrot.slane %v3795_v15, 1  ;;  %v6344_v3 = vld [vmem:[#allocation12 + $0x68] sm:$0xff]  }
 0x80e   : > { %5469 = vmatprep.subr.bf16.mxu0 %v6336_v8  ;;  %v3245_v34 = vrot.slane %v3194_v24, 7  ;;  %v3197_v35 = vpop.f32.mrb[50].mxu1  ;;  %v7437_v36 = vsel %vm3549_vm10, %v3556_v22, %v3560_v28  ;;  %v3574_v50 = vshrl.u32 %v7424_v4, 16  ;;  %v3582_v54 = vshrl.u32 %v7426_v7, 16  ;;  %v6347_v24 = vld [vmem:[#allocation12 + $0x30] sm:$0xff]  }
 0x80f   : > { %v3244_v38 = vsel %vm3224_vm9, %v3239_v6, %v3243_v25  ;;  %v3198_v39 = vadd.f32 %v3197_v35, %v3060_v61  ;;  %v3199_v40 = vpop.f32.mrb[51].mxu1  ;;  %v7445_v41 = vsel %vm3549_vm10, %v3568_v31, %v3572_v32  ;;  %v7452_v51 = vsel %vm4036_vm11, %v4037_v42, %v4038_v33  ;;  %v6350_v42 = vld [vmem:[#allocation12 + $0x140] sm:$0xff]  }
 0x810   : > { %3525 = vmatmul.mubr.bf16.gmra.mrb[56].mxu0 %v7424_v4  ;;  %v3246_v43 = vsel %vm3224_vm9, %v3241_v11, %v3245_v34  ;;  %v3200_v44 = vadd.f32 %v3199_v40, %v3062_v2  ;;  %3993 = vmatprep.mubr.bf16.mxu1 %v7445_v41  ;;  %v3313_v46 = vpack.c.bf16 %v3244_v38, %v3240_v16  ;;  %v6346_v16 = vld [vmem:[#allocation12 + $0x70] sm:$0xff]  }
 0x811   : > { %5470 = vmatpush3.bf16.msra.mxu0 %v6337_v27  ;;  %v3247_v47 = vrot.slane %v3198_v39, 7  ;;  %3994 = vmatmul.mubr.bf16.vlgmr.msra.gmra.mrb[56].mxu1 %v7437_v36  ;;  %v3314_v48 = vpack.c.bf16 %v3246_v43, %v3242_v23  ;;  %v3576_v18 = vor.u32 %v3574_v50, %v3560_v28  ;;  %v3584_v4 = vor.u32 %v3582_v54, %v3572_v32  ;;  %v6349_v39 = vld [vmem:[#allocation12 + $0x38] sm:$0xff]   ;;  %v6353_v54 = vld [vmem:[#allocation12 + $0x108] sm:$0xff]  }
 0x812   : > { %5471 = vmatprep.subr.bf16.mxu0 %v6340_v30  ;;  %v3249_v52 = vrot.slane %v3200_v44, 7  ;;  %v3203_v53 = vpop.f32.mrb[52].mxu1  ;;  %v3578_v55 = vshll.u32 %v3313_v46, 16  ;;  %v4043_v56 = vrot.slane %v3313_v46, 1  ;;  %v3590_v17 = vshrl.u32 %v3313_v46, 16 }
 0x813   : > { %v3248_v57 = vsel %vm3224_vm9, %v3243_v25, %v3247_v47  ;;  %v3204_v58 = vadd.f32 %v3203_v53, %v3066_v20  ;;  %v3205_v59 = vpop.f32.mrb[53].mxu1  ;;  %3532 = vmatprep.mubr.bf16.mxu0 %v3314_v48  ;;  %v3586_v60 = vshll.u32 %v3314_v48, 16  ;;  %v4045_v1 = vrot.slane %v3314_v48, 1 }
 0x814   : > { %v3250_v61 = vsel %vm3224_vm9, %v3245_v34, %v3249_v52  ;;  %v3206_v62 = vadd.f32 %v3205_v59, %v3068_v26  ;;  %v3580_v63 = vrot.slane %v3578_v55, 1  ;;  %v7458_v6 = vsel %vm4036_vm11, %v4038_v33, %v4043_v56  ;;  %v6357_v59 = vld [vmem:[#allocation12 + $0x118] sm:$0xff]  }
 0x815   : > { %5472 = vmatpush3.bf16.msra.mxu0 %v6341_v45  ;;  %v3251_v2 = vrot.slane %v3204_v58, 7  ;;  %v3588_v5 = vrot.slane %v3586_v60, 1  ;;  %v7464_v9 = vsel %vm4036_vm11, %v4041_v29, %v4045_v1  ;;  %v3598_v21 = vshrl.u32 %v3314_v48, 16  ;;  %v6348_v29 = vld [vmem:[#allocation12 + $0x78] sm:$0xff]   ;;  %v6351_v48 = vld [vmem:[#allocation12 + $0x100] sm:$0xff]  }
 0x816   : > { %5473 = vmatprep.subr.bf16.mxu0 %v6342_v49  ;;  %v3253_v7 = vrot.slane %v3206_v62, 7  ;;  %v7461_v8 = vsel %vm3549_vm10, %v3576_v18, %v3580_v63  ;;  %v3592_v26 = vor.u32 %v3590_v17, %v3580_v63  ;;  %v6352_v49 = vld [vmem:[#allocation12 + $0x148] sm:$0xff]   ;;  %v6356_v58 = vld [vmem:[#allocation12 + $0x158] sm:$0xff]   ;;  %v6359_v60 = vld [vmem:[#allocation12 + $0x120] sm:$0xff]  }
 0x817   : > { %v3252_v10 = vsel %vm3224_vm9, %v3247_v47, %v3251_v2  ;;  %3289 = vst [vmem:[#allocation6 + $0x80] sm:$0x1] %v3251_v2  ;;  %v3589_v11 = vsel %vm3549_vm10, %v3584_v4, %v3588_v5  ;;  %v3600_v25 = vor.u32 %v3598_v21, %v3588_v5  ;;  %v6360_v18 = vld [vmem:[#allocation12 + $0x168] sm:$0xff]   ;;  %v6362_v62 = vld [vmem:[#allocation12 + $0x170] sm:$0xff]   ;;  %v6364_v63 = vld [vmem:[#allocation12 + $0x178] sm:$0xff]  }
 0x818   : > { %3533 = vmatmul.mubr.bf16.gmra.mrb[60].mxu0 %v3313_v46  ;;  %v3254_v12 = vsel %vm3224_vm9, %v3249_v52, %v3253_v7  ;;  %3290 = vst [vmem:[#allocation6 + $0x88] sm:$0x1] %v3253_v7  ;;  %4001 = vmatprep.mubr.bf16.mxu1 %v3589_v11  ;;  %v7469_v14 = vpack.c.bf16 %v3252_v10, %v3248_v57  ;;  %v6355_v57 = vld [vmem:[#allocation12 + $0x110] sm:$0xff]  }
 0x819   : > { %5474 = vmatpush3.bf16.msra.mxu0 %v6343_v0  ;;  %4002 = vmatmul.mubr.bf16.gmra.mrb[60].mxu1 %v7461_v8  ;;  %v7472_v15 = vpack.c.bf16 %v3254_v12, %v3250_v61  ;;  %v6361_v61 = vld [vmem:[#allocation12 + $0x128] sm:$0xff]   ;;  %v6363_v0 = vld [vmem:[#allocation12 + $0x130] sm:$0xff]  }
 0x81a   : > { %5475 = vmatprep.subr.bf16.mxu0 %v6344_v3  ;;  %v3594_v19 = vshll.u32 %v7469_v14, 16  ;;  %v4047_v20 = vrot.slane %v7469_v14, 1  ;;  %v3606_v50 = vshrl.u32 %v7469_v14, 16 }
 0x81b   : > { %3540 = vmatprep.mubr.bf16.mxu0 %v7472_v15  ;;  %v3602_v22 = vshll.u32 %v7472_v15, 16  ;;  %v4049_v23 = vrot.slane %v7472_v15, 1  ;;  %v3614_v44 = vshrl.u32 %v7472_v15, 16 }
 0x81c   : > { %v3596_v27 = vrot.slane %v3594_v19, 1  ;;  %v7482_v28 = vsel %vm4036_vm11, %v4043_v56, %v4047_v20  ;;  %v6354_v56 = vld [vmem:[#allocation12 + $0x150] sm:$0xff]  }
 0x81d   : > { %5476 = vmatpush3.bf16.msra.mxu0 %v6345_v13  ;;  %v3604_v30 = vrot.slane %v3602_v22, 1  ;;  %v7487_v31 = vsel %vm4036_vm11, %v4045_v1, %v4049_v23  ;;  %v6365_v1 = vld [vmem:[#allocation12 + $0x138] sm:$0xff]  }
 0x81e   : > { %5477 = vmatprep.subr.bf16.mxu0 %v6346_v16  ;;  %v3597_v32 = vsel %vm3549_vm10, %v3592_v26, %v3596_v27  ;;  %v3307_v33 = vld [vmem:[#allocation6 + $0x80] sm:$0x1]  ;;  %v3608_v53 = vor.u32 %v3606_v50, %v3596_v27 }
 0x81f   : > { %v3605_v34 = vsel %vm3549_vm10, %v3600_v25, %v3604_v30  ;;  %v3308_v35 = vld [vmem:[#allocation6 + $0x88] sm:$0x1]  ;;  %v3317_v38 = vpack.c.bf16 %v3307_v33, %v3307_v33  ;;  %v3616_v46 = vor.u32 %v3614_v44, %v3604_v30  ;;  %v3793_v5 = vld [vmem:[#allocation6 + $0x80] sm:$0x3] }
 0x820   : > { %3541 = vmatmul.mubr.bf16.gmra.mrb[64].mxu0 %v7469_v14  ;;  %v3318_v40 = vpack.c.bf16 %v3308_v35, %v3308_v35  ;;  %4009 = vmatprep.mubr.bf16.mxu1 %v3605_v34  ;;  %v3794_v2 = vld [vmem:[#allocation6 + $0x88] sm:$0x3]  ;;  %v3797_v7 = vpack.c.bf16 %v3793_v5, %v3793_v5 }
 0x821   : > { %5478 = vmatpush3.bf16.msra.mxu0 %v6347_v24  ;;  %3758 = vmatprep.mubr.bf16.mxu0 %v7445_v41  ;;  %v3610_v43 = vshll.u32 %v3317_v38, 16  ;;  %v3798_v3 = vpack.c.bf16 %v3794_v2, %v3794_v2 }
 0x822   : > { %5479 = vmatprep.subr.bf16.mxu0 %v6348_v29  ;;  %4010 = vmatmul.mubr.bf16.gmra.mrb[64].mxu1 %v3597_v32  ;;  %v3618_v45 = vshll.u32 %v3318_v40, 16 }
 0x823   : > { %v3612_v52 = vrot.slane %v3610_v43, 1  ;;  %v4053_v4 = vrot.slane %v3798_v3, 1 }
 0x824   : > { %v3620_v47 = vrot.slane %v3618_v45, 1 }
 0x825   : > { %5480 = vmatpush3.bf16.msra.mxu0 %v6349_v39  ;;  %v3613_v55 = vsel %vm3549_vm10, %v3608_v53, %v3612_v52 }
 0x826   : > { %5545 = vmatprep.subr.bf16.mxu0 %v6350_v42  ;;  %v3621_v41 = vsel %vm3549_vm10, %v3616_v46, %v3620_v47 }
 0x827   : > { %4017 = vmatprep.mubr.bf16.mxu1 %v3621_v41 }
 0x828   : > { %3759 = vmatmul.mubr.bf16.vlgmr.msra.gmra.mrb[68].mxu0 %v7437_v36  ;;  %v6358_v36 = vld [vmem:[#allocation12 + $0x160] sm:$0xff]  }
 0x829   : > { %3766 = vmatprep.mubr.bf16.mxu0 %v3589_v11  ;;  %5546 = vmatpush3.bf16.msra.mxu0 %v6351_v48 }
 0x82a   : > { %5547 = vmatprep.subr.bf16.mxu0 %v6352_v49  ;;  %4018 = vmatmul.mubr.bf16.gmra.mrb[68].mxu1 %v3613_v55 }
 0x82d   : > { %5548 = vmatpush3.bf16.msra.mxu0 %v6353_v54 }
 0x82e   : > { %5549 = vmatprep.subr.bf16.mxu0 %v6354_v56 }
 0x830   : > { %3767 = vmatmul.mubr.bf16.gmra.mrb[72].mxu0 %v7461_v8  ;;  %v4051_v8 = vrot.slane %v3797_v7, 1 }
 0x831   : > { %3774 = vmatprep.mubr.bf16.mxu0 %v3605_v34  ;;  %5550 = vmatpush3.bf16.msra.mxu0 %v6355_v57 }
 0x832   : > { %5551 = vmatprep.subr.bf16.mxu0 %v6356_v58 }
 0x835   : > { %5552 = vmatpush3.bf16.msra.mxu0 %v6357_v59  ;;  %v7538_v59 = vld [vmem:[%s7842_s16] ss:$0 sm:$0xff]  ;;  %s554_s16 = sand.u32 1, %s7843_s23  }
 0x836   : > { %5553 = vmatprep.subr.bf16.mxu0 %v6358_v36  ;;  %s4896_s18 = sshll.u32 %s554_s16, 7  ;;  %s7744_s25 = scalar_lea.sflag [#allocation9], %s554_s16 }
 0x837   : > { %s7715_s26 = scalar_lea.vmem [#allocation13], %s4896_s18 }
 0x838   : > { %3775 = vmatmul.mubr.bf16.gmra.mrb[76].mxu0 %v3597_v32  ;;  %s4793_s15 = sshll.u32 %s7715_s26, 4  ;;  %s7738_s15 = int_to_ptr.vmem [resolvable:$true] %s4793_s15 }
 0x839   : > { %3782 = vmatprep.mubr.bf16.mxu0 %v3621_v41  ;;  %5554 = vmatpush3.bf16.msra.mxu0 %v6359_v60  ;;  %s6514_s28 = scalar_lea.vmem %s7738_s15, 2048 }
 0x83a   : > { %5555 = vmatprep.subr.bf16.mxu0 %v6360_v18  ;;  %p6515_p12 = scmp.ne.s32.totalorder %s7738_s15, %s6514_s28 }
 0x83c   : > { %p6516_p8 = pnand %p6515_p12, %p7846_p7 }
 0x83d   : > { %5556 = vmatpush3.bf16.msra.mxu0 %v6361_v61 }
 0x83e   : > { %5557 = vmatprep.subr.bf16.mxu0 %v6362_v62  ;;  %p6517_p11 = pneg %p6516_p8 }
 0x840   : > { %3783 = vmatmul.mubr.bf16.gmra.mrb[80].mxu0 %v3613_v55 }
 0x841   : > { %5558 = vmatpush3.bf16.msra.mxu0 %v6363_v0  ;;  %4191 = vmatprep.mubr.bf16.mxu0 %v7440_v37  ;;  %v4054_v37 = vsel %vm4036_vm11, %v4049_v23, %v4053_v4 }
 0x842   : > { %5559 = vmatprep.subr.bf16.mxu0 %v6364_v63 }
 0x845   : > { %5560 = vmatpush3.bf16.msra.mxu0 %v6365_v1 }
 0x848   : > { %4192 = vmatmul.mubr.bf16.vlgmr.msra.gmra.mrb[84].mxu0 %v7452_v51  ;;  %v4052_v51 = vsel %vm4036_vm11, %v4047_v20, %v4051_v8 }
 0x849   : > { %4199 = vmatprep.mubr.bf16.mxu0 %v7464_v9  ;;  %v5265_v9 = vld [vmem:[%s7840_s24 + $0x80] sm:$0xff]  ;;  %s6518_s24 = sshll.u32 %s6594_s30, 4  ;;  %s6519_s24 = int_to_ptr.vmem [resolvable:$false] %s6518_s24 }
 0x84a   : > { %5881 = vmatprep.mubr.msk.f32.mxu1 %vm4376_vm12, %v5265_v9  ;;  %s6520_s29 = scalar_lea.vmem %s6519_s24, 4096  ;;  %p6521_p13 = scmp.lt.s32.totalorder %s7738_s15, %s6519_s24 }
 0x84b   : > { %p6522_p1 = scmp.lt.s32.totalorder %s6520_s29, %s6514_s28 }
 0x84d   : > { %p6523_p6 = por %p6522_p1, %p6521_p13 }
 0x84f   : > { %p6524_p9 = pnand %p6523_p6, %p6517_p11 }
 0x850   : > { %4200 = vmatmul.mubr.bf16.gmra.mrb[88].mxu0 %v7458_v6 }
 0x851   : > { %4207 = vmatprep.mubr.bf16.mxu0 %v7487_v31 }
 0x858   : > { %4208 = vmatmul.mubr.bf16.gmra.mrb[92].mxu0 %v7482_v28 }
 0x859   : > { %4215 = vmatprep.mubr.bf16.mxu0 %v4054_v37 }
 0x860   : > { %4216 = vmatmul.mubr.bf16.gmra.mrb[96].mxu0 %v4052_v51 }
 0x8db   : > { %v5441_v6 = vpop.f32.mrb[52].mxu0 }
 0x8dc   : > { %v5442_v10 = vpop.f32.mrb[53].mxu0 }
 0x8dd   : > { %v5443_v11 = vadd.f32 %v5442_v10, %v5441_v6  ;;  %v5444_v12 = vpop.f32.mrb[54].mxu0 }
 0x8de   : > { %v5445_v13 = vpop.f32.mrb[55].mxu0 }
 0x8df   : > { %v5446_v15 = vadd.f32 %v5445_v13, %v5444_v12 }
 0x8e3   : > { %v5447_v16 = vpop.f32.mrb[56].mxu0 }
 0x8e4   : > { %v5448_v17 = vpop.f32.mrb[57].mxu0  ;;  %v5521_v21 = vpop.f32.mrb[56].mxu1 }
 0x8e5   : > { %v5449_v19 = vadd.f32 %v5448_v17, %v5447_v16  ;;  %v5450_v14 = vpop.f32.mrb[58].mxu0  ;;  %v5522_v22 = vpop.f32.mrb[57].mxu1 }
 0x8e6   : > { %v5451_v20 = vpop.f32.mrb[59].mxu0  ;;  %v7515_v24 = vadd.f32 %v5522_v22, %v5521_v21  ;;  %v5524_v26 = vpop.f32.mrb[58].mxu1 }
 0x8e7   : > { %v5452_v23 = vadd.f32 %v5451_v20, %v5450_v14  ;;  %v5525_v27 = vpop.f32.mrb[59].mxu1 }
 0x8e8   : > { %v7517_v28 = vadd.f32 %v5525_v27, %v5524_v26 }
 0x8eb   : > { %v5453_v29 = vpop.f32.mrb[60].mxu0 }
 0x8ec   : > { %v5454_v25 = vpop.f32.mrb[61].mxu0  ;;  %v5527_v32 = vpop.f32.mrb[60].mxu1 }
 0x8ed   : > { %v7519_v30 = vadd.f32 %v5454_v25, %v5453_v29  ;;  %v5456_v31 = vpop.f32.mrb[62].mxu0  ;;  %v5528_v34 = vpop.f32.mrb[61].mxu1 }
 0x8ee   : > { %v5457_v33 = vpop.f32.mrb[63].mxu0  ;;  %v7523_v38 = vadd.f32 %v5528_v34, %v5527_v32  ;;  %v5530_v39 = vpop.f32.mrb[62].mxu1 }
 0x8ef   : > { %v7521_v35 = vadd.f32 %v5457_v33, %v5456_v31  ;;  %v5531_v40 = vpop.f32.mrb[63].mxu1 }
 0x8f0   : > { %v7525_v42 = vadd.f32 %v5531_v40, %v5530_v39 }
 0x8f3   : > { %v5459_v43 = vpop.f32.mrb[64].mxu0 }
 0x8f4   : > { %v5460_v44 = vpop.f32.mrb[65].mxu0 }
 0x8f5   : > { %v7527_v45 = vadd.f32 %v5460_v44, %v5459_v43  ;;  %v5462_v46 = vpop.f32.mrb[66].mxu0  ;;  %v5533_v48 = vpop.f32.mrb[64].mxu1 }
 0x8f6   : > { %v5463_v47 = vpop.f32.mrb[67].mxu0  ;;  %v5534_v50 = vpop.f32.mrb[65].mxu1 }
 0x8f7   : > { %v7529_v49 = vadd.f32 %v5463_v47, %v5462_v46  ;;  %v7531_v52 = vadd.f32 %v5534_v50, %v5533_v48  ;;  %v5536_v41 = vpop.f32.mrb[66].mxu1 }
 0x8f8   : > { %v5537_v53 = vpop.f32.mrb[67].mxu1 }
 0x8f9   : > { %v7533_v54 = vadd.f32 %v5537_v53, %v5536_v41 }
 0x8fb   : > { %v5481_v55 = vpop.f32.mrb[68].mxu0 }
 0x8fc   : > { %v5482_v56 = vpop.f32.mrb[69].mxu0 }
 0x8fd   : > { %v5483_v57 = vadd.f32 %v5482_v56, %v5481_v55  ;;  %v5484_v58 = vpop.f32.mrb[70].mxu0  ;;  %v5539_v60 = vpop.f32.mrb[68].mxu1 }
 0x8fe   : > { %v5485_v36 = vpop.f32.mrb[71].mxu0  ;;  %v5540_v62 = vpop.f32.mrb[69].mxu1 }
 0x8ff   : > { %v3761_v18 = vadd.f32 %v5483_v57, %v5443_v11  ;;  %v5486_v61 = vadd.f32 %v5485_v36, %v5484_v58  ;;  %v7540_v0 = vadd.f32 %v5540_v62, %v5539_v60  ;;  %v5542_v63 = vpop.f32.mrb[70].mxu1 }
 0x900   : > { %v5543_v3 = vpop.f32.mrb[71].mxu1 }
 0x901   : > { %v4231_v1 = vadd.f32 %v7538_v59, %v3761_v18  ;;  %v3764_v2 = vadd.f32 %v5486_v61, %v5446_v15  ;;  %v7543_v4 = vadd.f32 %v5543_v3, %v5542_v63 }
 0x903   : > { %v5249_v5 = vmul.f32 -1.442695, %v4231_v1  ;;  %v4232_v7 = vadd.f32 %v7538_v59, %v3764_v2  ;;  %v5487_v37 = vpop.f32.mrb[72].mxu0 }
 0x904   : > { %v5488_v8 = vpop.f32.mrb[73].mxu0 }
 0x905   : > { %6366 = vpow2.f32 %v5249_v5  ;;  %v5250_v51 = vmul.f32 -1.442695, %v4232_v7  ;;  %v5489_v6 = vadd.f32 %v5488_v8, %v5487_v37  ;;  %v5490_v9 = vpop.f32.mrb[74].mxu0 }
 0x906   : > { %v5491_v10 = vpop.f32.mrb[75].mxu0 }
 0x907   : > { %6368 = vpow2.f32 %v5250_v51  ;;  %v3769_v11 = vadd.f32 %v5489_v6, %v5449_v19  ;;  %v5492_v12 = vadd.f32 %v5491_v10, %v5490_v9 }
 0x909   : > { %v4233_v13 = vadd.f32 %v7538_v59, %v3769_v11  ;;  %v3772_v16 = vadd.f32 %v5492_v12, %v5452_v23 }
 0x90b   : > { %v5251_v15 = vmul.f32 -1.442695, %v4233_v13  ;;  %v4234_v17 = vadd.f32 %v7538_v59, %v3772_v16  ;;  %v5493_v14 = vpop.f32.mrb[76].mxu0 }
 0x90c   : > { %v5494_v21 = vpop.f32.mrb[77].mxu0 }
 0x90d   : > { %6370 = vpow2.f32 %v5251_v15  ;;  %v5252_v20 = vmul.f32 -1.442695, %v4234_v17  ;;  %v5495_v22 = vadd.f32 %v5494_v21, %v5493_v14  ;;  %v5496_v26 = vpop.f32.mrb[78].mxu0 }
 0x90e   : > { %v5497_v27 = vpop.f32.mrb[79].mxu0 }
 0x90f   : > { %v6367_v29 = vpop.eup %6366  ;;  %6372 = vpow2.f32 %v5252_v20  ;;  %v3777_v25 = vadd.f32 %v5495_v22, %v7519_v30  ;;  %v5498_v31 = vadd.f32 %v5497_v27, %v5496_v26 }
 0x910   : > { %v4263_v19 = vadd.f32 1.0, %v6367_v29 }
 0x911   : > { %v6369_v32 = vpop.eup %6368  ;;  %v4235_v33 = vadd.f32 %v7538_v59, %v3777_v25  ;;  %v3780_v23 = vadd.f32 %v5498_v31, %v7521_v35 }
 0x912   : > { %v4264_v34 = vadd.f32 1.0, %v6369_v32  ;;  %6374 = vrcp.f32 %v4263_v19 }
 0x913   : > { %v5253_v39 = vmul.f32 -1.442695, %v4235_v33  ;;  %v4236_v40 = vadd.f32 %v7538_v59, %v3780_v23  ;;  %v5499_v43 = vpop.f32.mrb[80].mxu0 }
 0x914   : > { %6376 = vrcp.f32 %v4264_v34  ;;  %v5500_v44 = vpop.f32.mrb[81].mxu0 }
 0x915   : > { %6378 = vpow2.f32 %v5253_v39  ;;  %v5254_v46 = vmul.f32 -1.442695, %v4236_v40  ;;  %v5501_v47 = vadd.f32 %v5500_v44, %v5499_v43  ;;  %v5502_v48 = vpop.f32.mrb[82].mxu0 }
 0x916   : > { %v5503_v30 = vpop.f32.mrb[83].mxu0 }
 0x917   : > { %v6371_v50 = vpop.eup %6370  ;;  %6380 = vpow2.f32 %v5254_v46  ;;  %v3785_v41 = vadd.f32 %v5501_v47, %v7527_v45  ;;  %v5504_v53 = vadd.f32 %v5503_v30, %v5502_v48 }
 0x918   : > { %v4265_v55 = vadd.f32 1.0, %v6371_v50 }
 0x919   : > { %v6373_v35 = vpop.eup %6372  ;;  %v4237_v56 = vadd.f32 %v7538_v59, %v3785_v41  ;;  %v3788_v57 = vadd.f32 %v5504_v53, %v7529_v49 }
 0x91a   : > { %v4266_v58 = vadd.f32 1.0, %v6373_v35  ;;  %6382 = vrcp.f32 %v4265_v55 }
 0x91b   : > { %v5255_v36 = vmul.f32 -1.442695, %v4237_v56  ;;  %v4238_v60 = vadd.f32 %v7538_v59, %v3788_v57  ;;  %v5561_v18 = vpop.f32.mrb[84].mxu0 }
 0x91c   : > { %6384 = vrcp.f32 %v4266_v58  ;;  %v5562_v61 = vpop.f32.mrb[85].mxu0  ;;  %v6375_v62 = vpop.eup %6374 }
 0x91d   : > { %6386 = vpow2.f32 %v5255_v36  ;;  %v5256_v63 = vmul.f32 -1.442695, %v4238_v60  ;;  %v5563_v1 = vadd.f32 %v5562_v61, %v5561_v18  ;;  %v5564_v45 = vpop.f32.mrb[86].mxu0 }
 0x91e   : > { %v6377_v2 = vpop.eup %6376  ;;  %v5565_v3 = vpop.f32.mrb[87].mxu0 }
 0x91f   : > { %v6379_v5 = vpop.eup %6378  ;;  %6388 = vpow2.f32 %v5256_v63  ;;  %v4194_v7 = vadd.f32 %v5563_v1, %v7515_v24  ;;  %v5566_v49 = vadd.f32 %v5565_v3, %v5564_v45  ;;  %v7557_v37 = vpack.c.bf16 %v6377_v2, %v6375_v62 }
 0x920   : > { %v4267_v8 = vadd.f32 1.0, %v6379_v5 }
 0x921   : > { %v6381_v51 = vpop.eup %6380  ;;  %v4303_v6 = vadd.f32 %v7538_v59, %v4194_v7  ;;  %v4197_v9 = vadd.f32 %v5566_v49, %v7517_v28 }
 0x922   : > { %v4268_v10 = vadd.f32 1.0, %v6381_v51  ;;  %6390 = vrcp.f32 %v4267_v8 }
 0x923   : > { %v5257_v11 = vmul.f32 -1.442695, %v4303_v6  ;;  %v4304_v12 = vadd.f32 %v7538_v59, %v4197_v9  ;;  %v5567_v13 = vpop.f32.mrb[88].mxu0 }
 0x924   : > { %6392 = vrcp.f32 %v4268_v10  ;;  %v5568_v16 = vpop.f32.mrb[89].mxu0  ;;  %v6383_v15 = vpop.eup %6382 }
 0x925   : > { %6394 = vpow2.f32 %v5257_v11  ;;  %v5258_v24 = vmul.f32 -1.442695, %v4304_v12  ;;  %v5569_v17 = vadd.f32 %v5568_v16, %v5567_v13  ;;  %v5570_v14 = vpop.f32.mrb[90].mxu0 }
 0x926   : > { %v6385_v21 = vpop.eup %6384  ;;  %v5571_v20 = vpop.f32.mrb[91].mxu0 }
 0x927   : > { %v6387_v22 = vpop.eup %6386  ;;  %6396 = vpow2.f32 %v5258_v24  ;;  %v4202_v26 = vadd.f32 %v5569_v17, %v7523_v38  ;;  %v5572_v28 = vadd.f32 %v5571_v20, %v5570_v14  ;;  %v7563_v27 = vpack.c.bf16 %v6385_v21, %v6383_v15 }
 0x928   : > { %v4269_v29 = vadd.f32 1.0, %v6387_v22 }
 0x929   : > { %v6389_v25 = vpop.eup %6388  ;;  %v4305_v31 = vadd.f32 %v7538_v59, %v4202_v26  ;;  %v4205_v19 = vadd.f32 %v5572_v28, %v7525_v42 }
 0x92a   : > { %v4270_v32 = vadd.f32 1.0, %v6389_v25  ;;  %6398 = vrcp.f32 %v4269_v29 }
 0x92b   : > { %v5259_v33 = vmul.f32 -1.442695, %v4305_v31  ;;  %v4306_v23 = vadd.f32 %v7538_v59, %v4205_v19  ;;  %v5573_v34 = vpop.f32.mrb[92].mxu0 }
 0x92c   : > { %6400 = vrcp.f32 %v4270_v32  ;;  %v5574_v39 = vpop.f32.mrb[93].mxu0  ;;  %v6391_v40 = vpop.eup %6390  ;;  %v5266_v32 = vld [vmem:[%s7841_s20 + $0x88] sm:$0xff] }
 0x92d   : > { %6402 = vpow2.f32 %v5259_v33  ;;  %v5260_v38 = vmul.f32 -1.442695, %v4306_v23  ;;  %v5575_v43 = vadd.f32 %v5574_v39, %v5573_v34  ;;  %v5576_v44 = vpop.f32.mrb[94].mxu0  ;;  %v5267_v33 = vld [vmem:[%s7841_s20 + $0x90] sm:$0xff]  ;;  %v5268_v23 = vld [vmem:[%s7841_s20 + $0x98] sm:$0xff]  ;;  %v5269_v34 = vld [vmem:[%s7841_s20 + $0xa0] sm:$0xff] }
 0x92e   : > { %v6393_v46 = vpop.eup %6392  ;;  %v5577_v47 = vpop.f32.mrb[95].mxu0  ;;  %v5271_v39 = vld [vmem:[%s7841_s20 + $0xb0] sm:$0xff] }
 0x92f   : > { %v6395_v48 = vpop.eup %6394  ;;  %6404 = vpow2.f32 %v5260_v38  ;;  %v4210_v30 = vadd.f32 %v5575_v43, %v7531_v52  ;;  %v5578_v42 = vadd.f32 %v5577_v47, %v5576_v44  ;;  %v7569_v50 = vpack.c.bf16 %v6393_v46, %v6391_v40  ;;  %v5273_v40 = vld [vmem:[%s7841_s20 + $0xc0] sm:$0xff]  ;;  %v5274_v38 = vld [vmem:[%s7841_s20 + $0xc8] sm:$0xff]  ;;  %v5275_v43 = vld [vmem:[%s7841_s20 + $0xd0] sm:$0xff] }
 0x930   : > { %v4335_v41 = vadd.f32 1.0, %v6395_v48  ;;  %v5276_v44 = vld [vmem:[%s7841_s20 + $0xd8] sm:$0xff]  ;;  %v5277_v46 = vld [vmem:[%s7841_s20 + $0xe0] sm:$0xff]  ;;  %v5278_v47 = vld [vmem:[%s7841_s20 + $0xe8] sm:$0xff] }
 0x931   : > { %v6397_v53 = vpop.eup %6396  ;;  %v4307_v55 = vadd.f32 %v7538_v59, %v4210_v30  ;;  %v4213_v35 = vadd.f32 %v5578_v42, %v7533_v54  ;;  %v5279_v48 = vld [vmem:[%s7841_s20 + $0xf0] sm:$0xff]  ;;  %v5280_v30 = vld [vmem:[%s7841_s20 + $0xf8] sm:$0xff]  ;;  %v4287_v42 = vld [vmem:[%s7841_s20] sm:$0xff] }
 0x932   : > { %v4336_v56 = vadd.f32 1.0, %v6397_v53  ;;  %6406 = vrcp.f32 %v4335_v41  ;;  %v4289_v41 = vld [vmem:[%s7841_s20 + $0x10] sm:$0xff]  ;;  %v4290_v53 = vld [vmem:[%s7841_s20 + $0x18] sm:$0xff] }
 0x933   : > { %v5261_v57 = vmul.f32 -1.442695, %v4307_v55  ;;  %v4308_v58 = vadd.f32 %v7538_v59, %v4213_v35  ;;  %v5579_v36 = vpop.f32.mrb[96].mxu0  ;;  %v4291_v55 = vld [vmem:[%s7841_s20 + $0x20] sm:$0xff]  ;;  %v4292_v35 = vld [vmem:[%s7841_s20 + $0x28] sm:$0xff] }
 0x934   : > { %6408 = vrcp.f32 %v4336_v56  ;;  %v5580_v60 = vpop.f32.mrb[97].mxu0  ;;  %v6399_v18 = vpop.eup %6398  ;;  %v4293_v56 = vld [vmem:[%s7841_s20 + $0x30] sm:$0xff] }
 0x935   : > { %6410 = vpow2.f32 %v5261_v57  ;;  %v5262_v52 = vmul.f32 -1.442695, %v4308_v58  ;;  %v5581_v61 = vadd.f32 %v5580_v60, %v5579_v36  ;;  %v5582_v62 = vpop.f32.mrb[98].mxu0  ;;  %v4294_v57 = vld [vmem:[%s7841_s20 + $0x38] sm:$0xff]  ;;  %v4295_v58 = vld [vmem:[%s7841_s20 + $0x40] sm:$0xff]  ;;  %v4296_v36 = vld [vmem:[%s7841_s20 + $0x48] sm:$0xff] }
 0x936   : > { %v6401_v63 = vpop.eup %6400  ;;  %v5583_v1 = vpop.f32.mrb[99].mxu0  ;;  %v4297_v60 = vld [vmem:[%s7841_s20 + $0x50] sm:$0xff] }
 0x937   : > { %v6403_v45 = vpop.eup %6402  ;;  %6412 = vpow2.f32 %v5262_v52  ;;  %v4218_v2 = vadd.f32 %v5581_v61, %v7540_v0  ;;  %v5584_v54 = vadd.f32 %v5583_v1, %v5582_v62  ;;  %v7575_v3 = vpack.c.bf16 %v6401_v63, %v6399_v18  ;;  %v4298_v18 = vld [vmem:[%s7841_s20 + $0x58] sm:$0xff]  ;;  %v4299_v52 = vld [vmem:[%s7841_s20 + $0x60] sm:$0xff]  ;;  %v4300_v61 = vld [vmem:[%s7841_s20 + $0x68] sm:$0xff] }
 0x938   : > { %v4337_v5 = vadd.f32 1.0, %v6403_v45  ;;  %v4301_v62 = vld [vmem:[%s7841_s20 + $0x70] sm:$0xff]  ;;  %v4302_v63 = vld [vmem:[%s7841_s20 + $0x78] sm:$0xff] }
 0x939   : > { %v6405_v7 = vpop.eup %6404  ;;  %v4309_v49 = vadd.f32 %v7538_v59, %v4218_v2  ;;  %v4221_v8 = vadd.f32 %v5584_v54, %v7543_v4 }
 0x93a   : > { %v4338_v51 = vadd.f32 1.0, %v6405_v7  ;;  %6414 = vrcp.f32 %v4337_v5 }
 0x93b   : > { %v5263_v6 = vmul.f32 -1.442695, %v4309_v49  ;;  %v4310_v9 = vadd.f32 %v7538_v59, %v4221_v8 }
 0x93c   : > { %6416 = vrcp.f32 %v4338_v51  ;;  %v6407_v10 = vpop.eup %6406 }
 0x93d   : > { %6418 = vpow2.f32 %v5263_v6  ;;  %v5264_v11 = vmul.f32 -1.442695, %v4310_v9 }
 0x93e   : > { %v6409_v12 = vpop.eup %6408 }
 0x93f   : > { %v6411_v0 = vpop.eup %6410  ;;  %6420 = vpow2.f32 %v5264_v11  ;;  %v5969_v13 = vpack.c.bf16 %v6409_v12, %v6407_v10 }
 0x940   : > { %v4339_v16 = vadd.f32 1.0, %v6411_v0 }
 0x941   : > { %v6413_v15 = vpop.eup %6412  ;;  %5970 = vmatprep.subr.bf16.mxu1 %v5969_v13 }
 0x942   : > { %v4340_v24 = vadd.f32 1.0, %v6413_v15  ;;  %5972 = vmatpush3.bf16.msra.mxu1 %v5969_v13  ;;  %6422 = vrcp.f32 %v4339_v16 }
 0x944   : > { %6424 = vrcp.f32 %v4340_v24  ;;  %v6415_v4 = vpop.eup %6414 }
 0x946   : > { %v6417_v17 = vpop.eup %6416 }
 0x947   : > { %v6419_v14 = vpop.eup %6418  ;;  %v5973_v21 = vpack.c.bf16 %v6417_v17, %v6415_v4 }
 0x948   : > { %v4341_v59 = vadd.f32 1.0, %v6419_v14 }
 0x949   : > { %v6421_v20 = vpop.eup %6420  ;;  %5974 = vmatprep.subr.bf16.mxu1 %v5973_v21 }
 0x94a   : > { %v4342_v22 = vadd.f32 1.0, %v6421_v20  ;;  %5976 = vmatpush3.bf16.msra.mxu1 %v5973_v21  ;;  %6426 = vrcp.f32 %v4341_v59 }
 0x94c   : > { %6428 = vrcp.f32 %v4342_v22  ;;  %v6423_v26 = vpop.eup %6422 }
 0x94e   : > { %v6425_v28 = vpop.eup %6424 }
 0x94f   : > { %v5977_v29 = vpack.c.bf16 %v6425_v28, %v6423_v26 }
 0x951   : > { %5978 = vmatprep.subr.bf16.mxu1 %v5977_v29 }
 0x952   : > { %5980 = vmatpush3.bf16.msra.mxu1 %v5977_v29 }
 0x954   : > { %v6427_v25 = vpop.eup %6426 }
 0x956   : > { %v6429_v31 = vpop.eup %6428 }
 0x957   : > { %v5981_v19 = vpack.c.bf16 %v6429_v31, %v6427_v25 }
 0x959   : > { %5982 = vmatprep.subr.bf16.mxu1 %v5981_v19 }
 0x95a   : > { %5984 = vmatpush3.bf16.msra.mxu1 %v5981_v19 }
 0x95b   : > { %5986 = vmatprep.subr.bf16.mxu1 %v7557_v37 }
 0x95d   : > { %5882 = vmatmul.mubr.msk.f32.vlgmr.msra.gmra.mrb[54].mxu1 %vm4376_vm12, %v5266_v32 }
 0x95e   : > { %5988 = vmatpush3.bf16.msra.mxu1 %v7557_v37  ;;  %5884 = vmatprep.mubr.msk.f32.mxu1 %vm4376_vm12, %v5267_v33  ;;  %v5270_v37 = vld [vmem:[%s7841_s20 + $0xa8] sm:$0xff] }
 0x95f   : > { %5990 = vmatprep.subr.bf16.mxu1 %v7563_v27 }
 0x961   : > { %5885 = vmatmul.mubr.msk.f32.gmra.mrb[72].mxu1 %vm4376_vm12, %v5268_v23 }
 0x962   : > { %5992 = vmatpush3.bf16.msra.mxu1 %v7563_v27  ;;  %5887 = vmatprep.mubr.msk.f32.mxu1 %vm4376_vm12, %v5269_v34  ;;  %v5272_v27 = vld [vmem:[%s7841_s20 + $0xb8] sm:$0xff] }
 0x963   : > { %5994 = vmatprep.subr.bf16.mxu1 %v7569_v50 }
 0x965   : > { %5888 = vmatmul.mubr.msk.f32.gmra.mrb[74].mxu1 %vm4376_vm12, %v5270_v37 }
 0x966   : > { %5996 = vmatpush3.bf16.msra.mxu1 %v7569_v50  ;;  %5890 = vmatprep.mubr.msk.f32.mxu1 %vm4376_vm12, %v5271_v39  ;;  %v4288_v50 = vld [vmem:[%s7841_s20 + $0x8] sm:$0xff] }
 0x967   : > { %5998 = vmatprep.subr.bf16.mxu1 %v7575_v3 }
 0x969   : > { %5891 = vmatmul.mubr.msk.f32.gmra.mrb[76].mxu1 %vm4376_vm12, %v5272_v27 }
 0x96a   : > { %6000 = vmatpush3.bf16.msra.mxu1 %v7575_v3  ;;  %5893 = vmatprep.mubr.msk.f32.mxu1 %vm4376_vm12, %v5273_v40 }
 0x96d   : > { %5894 = vmatmul.mubr.msk.f32.gmra.mrb[78].mxu1 %vm4376_vm12, %v5274_v38 }
 0x96e   : > { %5896 = vmatprep.mubr.msk.f32.mxu1 %vm4376_vm12, %v5275_v43 }
 0x971   : > { %5897 = vmatmul.mubr.msk.f32.gmra.mrb[80].mxu1 %vm4376_vm12, %v5276_v44 }
 0x972   : > { %5899 = vmatprep.mubr.msk.f32.mxu1 %vm4376_vm12, %v5277_v46 }
 0x975   : > { %5900 = vmatmul.mubr.msk.f32.gmra.mrb[82].mxu1 %vm4376_vm12, %v5278_v47 }
 0x976   : > { %5902 = vmatprep.mubr.msk.f32.mxu1 %vm4376_vm12, %v5279_v48 }
 0x979   : > { %5903 = vmatmul.mubr.msk.f32.gmra.mrb[84].mxu1 %vm4376_vm12, %v5280_v30 }
 0x97a   : > { %5921 = vmatprep.mubr.msk.f32.mxu1 %vm4376_vm12, %v4287_v42 }
 0x97d   : > { %5922 = vmatmul.mubr.msk.f32.vlgmr.msra.gmra.mrb[54].mxu1 %vm4376_vm12, %v4288_v50 }
 0x97e   : > { %5924 = vmatprep.mubr.msk.f32.mxu1 %vm4376_vm12, %v4289_v41 }
 0x981   : > { %5925 = vmatmul.mubr.msk.f32.gmra.mrb[72].mxu1 %vm4376_vm12, %v4290_v53 }
 0x982   : > { %5927 = vmatprep.mubr.msk.f32.mxu1 %vm4376_vm12, %v4291_v55 }
 0x985   : > { %5928 = vmatmul.mubr.msk.f32.gmra.mrb[74].mxu1 %vm4376_vm12, %v4292_v35 }
 0x986   : > { %5930 = vmatprep.mubr.msk.f32.mxu1 %vm4376_vm12, %v4293_v56 }
 0x989   : > { %5931 = vmatmul.mubr.msk.f32.gmra.mrb[76].mxu1 %vm4376_vm12, %v4294_v57 }
 0x98a   : > { %5933 = vmatprep.mubr.msk.f32.mxu1 %vm4376_vm12, %v4295_v58 }
 0x98d   : > { %5934 = vmatmul.mubr.msk.f32.gmra.mrb[78].mxu1 %vm4376_vm12, %v4296_v36 }
 0x98e   : > { %5936 = vmatprep.mubr.msk.f32.mxu1 %vm4376_vm12, %v4297_v60 }
 0x991   : > { %5937 = vmatmul.mubr.msk.f32.gmra.mrb[80].mxu1 %vm4376_vm12, %v4298_v18 }
 0x992   : > { %5939 = vmatprep.mubr.msk.f32.mxu1 %vm4376_vm12, %v4299_v52 }
 0x995   : > { %5940 = vmatmul.mubr.msk.f32.gmra.mrb[82].mxu1 %vm4376_vm12, %v4300_v61 }
 0x996   : > { %5942 = vmatprep.mubr.msk.f32.mxu1 %vm4376_vm12, %v4301_v62 }
 0x999   : > { %5943 = vmatmul.mubr.msk.f32.gmra.mrb[84].mxu1 %vm4376_vm12, %v4302_v63 }
 0xa50   : > { %v5923_v1 = vpop.f32.mrb[54].mxu1 }
 0xa51   : > { %4764 = vst [vmem:[%s7715_s26 + $0x8] sm:$0xff] %v5923_v1  ;;  %v4684_v45 = vpop.f32.mrb[55].mxu1 }
 0xa52   : > { %4763 = vst [vmem:[%s7715_s26] sm:$0xff] %v4684_v45 }
 0xa54   : > { %v5926_v2 = vpop.f32.mrb[72].mxu1 }
 0xa55   : > { %4766 = vst [vmem:[%s7715_s26 + $0x18] sm:$0xff] %v5926_v2  ;;  %v4694_v54 = vpop.f32.mrb[73].mxu1 }
 0xa56   : > { %4765 = vst [vmem:[%s7715_s26 + $0x10] sm:$0xff] %v4694_v54 }
 0xa58   : > { %v5929_v3 = vpop.f32.mrb[74].mxu1 }
 0xa59   : > { %4768 = vst [vmem:[%s7715_s26 + $0x28] sm:$0xff] %v5929_v3  ;;  %v4704_v5 = vpop.f32.mrb[75].mxu1 }
 0xa5a   : > { %4767 = vst [vmem:[%s7715_s26 + $0x20] sm:$0xff] %v4704_v5 }
 0xa5c   : > { %v5932_v7 = vpop.f32.mrb[76].mxu1 }
 0xa5d   : > { %4770 = vst [vmem:[%s7715_s26 + $0x38] sm:$0xff] %v5932_v7  ;;  %v4714_v49 = vpop.f32.mrb[77].mxu1 }
 0xa5e   : > { %4769 = vst [vmem:[%s7715_s26 + $0x30] sm:$0xff] %v4714_v49 }
 0xa60   : > { %v5935_v8 = vpop.f32.mrb[78].mxu1 }
 0xa61   : > { %4772 = vst [vmem:[%s7715_s26 + $0x48] sm:$0xff] %v5935_v8  ;;  %v4724_v51 = vpop.f32.mrb[79].mxu1 }
 0xa62   : > { %4771 = vst [vmem:[%s7715_s26 + $0x40] sm:$0xff] %v4724_v51 }
 0xa64   : > { %v5938_v6 = vpop.f32.mrb[80].mxu1 }
 0xa65   : > { %4774 = vst [vmem:[%s7715_s26 + $0x58] sm:$0xff] %v5938_v6  ;;  %v4734_v9 = vpop.f32.mrb[81].mxu1 }
 0xa66   : > { %4773 = vst [vmem:[%s7715_s26 + $0x50] sm:$0xff] %v4734_v9 }
 0xa68   : > { %v5941_v10 = vpop.f32.mrb[82].mxu1 }
 0xa69   : > { %4776 = vst [vmem:[%s7715_s26 + $0x68] sm:$0xff] %v5941_v10  ;;  %v4744_v11 = vpop.f32.mrb[83].mxu1 }
 0xa6a   : > { %4775 = vst [vmem:[%s7715_s26 + $0x60] sm:$0xff] %v4744_v11 }
 0xa6c   : > { %v5944_v12 = vpop.f32.mrb[84].mxu1 }
 0xa6d   : > { %4778 = vst [vmem:[%s7715_s26 + $0x78] sm:$0xff] %v5944_v12  ;;  %v4754_v0 = vpop.f32.mrb[85].mxu1 }
 0xa6e   : > { %4777 = vst [vmem:[%s7715_s26 + $0x70] sm:$0xff] %v4754_v0 }
 0xa6f   : > { %6527 = shalt.err (!%p6524_p9)
}
 0xa70   : > { %s6528_s23 = scalar_lea.hbm %s7736_s19, 2048  ;;  %s6532_s18 = scalar_lea.hbm %s7845_s17, 4096 }
 0xa71   : > { %p6529_p2 = scmp.ne.s32.totalorder %s7736_s19, %s6528_s23  ;;  %p6533_p5 = scmp.lt.u32.totalorder %s7736_s19, %s7845_s17 }
 0xa72   : > { %p6534_p10 = scmp.lt.u32.totalorder %s6532_s18, %s6528_s23  ;;  %p6536_p12 = scmp.lt.u32.totalorder %s6528_s23, %s7736_s19 }
 0xa73   : > { %p6530_p0 = pnand %p6529_p2, %p7846_p7 }
 0xa74   : > { %p6535_p4 = por %p6534_p10, %p6533_p5 }
 0xa75   : > { %p6531_p3 = pneg %p6530_p0 }
 0xa76   : > { %p6537_p8 = por %p6536_p12, %p6535_p4 }
 0xa78   : > { %p6538_p11 = pnand %p6537_p8, %p6531_p3 }
 0xa7a   : > { %6541 = shalt.err (!%p6538_p11)
}
 0xa7b   : > { %s6595_s22 = smov 128   ;;  %s6596_s0 = smov 8  }
 0xa7c   : > { %6069 = dma.vmem_to_hbm [thread:$0]  (%p7846_p7), %s7738_s15, 2048, %s7736_s19, %s7744_s25, %s6595_s22, %s6595_s22, %s6596_s0  }
 0xa7d PF: > { %s7847_s28 = sld [smem:[#allocation20_spill]]  ;;  %s7848_s30 = sld [smem:[#allocation17_spill]] }
 0xa7e   : > { %s7849_s24 = sld [smem:[#allocation24_spill]] }
 0xa83   : > { %p6091_p13 = scmp.ge.s32.totalorder %s7847_s28, 2  ;;  %s4808_s29 = sand.u32 1, %s7848_s30  }
 0xa84   : > { %p7850_p1 = scmp.ne.s32.totalorder %s7849_s24, 0  ;;  %s4809_s23 = scalar_lea.sflag [#allocation9], %s4808_s29 }
 0xa86   : > { %p6082_p6 = pnand %p6091_p13, %p7850_p1 }
 0xa88   : > { %6567 = dma.done.wait (!%p6082_p6), %s4809_s23, 2048  }
 0xa89   : > { %6569 = vsyncadd (!%p6082_p6), %s4809_s23, 4294965248  ;;  %s7851_s24 = sld [smem:[#allocation21_spill]]  ;;  %s7852_s21 = sld [smem:[#allocation18_spill]] }
 0xa8a   : > { %s7853_s22 = sld [smem:[#allocation19_spill]]  ;;  %s7854_s23 = sld [smem:[#allocation22_spill]] }
 0xa8f   : > { %p28_p9 = scmp.ge.s32.totalorder %s7851_s24, 4  }
 0xa91   :  { %30 = sbr.rel (!%p28_p9) target bundleno = 10 (0xa), region = 153 }
 0xa98   :  { %4814 = vsyncpa [#allocation8], 1 }
 0xa99   :  { %4816 = vsyncpa [#allocation8 + $0x1], 1 }
 0xa9a   :  { %4817 = vsyncpa [#allocation11], 1 }
 0xa9b   :  { %4818 = vsyncpa [#allocation9], 1 }
 0xa9c   :  { %4820 = vsyncpa [#allocation9 + $0x1], 1 }

</bundles_post_ra>
